<compile_context>
chip_gen: v7x
topology: tpu7x:2x2x1
jax: 0.10.0
libtpu: 0.0.40
codegen_flags: <defaults>
</compile_context>

<pallas_src>
import functools

import numpy as np
import jax
import jax.numpy as jnp
from jax import lax
from jax.experimental import pallas as pl
from jax.experimental.pallas import tpu as pltpu


# ---------------------------------------------------------------------------
# Small host-side helpers
# ---------------------------------------------------------------------------
def _row_pad(W):
    """Zero rows padded on each side of the flattened spatial axis.

    Must cover the largest 3x3 tap shift (W + 1) and stay sublane aligned.
    """
    return ((W + 1 + 7) // 8) * 8


def _wrap_masks(H, W):
    """(3, HW, 1) f32 validity masks for horizontal tap offsets dw in {-1,0,+1}.

    Vertical (dh) out-of-range taps read zeros from the padded scratch border,
    so only row-wrap of the horizontal taps needs masking.
    """
    j = np.arange(H * W) % W
    m = np.ones((3, H * W, 1), np.float32)
    m[0, :, 0] = (j > 0).astype(np.float32)        # dw = -1
    m[2, :, 0] = (j < W - 1).astype(np.float32)    # dw = +1
    return jnp.asarray(m)


# ---------------------------------------------------------------------------
# In-kernel helpers
# ---------------------------------------------------------------------------
def _zero_borders(scr_ref, pad):
    rows, cols = scr_ref.shape
    zeros = jnp.zeros((pad, cols), jnp.float32)
    scr_ref[pl.ds(0, pad), :] = zeros
    scr_ref[pl.ds(rows - pad, pad), :] = zeros


def _conv3x3(scr_ref, w_ref, b_ref, wmask_ref, *, HW, W, pad):
    """3x3 'same' conv from a zero-padded scratch holding the input.

    9 shifted sublane-offset loads (no shift matrices) + one small bf16 MXU
    matmul per tap, accumulated in f32.
    """
    f32 = jnp.float32
    cout = w_ref.shape[2]
    acc = jnp.zeros((HW, cout), f32)
    for kh in range(3):
        for kw in range(3):
            k = kh * 3 + kw
            d = (kh - 1) * W + (kw - 1)
            tap = scr_ref[pl.ds(pad + d, HW), :]           # (HW, Cin) f32
            if kw != 1:                                    # mask row-wrapped cols
                tap = tap * wmask_ref[kw]
            acc = acc + jnp.dot(tap.astype(jnp.bfloat16), w_ref[k],
                                preferred_element_type=f32)
    return acc + b_ref[...]


# ---------------------------------------------------------------------------
# Pallas kernels (one grid step == one batch element)
# ---------------------------------------------------------------------------
def _resblock_kernel_s1(x_ref, w1_ref, b1_ref, w2_ref, b2_ref, wmask_ref,
                        o_ref, sa_ref, sb_ref, *, H, W, pad):
    f32 = jnp.float32
    HW = H * W
    x = x_ref[0].astype(f32)                               # (HW, C)

    _zero_borders(sa_ref, pad)
    sa_ref[pl.ds(pad, HW), :] = jnp.maximum(x, 0.0)
    h = _conv3x3(sa_ref, w1_ref, b1_ref, wmask_ref, HW=HW, W=W, pad=pad)

    _zero_borders(sb_ref, pad)
    sb_ref[pl.ds(pad, HW), :] = jnp.maximum(h, 0.0)
    h = _conv3x3(sb_ref, w2_ref, b2_ref, wmask_ref, HW=HW, W=W, pad=pad)

    o_ref[0] = (h + x).astype(o_ref.dtype)                 # identity bypass


def _resblock_kernel_s2(x_ref, w1_ref, b1_ref, w2_ref, b2_ref, wb_ref, bb_ref,
                        wmask_ref, o_ref, sa_ref, sb_ref, *, H, W, pad):
    f32 = jnp.float32
    HW = H * W
    Ho, Wo = H // 2, W // 2
    x = x_ref[0].astype(f32)                               # (HW, Cin)

    # main path: ReLU -> conv3x3 -> ReLU -> conv3x3
    _zero_borders(sa_ref, pad)
    sa_ref[pl.ds(pad, HW), :] = jnp.maximum(x, 0.0)
    h = _conv3x3(sa_ref, w1_ref, b1_ref, wmask_ref, HW=HW, W=W, pad=pad)

    _zero_borders(sb_ref, pad)
    sb_ref[pl.ds(pad, HW), :] = jnp.maximum(h, 0.0)
    h = _conv3x3(sb_ref, w2_ref, b2_ref, wmask_ref, HW=HW, W=W, pad=pad)

    # bypass: 1x1 conv = single MXU matmul.
    byp = jnp.dot(x.astype(jnp.bfloat16), wb_ref[...],
                  preferred_element_type=f32) + bb_ref[...]

    # AvgPool(2,2) is linear -> pool (main + bypass) once.  VPU adds + a
    # stride-2 sublane load + per-row-block copies; no pooling matmul.
    tot = h + byp                                          # (HW, Cout)
    sb_ref[pl.ds(pad, HW), :] = tot
    s = (sb_ref[pl.ds(pad, HW), :] + sb_ref[pl.ds(pad + 1, HW), :] +
         sb_ref[pl.ds(pad + W, HW), :] + sb_ref[pl.ds(pad + W + 1, HW), :]) * 0.25
    sb_ref[pl.ds(pad, HW), :] = s
    half = sb_ref[pl.ds(pad, HW // 2, stride=2), :]        # keep even columns
    sb_ref[pl.ds(pad, HW // 2), :] = half
    for io in range(Ho):                                   # keep even rows
        o_ref[0, pl.ds(io * Wo, Wo), :] = (
            sb_ref[pl.ds(pad + 2 * io * Wo, Wo), :].astype(o_ref.dtype))


# ---------------------------------------------------------------------------
# Wrapper
# ---------------------------------------------------------------------------
def resblock_discriminator(x_nchw, params, stride=1):
    N, Cin, H, W = x_nchw.shape
    w1 = params["w1"]                                      # (3,3,Cin,Cout) HWIO
    Cout = w1.shape[-1]
    HW = H * W
    pad = _row_pad(W)
    bf16 = jnp.bfloat16

    # TODO(synk): public interface kept NCHW to match PyTorch; the transposes
    # below are extra HBM passes and vanish if the network runs NHWC end-to-end.
    x_flat = jnp.transpose(x_nchw, (0, 2, 3, 1)).reshape(N, HW, Cin)
    w1_taps = w1.reshape(9, Cin, Cout).astype(bf16)
    w2_taps = params["w2"].reshape(9, Cout, Cout).astype(bf16)
    b1_2d = params["b1"].reshape(1, Cout).astype(jnp.float32)
    b2_2d = params["b2"].reshape(1, Cout).astype(jnp.float32)
    wmask = _wrap_masks(H, W)

    cparams = pltpu.CompilerParams(dimension_semantics=("parallel",))
    scratch = [pltpu.VMEM((HW + 2 * pad, Cin), jnp.float32),
               pltpu.VMEM((HW + 2 * pad, Cout), jnp.float32)]

    if stride == 1:
        assert Cin == Cout, "identity bypass requires in_channels == out_channels"
        Ho, Wo = H, W
        kern = functools.partial(_resblock_kernel_s1, H=H, W=W, pad=pad)
        out = pl.pallas_call(
            kern,
            out_shape=jax.ShapeDtypeStruct((N, HW, Cout), x_nchw.dtype),
            grid_spec=pltpu.PrefetchScalarGridSpec(
                num_scalar_prefetch=0,
                grid=(N,),
                in_specs=[
                    pl.BlockSpec((1, HW, Cin), lambda n: (n, 0, 0)),
                    pl.BlockSpec((9, Cin, Cout), lambda n: (0, 0, 0)),
                    pl.BlockSpec((1, Cout), lambda n: (0, 0)),
                    pl.BlockSpec((9, Cout, Cout), lambda n: (0, 0, 0)),
                    pl.BlockSpec((1, Cout), lambda n: (0, 0)),
                    pl.BlockSpec((3, HW, 1), lambda n: (0, 0, 0)),
                ],
                out_specs=pl.BlockSpec((1, HW, Cout), lambda n: (n, 0, 0)),
                scratch_shapes=scratch),
            compiler_params=cparams,
        )(x_flat, w1_taps, b1_2d, w2_taps, b2_2d, wmask)
    else:
        assert H % 2 == 0 and W % 2 == 0
        wb = params["wb"].astype(bf16)                     # (Cin, Cout) 1x1 conv
        bb_2d = params["bb"].reshape(1, Cout).astype(jnp.float32)
        Ho, Wo = H // 2, W // 2
        kern = functools.partial(_resblock_kernel_s2, H=H, W=W, pad=pad)
        out = pl.pallas_call(
            kern,
            out_shape=jax.ShapeDtypeStruct((N, Ho * Wo, Cout), x_nchw.dtype),
            grid_spec=pltpu.PrefetchScalarGridSpec(
                num_scalar_prefetch=0,
                grid=(N,),
                in_specs=[
                    pl.BlockSpec((1, HW, Cin), lambda n: (n, 0, 0)),
                    pl.BlockSpec((9, Cin, Cout), lambda n: (0, 0, 0)),
                    pl.BlockSpec((1, Cout), lambda n: (0, 0)),
                    pl.BlockSpec((9, Cout, Cout), lambda n: (0, 0, 0)),
                    pl.BlockSpec((1, Cout), lambda n: (0, 0)),
                    pl.BlockSpec((Cin, Cout), lambda n: (0, 0)),
                    pl.BlockSpec((1, Cout), lambda n: (0, 0)),
                    pl.BlockSpec((3, HW, 1), lambda n: (0, 0, 0)),
                ],
                out_specs=pl.BlockSpec((1, Ho * Wo, Cout), lambda n: (n, 0, 0)),
                scratch_shapes=scratch),
            compiler_params=cparams,
        )(x_flat, w1_taps, b1_2d, w2_taps, b2_2d, wb, bb_2d, wmask)

    return jnp.transpose(out.reshape(N, Ho, Wo, Cout), (0, 3, 1, 2))  # NCHW


# ---------------------------------------------------------------------------
# Pure-JAX reference (for correctness check)
# ---------------------------------------------------------------------------
def ref_forward(x_nchw, params, stride=1):
    x = jnp.transpose(x_nchw, (0, 2, 3, 1)).astype(jnp.float32)   # NHWC
    dn = ("NHWC", "HWIO", "NHWC")

    def avgpool(z):
        return lax.reduce_window(z, 0.0, lax.add, (1, 2, 2, 1),
                                 (1, 2, 2, 1), "VALID") / 4.0

    h = jax.nn.relu(x)
    h = lax.conv_general_dilated(h, params["w1"], (1, 1), "SAME",
                                 dimension_numbers=dn) + params["b1"]
    h = jax.nn.relu(h)
    h = lax.conv_general_dilated(h, params["w2"], (1, 1), "SAME",
                                 dimension_numbers=dn) + params["b2"]
    if stride == 1:
        byp = x
    else:
        h = avgpool(h)
        wb4 = params["wb"].reshape(1, 1, *params["wb"].shape)
        byp = lax.conv_general_dilated(x, wb4, (1, 1), "VALID",
                                       dimension_numbers=dn) + params["bb"]
        byp = avgpool(byp)
    return jnp.transpose(h + byp, (0, 3, 1, 2))


# ---------------------------------------------------------------------------
if __name__ == "__main__":
    key = jax.random.PRNGKey(0)
    N, Cin, Cout, H, W = 2, 4, 8, 16, 16
    k1, k2, k3, k4, k5, k6, kx = jax.random.split(key, 7)

    def xavier(k, shape, fan_in, fan_out):
        bound = float(np.sqrt(6.0 / (fan_in + fan_out)))
        return jax.random.uniform(k, shape, jnp.float32, -bound, bound)

    # stride=2 block: conv3x3 -> conv3x3 -> avgpool, bypass conv1x1 -> avgpool
    params2 = {
        "w1": xavier(k1, (3, 3, Cin, Cout), Cin * 9, Cout * 9),
        "b1": jax.random.uniform(k2, (Cout,), jnp.float32, -0.1, 0.1),
        "w2": xavier(k3, (3, 3, Cout, Cout), Cout * 9, Cout * 9),
        "b2": jax.random.uniform(k4, (Cout,), jnp.float32, -0.1, 0.1),
        "wb": xavier(k5, (Cin, Cout), Cin, Cout),
        "bb": jax.random.uniform(k6, (Cout,), jnp.float32, -0.1, 0.1),
    }
    x = jax.random.normal(kx, (N, Cin, H, W), jnp.float32)

    # Tolerance is intentionally loose: matmuls run the bf16 MXU path
    # (f32 accumulation), the reference is pure f32.
    y2 = jax.block_until_ready(resblock_discriminator(x, params2, stride=2))
    r2 = ref_forward(x, params2, stride=2)
    assert y2.shape == (N, Cout, H // 2, W // 2)
    np.testing.assert_allclose(np.asarray(y2), np.asarray(r2),
                               rtol=5e-2, atol=5e-2)

    # stride=1 block: identity bypass (requires in_channels == out_channels)
    params1 = {
        "w1": xavier(k1, (3, 3, Cin, Cin), Cin * 9, Cin * 9),
        "b1": jax.random.uniform(k2, (Cin,), jnp.float32, -0.1, 0.1),
        "w2": xavier(k3, (3, 3, Cin, Cin), Cin * 9, Cin * 9),
        "b2": jax.random.uniform(k4, (Cin,), jnp.float32, -0.1, 0.1),
    }
    y1 = jax.block_until_ready(resblock_discriminator(x, params1, stride=1))
    r1 = ref_forward(x, params1, stride=1)
    assert y1.shape == (N, Cin, H, W)
    np.testing.assert_allclose(np.asarray(y1), np.asarray(r1),
                               rtol=5e-2, atol=5e-2)

    print("KERNEL_OK")
</pallas_src>

<mosaic_0001>
module attributes {stable_mosaic.version = 11 : i64} {
  func.func @_resblock_kernel_s2(%arg0: i32, %arg1: memref<1x256x4xf32, #tpu.memory_space<vmem>>, %arg2: memref<9x4x8xbf16, #tpu.memory_space<vmem>>, %arg3: memref<1x8xf32, #tpu.memory_space<vmem>>, %arg4: memref<9x8x8xbf16, #tpu.memory_space<vmem>>, %arg5: memref<1x8xf32, #tpu.memory_space<vmem>>, %arg6: memref<4x8xbf16, #tpu.memory_space<vmem>>, %arg7: memref<1x8xf32, #tpu.memory_space<vmem>>, %arg8: memref<3x256x1xf32, #tpu.memory_space<vmem>>, %arg9: memref<1x64x8xf32, #tpu.memory_space<vmem>>, %arg10: memref<304x4xf32, #tpu.memory_space<vmem>>, %arg11: memref<304x8xf32, #tpu.memory_space<vmem>>) attributes {dimension_semantics = [#tpu.dimension_semantics<parallel>], iteration_bounds = array<i64: 2>, scalar_prefetch = 0 : i64, scratch_operands = 2 : i64, tpu.core_type = #tpu.core_type<tc>, window_params = [{transform_indices = @transform_0, window_bounds = array<i64: 1, 256, 4>}, {pipeline_mode = #tpu.pipeline_mode<synchronous>, transform_indices = @transform_1, window_bounds = array<i64: 9, 4, 8>}, {pipeline_mode = #tpu.pipeline_mode<synchronous>, transform_indices = @transform_2, window_bounds = array<i64: 1, 8>}, {pipeline_mode = #tpu.pipeline_mode<synchronous>, transform_indices = @transform_3, window_bounds = array<i64: 9, 8, 8>}, {pipeline_mode = #tpu.pipeline_mode<synchronous>, transform_indices = @transform_4, window_bounds = array<i64: 1, 8>}, {pipeline_mode = #tpu.pipeline_mode<synchronous>, transform_indices = @transform_5, window_bounds = array<i64: 4, 8>}, {pipeline_mode = #tpu.pipeline_mode<synchronous>, transform_indices = @transform_6, window_bounds = array<i64: 1, 8>}, {pipeline_mode = #tpu.pipeline_mode<synchronous>, transform_indices = @transform_7, window_bounds = array<i64: 3, 256, 1>}, {transform_indices = @transform_8, window_bounds = array<i64: 1, 64, 8>}]} {
    %c0 = arith.constant 0 : index
    %c0_0 = arith.constant 0 : index
    %c0_1 = arith.constant 0 : index
    %0 = vector.load %arg1[%c0, %c0_0, %c0_1] : memref<1x256x4xf32, #tpu.memory_space<vmem>>, vector<1x256x4xf32>
    %1 = vector.shape_cast %0 : vector<1x256x4xf32> to vector<256x4xf32>
    %cst = arith.constant 0.000000e+00 : f32
    %2 = vector.broadcast %cst : f32 to vector<24x4xf32>
    %c0_2 = arith.constant 0 : index
    %c0_3 = arith.constant 0 : index
    %3 = vector.load %arg10[%c0_2, %c0_3] : memref<304x4xf32, #tpu.memory_space<vmem>>, vector<24x4xf32>
    tpu.vector_store %arg10[%c0_2, %c0_3], %2 {strides = array<i32>} : memref<304x4xf32, #tpu.memory_space<vmem>>, vector<24x4xf32>,
    %c280 = arith.constant 280 : index
    %c0_4 = arith.constant 0 : index
    %4 = vector.load %arg10[%c280, %c0_4] : memref<304x4xf32, #tpu.memory_space<vmem>>, vector<24x4xf32>
    tpu.vector_store %arg10[%c280, %c0_4], %2 {strides = array<i32>} : memref<304x4xf32, #tpu.memory_space<vmem>>, vector<24x4xf32>,
    %cst_5 = arith.constant 0.000000e+00 : f32
    %5 = vector.broadcast %cst_5 : f32 to vector<256x4xf32>
    %6 = arith.maximumf %1, %5 : vector<256x4xf32>
    %c24 = arith.constant 24 : index
    %c0_6 = arith.constant 0 : index
    %7 = vector.load %arg10[%c24, %c0_6] : memref<304x4xf32, #tpu.memory_space<vmem>>, vector<256x4xf32>
    tpu.vector_store %arg10[%c24, %c0_6], %6 {strides = array<i32>} : memref<304x4xf32, #tpu.memory_space<vmem>>, vector<256x4xf32>,
    %cst_7 = arith.constant 0.000000e+00 : f32
    %8 = vector.broadcast %cst_7 : f32 to vector<256x8xf32>
    %c7 = arith.constant 7 : index
    %c0_8 = arith.constant 0 : index
    %9 = vector.load %arg10[%c7, %c0_8] : memref<304x4xf32, #tpu.memory_space<vmem>>, vector<256x4xf32>
    %c0_9 = arith.constant 0 : index
    %c0_10 = arith.constant 0 : index
    %c0_11 = arith.constant 0 : index
    %10 = vector.load %arg8[%c0_9, %c0_10, %c0_11] : memref<3x256x1xf32, #tpu.memory_space<vmem>>, vector<1x256x1xf32>
    %11 = vector.shape_cast %10 : vector<1x256x1xf32> to vector<256x1xf32>
    %12 = vector.broadcast %11 : vector<256x1xf32> to vector<256x4xf32>
    %13 = arith.mulf %9, %12 : vector<256x4xf32>
    %14 = arith.truncf %13 : vector<256x4xf32> to vector<256x4xbf16>
    %c0_12 = arith.constant 0 : index
    %c0_13 = arith.constant 0 : index
    %c0_14 = arith.constant 0 : index
    %15 = vector.load %arg2[%c0_12, %c0_13, %c0_14] : memref<9x4x8xbf16, #tpu.memory_space<vmem>>, vector<1x4x8xbf16>
    %16 = vector.shape_cast %15 : vector<1x4x8xbf16> to vector<4x8xbf16>
    %cst_15 = arith.constant dense<0.000000e+00> : vector<256x8xf32>
    %17 = tpu.matmul %14, %16, %cst_15 {dimension_numbers = #tpu.dot_dimension_numbers<[1], [0], [0], [1], [0, 0, 1, 1], [], []>} : vector<256x4xbf16>, vector<4x8xbf16>, vector<256x8xf32> -> vector<256x8xf32>
    %18 = arith.addf %8, %17 : vector<256x8xf32>
    %c8 = arith.constant 8 : index
    %c0_16 = arith.constant 0 : index
    %19 = vector.load %arg10[%c8, %c0_16] : memref<304x4xf32, #tpu.memory_space<vmem>>, vector<256x4xf32>
    %20 = arith.truncf %19 : vector<256x4xf32> to vector<256x4xbf16>
    %c1 = arith.constant 1 : index
    %c0_17 = arith.constant 0 : index
    %c0_18 = arith.constant 0 : index
    %21 = vector.load %arg2[%c1, %c0_17, %c0_18] : memref<9x4x8xbf16, #tpu.memory_space<vmem>>, vector<1x4x8xbf16>
    %22 = vector.shape_cast %21 : vector<1x4x8xbf16> to vector<4x8xbf16>
    %cst_19 = arith.constant dense<0.000000e+00> : vector<256x8xf32>
    %23 = tpu.matmul %20, %22, %cst_19 {dimension_numbers = #tpu.dot_dimension_numbers<[1], [0], [0], [1], [0, 0, 1, 1], [], []>} : vector<256x4xbf16>, vector<4x8xbf16>, vector<256x8xf32> -> vector<256x8xf32>
    %24 = arith.addf %18, %23 : vector<256x8xf32>
    %c9 = arith.constant 9 : index
    %c0_20 = arith.constant 0 : index
    %25 = vector.load %arg10[%c9, %c0_20] : memref<304x4xf32, #tpu.memory_space<vmem>>, vector<256x4xf32>
    %c2 = arith.constant 2 : index
    %c0_21 = arith.constant 0 : index
    %c0_22 = arith.constant 0 : index
    %26 = vector.load %arg8[%c2, %c0_21, %c0_22] : memref<3x256x1xf32, #tpu.memory_space<vmem>>, vector<1x256x1xf32>
    %27 = vector.shape_cast %26 : vector<1x256x1xf32> to vector<256x1xf32>
    %28 = vector.broadcast %27 : vector<256x1xf32> to vector<256x4xf32>
    %29 = arith.mulf %25, %28 : vector<256x4xf32>
    %30 = arith.truncf %29 : vector<256x4xf32> to vector<256x4xbf16>
    %c2_23 = arith.constant 2 : index
    %c0_24 = arith.constant 0 : index
    %c0_25 = arith.constant 0 : index
    %31 = vector.load %arg2[%c2_23, %c0_24, %c0_25] : memref<9x4x8xbf16, #tpu.memory_space<vmem>>, vector<1x4x8xbf16>
    %32 = vector.shape_cast %31 : vector<1x4x8xbf16> to vector<4x8xbf16>
    %cst_26 = arith.constant dense<0.000000e+00> : vector<256x8xf32>
    %33 = tpu.matmul %30, %32, %cst_26 {dimension_numbers = #tpu.dot_dimension_numbers<[1], [0], [0], [1], [0, 0, 1, 1], [], []>} : vector<256x4xbf16>, vector<4x8xbf16>, vector<256x8xf32> -> vector<256x8xf32>
    %34 = arith.addf %24, %33 : vector<256x8xf32>
    %c23 = arith.constant 23 : index
    %c0_27 = arith.constant 0 : index
    %35 = vector.load %arg10[%c23, %c0_27] : memref<304x4xf32, #tpu.memory_space<vmem>>, vector<256x4xf32>
    %c0_28 = arith.constant 0 : index
    %c0_29 = arith.constant 0 : index
    %c0_30 = arith.constant 0 : index
    %36 = vector.load %arg8[%c0_28, %c0_29, %c0_30] : memref<3x256x1xf32, #tpu.memory_space<vmem>>, vector<1x256x1xf32>
    %37 = vector.shape_cast %36 : vector<1x256x1xf32> to vector<256x1xf32>
    %38 = vector.broadcast %37 : vector<256x1xf32> to vector<256x4xf32>
    %39 = arith.mulf %35, %38 : vector<256x4xf32>
    %40 = arith.truncf %39 : vector<256x4xf32> to vector<256x4xbf16>
    %c3 = arith.constant 3 : index
    %c0_31 = arith.constant 0 : index
    %c0_32 = arith.constant 0 : index
    %41 = vector.load %arg2[%c3, %c0_31, %c0_32] : memref<9x4x8xbf16, #tpu.memory_space<vmem>>, vector<1x4x8xbf16>
    %42 = vector.shape_cast %41 : vector<1x4x8xbf16> to vector<4x8xbf16>
    %cst_33 = arith.constant dense<0.000000e+00> : vector<256x8xf32>
    %43 = tpu.matmul %40, %42, %cst_33 {dimension_numbers = #tpu.dot_dimension_numbers<[1], [0], [0], [1], [0, 0, 1, 1], [], []>} : vector<256x4xbf16>, vector<4x8xbf16>, vector<256x8xf32> -> vector<256x8xf32>
    %44 = arith.addf %34, %43 : vector<256x8xf32>
    %c24_34 = arith.constant 24 : index
    %c0_35 = arith.constant 0 : index
    %45 = vector.load %arg10[%c24_34, %c0_35] : memref<304x4xf32, #tpu.memory_space<vmem>>, vector<256x4xf32>
    %46 = arith.truncf %45 : vector<256x4xf32> to vector<256x4xbf16>
    %c4 = arith.constant 4 : index
    %c0_36 = arith.constant 0 : index
    %c0_37 = arith.constant 0 : index
    %47 = vector.load %arg2[%c4, %c0_36, %c0_37] : memref<9x4x8xbf16, #tpu.memory_space<vmem>>, vector<1x4x8xbf16>
    %48 = vector.shape_cast %47 : vector<1x4x8xbf16> to vector<4x8xbf16>
    %cst_38 = arith.constant dense<0.000000e+00> : vector<256x8xf32>
    %49 = tpu.matmul %46, %48, %cst_38 {dimension_numbers = #tpu.dot_dimension_numbers<[1], [0], [0], [1], [0, 0, 1, 1], [], []>} : vector<256x4xbf16>, vector<4x8xbf16>, vector<256x8xf32> -> vector<256x8xf32>
    %50 = arith.addf %44, %49 : vector<256x8xf32>
    %c25 = arith.constant 25 : index
    %c0_39 = arith.constant 0 : index
    %51 = vector.load %arg10[%c25, %c0_39] : memref<304x4xf32, #tpu.memory_space<vmem>>, vector<256x4xf32>
    %c2_40 = arith.constant 2 : index
    %c0_41 = arith.constant 0 : index
    %c0_42 = arith.constant 0 : index
    %52 = vector.load %arg8[%c2_40, %c0_41, %c0_42] : memref<3x256x1xf32, #tpu.memory_space<vmem>>, vector<1x256x1xf32>
    %53 = vector.shape_cast %52 : vector<1x256x1xf32> to vector<256x1xf32>
    %54 = vector.broadcast %53 : vector<256x1xf32> to vector<256x4xf32>
    %55 = arith.mulf %51, %54 : vector<256x4xf32>
    %56 = arith.truncf %55 : vector<256x4xf32> to vector<256x4xbf16>
    %c5 = arith.constant 5 : index
    %c0_43 = arith.constant 0 : index
    %c0_44 = arith.constant 0 : index
    %57 = vector.load %arg2[%c5, %c0_43, %c0_44] : memref<9x4x8xbf16, #tpu.memory_space<vmem>>, vector<1x4x8xbf16>
    %58 = vector.shape_cast %57 : vector<1x4x8xbf16> to vector<4x8xbf16>
    %cst_45 = arith.constant dense<0.000000e+00> : vector<256x8xf32>
    %59 = tpu.matmul %56, %58, %cst_45 {dimension_numbers = #tpu.dot_dimension_numbers<[1], [0], [0], [1], [0, 0, 1, 1], [], []>} : vector<256x4xbf16>, vector<4x8xbf16>, vector<256x8xf32> -> vector<256x8xf32>
    %60 = arith.addf %50, %59 : vector<256x8xf32>
    %c39 = arith.constant 39 : index
    %c0_46 = arith.constant 0 : index
    %61 = vector.load %arg10[%c39, %c0_46] : memref<304x4xf32, #tpu.memory_space<vmem>>, vector<256x4xf32>
    %c0_47 = arith.constant 0 : index
    %c0_48 = arith.constant 0 : index
    %c0_49 = arith.constant 0 : index
    %62 = vector.load %arg8[%c0_47, %c0_48, %c0_49] : memref<3x256x1xf32, #tpu.memory_space<vmem>>, vector<1x256x1xf32>
    %63 = vector.shape_cast %62 : vector<1x256x1xf32> to vector<256x1xf32>
    %64 = vector.broadcast %63 : vector<256x1xf32> to vector<256x4xf32>
    %65 = arith.mulf %61, %64 : vector<256x4xf32>
    %66 = arith.truncf %65 : vector<256x4xf32> to vector<256x4xbf16>
    %c6 = arith.constant 6 : index
    %c0_50 = arith.constant 0 : index
    %c0_51 = arith.constant 0 : index
    %67 = vector.load %arg2[%c6, %c0_50, %c0_51] : memref<9x4x8xbf16, #tpu.memory_space<vmem>>, vector<1x4x8xbf16>
    %68 = vector.shape_cast %67 : vector<1x4x8xbf16> to vector<4x8xbf16>
    %cst_52 = arith.constant dense<0.000000e+00> : vector<256x8xf32>
    %69 = tpu.matmul %66, %68, %cst_52 {dimension_numbers = #tpu.dot_dimension_numbers<[1], [0], [0], [1], [0, 0, 1, 1], [], []>} : vector<256x4xbf16>, vector<4x8xbf16>, vector<256x8xf32> -> vector<256x8xf32>
    %70 = arith.addf %60, %69 : vector<256x8xf32>
    %c40 = arith.constant 40 : index
    %c0_53 = arith.constant 0 : index
    %71 = vector.load %arg10[%c40, %c0_53] : memref<304x4xf32, #tpu.memory_space<vmem>>, vector<256x4xf32>
    %72 = arith.truncf %71 : vector<256x4xf32> to vector<256x4xbf16>
    %c7_54 = arith.constant 7 : index
    %c0_55 = arith.constant 0 : index
    %c0_56 = arith.constant 0 : index
    %73 = vector.load %arg2[%c7_54, %c0_55, %c0_56] : memref<9x4x8xbf16, #tpu.memory_space<vmem>>, vector<1x4x8xbf16>
    %74 = vector.shape_cast %73 : vector<1x4x8xbf16> to vector<4x8xbf16>
    %cst_57 = arith.constant dense<0.000000e+00> : vector<256x8xf32>
    %75 = tpu.matmul %72, %74, %cst_57 {dimension_numbers = #tpu.dot_dimension_numbers<[1], [0], [0], [1], [0, 0, 1, 1], [], []>} : vector<256x4xbf16>, vector<4x8xbf16>, vector<256x8xf32> -> vector<256x8xf32>
    %76 = arith.addf %70, %75 : vector<256x8xf32>
    %c41 = arith.constant 41 : index
    %c0_58 = arith.constant 0 : index
    %77 = vector.load %arg10[%c41, %c0_58] : memref<304x4xf32, #tpu.memory_space<vmem>>, vector<256x4xf32>
    %c2_59 = arith.constant 2 : index
    %c0_60 = arith.constant 0 : index
    %c0_61 = arith.constant 0 : index
    %78 = vector.load %arg8[%c2_59, %c0_60, %c0_61] : memref<3x256x1xf32, #tpu.memory_space<vmem>>, vector<1x256x1xf32>
    %79 = vector.shape_cast %78 : vector<1x256x1xf32> to vector<256x1xf32>
    %80 = vector.broadcast %79 : vector<256x1xf32> to vector<256x4xf32>
    %81 = arith.mulf %77, %80 : vector<256x4xf32>
    %82 = arith.truncf %81 : vector<256x4xf32> to vector<256x4xbf16>
    %c8_62 = arith.constant 8 : index
    %c0_63 = arith.constant 0 : index
    %c0_64 = arith.constant 0 : index
    %83 = vector.load %arg2[%c8_62, %c0_63, %c0_64] : memref<9x4x8xbf16, #tpu.memory_space<vmem>>, vector<1x4x8xbf16>
    %84 = vector.shape_cast %83 : vector<1x4x8xbf16> to vector<4x8xbf16>
    %cst_65 = arith.constant dense<0.000000e+00> : vector<256x8xf32>
    %85 = tpu.matmul %82, %84, %cst_65 {dimension_numbers = #tpu.dot_dimension_numbers<[1], [0], [0], [1], [0, 0, 1, 1], [], []>} : vector<256x4xbf16>, vector<4x8xbf16>, vector<256x8xf32> -> vector<256x8xf32>
    %86 = arith.addf %76, %85 : vector<256x8xf32>
    %c0_66 = arith.constant 0 : index
    %c0_67 = arith.constant 0 : index
    %87 = vector.load %arg3[%c0_66, %c0_67] : memref<1x8xf32, #tpu.memory_space<vmem>>, vector<1x8xf32>
    %88 = vector.broadcast %87 : vector<1x8xf32> to vector<256x8xf32>
    %89 = arith.addf %86, %88 : vector<256x8xf32>
    %cst_68 = arith.constant 0.000000e+00 : f32
    %90 = vector.broadcast %cst_68 : f32 to vector<24x8xf32>
    %c0_69 = arith.constant 0 : index
    %c0_70 = arith.constant 0 : index
    %91 = vector.load %arg11[%c0_69, %c0_70] : memref<304x8xf32, #tpu.memory_space<vmem>>, vector<24x8xf32>
    tpu.vector_store %arg11[%c0_69, %c0_70], %90 {strides = array<i32>} : memref<304x8xf32, #tpu.memory_space<vmem>>, vector<24x8xf32>,
    %c280_71 = arith.constant 280 : index
    %c0_72 = arith.constant 0 : index
    %92 = vector.load %arg11[%c280_71, %c0_72] : memref<304x8xf32, #tpu.memory_space<vmem>>, vector<24x8xf32>
    tpu.vector_store %arg11[%c280_71, %c0_72], %90 {strides = array<i32>} : memref<304x8xf32, #tpu.memory_space<vmem>>, vector<24x8xf32>,
    %cst_73 = arith.constant 0.000000e+00 : f32
    %93 = vector.broadcast %cst_73 : f32 to vector<256x8xf32>
    %94 = arith.maximumf %89, %93 : vector<256x8xf32>
    %c24_74 = arith.constant 24 : index
    %c0_75 = arith.constant 0 : index
    %95 = vector.load %arg11[%c24_74, %c0_75] : memref<304x8xf32, #tpu.memory_space<vmem>>, vector<256x8xf32>
    tpu.vector_store %arg11[%c24_74, %c0_75], %94 {strides = array<i32>} : memref<304x8xf32, #tpu.memory_space<vmem>>, vector<256x8xf32>,
    %cst_76 = arith.constant 0.000000e+00 : f32
    %96 = vector.broadcast %cst_76 : f32 to vector<256x8xf32>
    %c7_77 = arith.constant 7 : index
    %c0_78 = arith.constant 0 : index
    %97 = vector.load %arg11[%c7_77, %c0_78] : memref<304x8xf32, #tpu.memory_space<vmem>>, vector<256x8xf32>
    %c0_79 = arith.constant 0 : index
    %c0_80 = arith.constant 0 : index
    %c0_81 = arith.constant 0 : index
    %98 = vector.load %arg8[%c0_79, %c0_80, %c0_81] : memref<3x256x1xf32, #tpu.memory_space<vmem>>, vector<1x256x1xf32>
    %99 = vector.shape_cast %98 : vector<1x256x1xf32> to vector<256x1xf32>
    %100 = vector.broadcast %99 : vector<256x1xf32> to vector<256x8xf32>
    %101 = arith.mulf %97, %100 : vector<256x8xf32>
    %102 = arith.truncf %101 : vector<256x8xf32> to vector<256x8xbf16>
    %c0_82 = arith.constant 0 : index
    %c0_83 = arith.constant 0 : index
    %c0_84 = arith.constant 0 : index
    %103 = vector.load %arg4[%c0_82, %c0_83, %c0_84] : memref<9x8x8xbf16, #tpu.memory_space<vmem>>, vector<1x8x8xbf16>
    %104 = vector.shape_cast %103 : vector<1x8x8xbf16> to vector<8x8xbf16>
    %cst_85 = arith.constant dense<0.000000e+00> : vector<256x8xf32>
    %105 = tpu.matmul %102, %104, %cst_85 {dimension_numbers = #tpu.dot_dimension_numbers<[1], [0], [0], [1], [0, 0, 1, 1], [], []>} : vector<256x8xbf16>, vector<8x8xbf16>, vector<256x8xf32> -> vector<256x8xf32>
    %106 = arith.addf %96, %105 : vector<256x8xf32>
    %c8_86 = arith.constant 8 : index
    %c0_87 = arith.constant 0 : index
    %107 = vector.load %arg11[%c8_86, %c0_87] : memref<304x8xf32, #tpu.memory_space<vmem>>, vector<256x8xf32>
    %108 = arith.truncf %107 : vector<256x8xf32> to vector<256x8xbf16>
    %c1_88 = arith.constant 1 : index
    %c0_89 = arith.constant 0 : index
    %c0_90 = arith.constant 0 : index
    %109 = vector.load %arg4[%c1_88, %c0_89, %c0_90] : memref<9x8x8xbf16, #tpu.memory_space<vmem>>, vector<1x8x8xbf16>
    %110 = vector.shape_cast %109 : vector<1x8x8xbf16> to vector<8x8xbf16>
    %cst_91 = arith.constant dense<0.000000e+00> : vector<256x8xf32>
    %111 = tpu.matmul %108, %110, %cst_91 {dimension_numbers = #tpu.dot_dimension_numbers<[1], [0], [0], [1], [0, 0, 1, 1], [], []>} : vector<256x8xbf16>, vector<8x8xbf16>, vector<256x8xf32> -> vector<256x8xf32>
    %112 = arith.addf %106, %111 : vector<256x8xf32>
    %c9_92 = arith.constant 9 : index
    %c0_93 = arith.constant 0 : index
    %113 = vector.load %arg11[%c9_92, %c0_93] : memref<304x8xf32, #tpu.memory_space<vmem>>, vector<256x8xf32>
    %c2_94 = arith.constant 2 : index
    %c0_95 = arith.constant 0 : index
    %c0_96 = arith.constant 0 : index
    %114 = vector.load %arg8[%c2_94, %c0_95, %c0_96] : memref<3x256x1xf32, #tpu.memory_space<vmem>>, vector<1x256x1xf32>
    %115 = vector.shape_cast %114 : vector<1x256x1xf32> to vector<256x1xf32>
    %116 = vector.broadcast %115 : vector<256x1xf32> to vector<256x8xf32>
    %117 = arith.mulf %113, %116 : vector<256x8xf32>
    %118 = arith.truncf %117 : vector<256x8xf32> to vector<256x8xbf16>
    %c2_97 = arith.constant 2 : index
    %c0_98 = arith.constant 0 : index
    %c0_99 = arith.constant 0 : index
    %119 = vector.load %arg4[%c2_97, %c0_98, %c0_99] : memref<9x8x8xbf16, #tpu.memory_space<vmem>>, vector<1x8x8xbf16>
    %120 = vector.shape_cast %119 : vector<1x8x8xbf16> to vector<8x8xbf16>
    %cst_100 = arith.constant dense<0.000000e+00> : vector<256x8xf32>
    %121 = tpu.matmul %118, %120, %cst_100 {dimension_numbers = #tpu.dot_dimension_numbers<[1], [0], [0], [1], [0, 0, 1, 1], [], []>} : vector<256x8xbf16>, vector<8x8xbf16>, vector<256x8xf32> -> vector<256x8xf32>
    %122 = arith.addf %112, %121 : vector<256x8xf32>
    %c23_101 = arith.constant 23 : index
    %c0_102 = arith.constant 0 : index
    %123 = vector.load %arg11[%c23_101, %c0_102] : memref<304x8xf32, #tpu.memory_space<vmem>>, vector<256x8xf32>
    %c0_103 = arith.constant 0 : index
    %c0_104 = arith.constant 0 : index
    %c0_105 = arith.constant 0 : index
    %124 = vector.load %arg8[%c0_103, %c0_104, %c0_105] : memref<3x256x1xf32, #tpu.memory_space<vmem>>, vector<1x256x1xf32>
    %125 = vector.shape_cast %124 : vector<1x256x1xf32> to vector<256x1xf32>
    %126 = vector.broadcast %125 : vector<256x1xf32> to vector<256x8xf32>
    %127 = arith.mulf %123, %126 : vector<256x8xf32>
    %128 = arith.truncf %127 : vector<256x8xf32> to vector<256x8xbf16>
    %c3_106 = arith.constant 3 : index
    %c0_107 = arith.constant 0 : index
    %c0_108 = arith.constant 0 : index
    %129 = vector.load %arg4[%c3_106, %c0_107, %c0_108] : memref<9x8x8xbf16, #tpu.memory_space<vmem>>, vector<1x8x8xbf16>
    %130 = vector.shape_cast %129 : vector<1x8x8xbf16> to vector<8x8xbf16>
    %cst_109 = arith.constant dense<0.000000e+00> : vector<256x8xf32>
    %131 = tpu.matmul %128, %130, %cst_109 {dimension_numbers = #tpu.dot_dimension_numbers<[1], [0], [0], [1], [0, 0, 1, 1], [], []>} : vector<256x8xbf16>, vector<8x8xbf16>, vector<256x8xf32> -> vector<256x8xf32>
    %132 = arith.addf %122, %131 : vector<256x8xf32>
    %c24_110 = arith.constant 24 : index
    %c0_111 = arith.constant 0 : index
    %133 = vector.load %arg11[%c24_110, %c0_111] : memref<304x8xf32, #tpu.memory_space<vmem>>, vector<256x8xf32>
    %134 = arith.truncf %133 : vector<256x8xf32> to vector<256x8xbf16>
    %c4_112 = arith.constant 4 : index
    %c0_113 = arith.constant 0 : index
    %c0_114 = arith.constant 0 : index
    %135 = vector.load %arg4[%c4_112, %c0_113, %c0_114] : memref<9x8x8xbf16, #tpu.memory_space<vmem>>, vector<1x8x8xbf16>
    %136 = vector.shape_cast %135 : vector<1x8x8xbf16> to vector<8x8xbf16>
    %cst_115 = arith.constant dense<0.000000e+00> : vector<256x8xf32>
    %137 = tpu.matmul %134, %136, %cst_115 {dimension_numbers = #tpu.dot_dimension_numbers<[1], [0], [0], [1], [0, 0, 1, 1], [], []>} : vector<256x8xbf16>, vector<8x8xbf16>, vector<256x8xf32> -> vector<256x8xf32>
    %138 = arith.addf %132, %137 : vector<256x8xf32>
    %c25_116 = arith.constant 25 : index
    %c0_117 = arith.constant 0 : index
    %139 = vector.load %arg11[%c25_116, %c0_117] : memref<304x8xf32, #tpu.memory_space<vmem>>, vector<256x8xf32>
    %c2_118 = arith.constant 2 : index
    %c0_119 = arith.constant 0 : index
    %c0_120 = arith.constant 0 : index
    %140 = vector.load %arg8[%c2_118, %c0_119, %c0_120] : memref<3x256x1xf32, #tpu.memory_space<vmem>>, vector<1x256x1xf32>
    %141 = vector.shape_cast %140 : vector<1x256x1xf32> to vector<256x1xf32>
    %142 = vector.broadcast %141 : vector<256x1xf32> to vector<256x8xf32>
    %143 = arith.mulf %139, %142 : vector<256x8xf32>
    %144 = arith.truncf %143 : vector<256x8xf32> to vector<256x8xbf16>
    %c5_121 = arith.constant 5 : index
    %c0_122 = arith.constant 0 : index
    %c0_123 = arith.constant 0 : index
    %145 = vector.load %arg4[%c5_121, %c0_122, %c0_123] : memref<9x8x8xbf16, #tpu.memory_space<vmem>>, vector<1x8x8xbf16>
    %146 = vector.shape_cast %145 : vector<1x8x8xbf16> to vector<8x8xbf16>
    %cst_124 = arith.constant dense<0.000000e+00> : vector<256x8xf32>
    %147 = tpu.matmul %144, %146, %cst_124 {dimension_numbers = #tpu.dot_dimension_numbers<[1], [0], [0], [1], [0, 0, 1, 1], [], []>} : vector<256x8xbf16>, vector<8x8xbf16>, vector<256x8xf32> -> vector<256x8xf32>
    %148 = arith.addf %138, %147 : vector<256x8xf32>
    %c39_125 = arith.constant 39 : index
    %c0_126 = arith.constant 0 : index
    %149 = vector.load %arg11[%c39_125, %c0_126] : memref<304x8xf32, #tpu.memory_space<vmem>>, vector<256x8xf32>
    %c0_127 = arith.constant 0 : index
    %c0_128 = arith.constant 0 : index
    %c0_129 = arith.constant 0 : index
    %150 = vector.load %arg8[%c0_127, %c0_128, %c0_129] : memref<3x256x1xf32, #tpu.memory_space<vmem>>, vector<1x256x1xf32>
    %151 = vector.shape_cast %150 : vector<1x256x1xf32> to vector<256x1xf32>
    %152 = vector.broadcast %151 : vector<256x1xf32> to vector<256x8xf32>
    %153 = arith.mulf %149, %152 : vector<256x8xf32>
    %154 = arith.truncf %153 : vector<256x8xf32> to vector<256x8xbf16>
    %c6_130 = arith.constant 6 : index
    %c0_131 = arith.constant 0 : index
    %c0_132 = arith.constant 0 : index
    %155 = vector.load %arg4[%c6_130, %c0_131, %c0_132] : memref<9x8x8xbf16, #tpu.memory_space<vmem>>, vector<1x8x8xbf16>
    %156 = vector.shape_cast %155 : vector<1x8x8xbf16> to vector<8x8xbf16>
    %cst_133 = arith.constant dense<0.000000e+00> : vector<256x8xf32>
    %157 = tpu.matmul %154, %156, %cst_133 {dimension_numbers = #tpu.dot_dimension_numbers<[1], [0], [0], [1], [0, 0, 1, 1], [], []>} : vector<256x8xbf16>, vector<8x8xbf16>, vector<256x8xf32> -> vector<256x8xf32>
    %158 = arith.addf %148, %157 : vector<256x8xf32>
    %c40_134 = arith.constant 40 : index
    %c0_135 = arith.constant 0 : index
    %159 = vector.load %arg11[%c40_134, %c0_135] : memref<304x8xf32, #tpu.memory_space<vmem>>, vector<256x8xf32>
    %160 = arith.truncf %159 : vector<256x8xf32> to vector<256x8xbf16>
    %c7_136 = arith.constant 7 : index
    %c0_137 = arith.constant 0 : index
    %c0_138 = arith.constant 0 : index
    %161 = vector.load %arg4[%c7_136, %c0_137, %c0_138] : memref<9x8x8xbf16, #tpu.memory_space<vmem>>, vector<1x8x8xbf16>
    %162 = vector.shape_cast %161 : vector<1x8x8xbf16> to vector<8x8xbf16>
    %cst_139 = arith.constant dense<0.000000e+00> : vector<256x8xf32>
    %163 = tpu.matmul %160, %162, %cst_139 {dimension_numbers = #tpu.dot_dimension_numbers<[1], [0], [0], [1], [0, 0, 1, 1], [], []>} : vector<256x8xbf16>, vector<8x8xbf16>, vector<256x8xf32> -> vector<256x8xf32>
    %164 = arith.addf %158, %163 : vector<256x8xf32>
    %c41_140 = arith.constant 41 : index
    %c0_141 = arith.constant 0 : index
    %165 = vector.load %arg11[%c41_140, %c0_141] : memref<304x8xf32, #tpu.memory_space<vmem>>, vector<256x8xf32>
    %c2_142 = arith.constant 2 : index
    %c0_143 = arith.constant 0 : index
    %c0_144 = arith.constant 0 : index
    %166 = vector.load %arg8[%c2_142, %c0_143, %c0_144] : memref<3x256x1xf32, #tpu.memory_space<vmem>>, vector<1x256x1xf32>
    %167 = vector.shape_cast %166 : vector<1x256x1xf32> to vector<256x1xf32>
    %168 = vector.broadcast %167 : vector<256x1xf32> to vector<256x8xf32>
    %169 = arith.mulf %165, %168 : vector<256x8xf32>
    %170 = arith.truncf %169 : vector<256x8xf32> to vector<256x8xbf16>
    %c8_145 = arith.constant 8 : index
    %c0_146 = arith.constant 0 : index
    %c0_147 = arith.constant 0 : index
    %171 = vector.load %arg4[%c8_145, %c0_146, %c0_147] : memref<9x8x8xbf16, #tpu.memory_space<vmem>>, vector<1x8x8xbf16>
    %172 = vector.shape_cast %171 : vector<1x8x8xbf16> to vector<8x8xbf16>
    %cst_148 = arith.constant dense<0.000000e+00> : vector<256x8xf32>
    %173 = tpu.matmul %170, %172, %cst_148 {dimension_numbers = #tpu.dot_dimension_numbers<[1], [0], [0], [1], [0, 0, 1, 1], [], []>} : vector<256x8xbf16>, vector<8x8xbf16>, vector<256x8xf32> -> vector<256x8xf32>
    %174 = arith.addf %164, %173 : vector<256x8xf32>
    %c0_149 = arith.constant 0 : index
    %c0_150 = arith.constant 0 : index
    %175 = vector.load %arg5[%c0_149, %c0_150] : memref<1x8xf32, #tpu.memory_space<vmem>>, vector<1x8xf32>
    %176 = vector.broadcast %175 : vector<1x8xf32> to vector<256x8xf32>
    %177 = arith.addf %174, %176 : vector<256x8xf32>
    %178 = arith.truncf %1 : vector<256x4xf32> to vector<256x4xbf16>
    %c0_151 = arith.constant 0 : index
    %c0_152 = arith.constant 0 : index
    %179 = vector.load %arg6[%c0_151, %c0_152] : memref<4x8xbf16, #tpu.memory_space<vmem>>, vector<4x8xbf16>
    %cst_153 = arith.constant dense<0.000000e+00> : vector<256x8xf32>
    %180 = tpu.matmul %178, %179, %cst_153 {dimension_numbers = #tpu.dot_dimension_numbers<[1], [0], [0], [1], [0, 0, 1, 1], [], []>} : vector<256x4xbf16>, vector<4x8xbf16>, vector<256x8xf32> -> vector<256x8xf32>
    %c0_154 = arith.constant 0 : index
    %c0_155 = arith.constant 0 : index
    %181 = vector.load %arg7[%c0_154, %c0_155] : memref<1x8xf32, #tpu.memory_space<vmem>>, vector<1x8xf32>
    %182 = vector.broadcast %181 : vector<1x8xf32> to vector<256x8xf32>
    %183 = arith.addf %180, %182 : vector<256x8xf32>
    %184 = arith.addf %177, %183 : vector<256x8xf32>
    %c24_156 = arith.constant 24 : index
    %c0_157 = arith.constant 0 : index
    %185 = vector.load %arg11[%c24_156, %c0_157] : memref<304x8xf32, #tpu.memory_space<vmem>>, vector<256x8xf32>
    tpu.vector_store %arg11[%c24_156, %c0_157], %184 {strides = array<i32>} : memref<304x8xf32, #tpu.memory_space<vmem>>, vector<256x8xf32>,
    %c24_158 = arith.constant 24 : index
    %c0_159 = arith.constant 0 : index
    %186 = vector.load %arg11[%c24_158, %c0_159] : memref<304x8xf32, #tpu.memory_space<vmem>>, vector<256x8xf32>
    %c25_160 = arith.constant 25 : index
    %c0_161 = arith.constant 0 : index
    %187 = vector.load %arg11[%c25_160, %c0_161] : memref<304x8xf32, #tpu.memory_space<vmem>>, vector<256x8xf32>
    %188 = arith.addf %186, %187 : vector<256x8xf32>
    %c40_162 = arith.constant 40 : index
    %c0_163 = arith.constant 0 : index
    %189 = vector.load %arg11[%c40_162, %c0_163] : memref<304x8xf32, #tpu.memory_space<vmem>>, vector<256x8xf32>
    %190 = arith.addf %188, %189 : vector<256x8xf32>
    %c41_164 = arith.constant 41 : index
    %c0_165 = arith.constant 0 : index
    %191 = vector.load %arg11[%c41_164, %c0_165] : memref<304x8xf32, #tpu.memory_space<vmem>>, vector<256x8xf32>
    %192 = arith.addf %190, %191 : vector<256x8xf32>
    %cst_166 = arith.constant 2.500000e-01 : f32
    %193 = vector.broadcast %cst_166 : f32 to vector<256x8xf32>
    %194 = arith.mulf %192, %193 : vector<256x8xf32>
    %c24_167 = arith.constant 24 : index
    %c0_168 = arith.constant 0 : index
    %195 = vector.load %arg11[%c24_167, %c0_168] : memref<304x8xf32, #tpu.memory_space<vmem>>, vector<256x8xf32>
    tpu.vector_store %arg11[%c24_167, %c0_168], %194 {strides = array<i32>} : memref<304x8xf32, #tpu.memory_space<vmem>>, vector<256x8xf32>,
    %c24_169 = arith.constant 24 : index
    %c0_170 = arith.constant 0 : index
    %196 = tpu.strided_load %arg11[%c24_169, %c0_170] {strides = array<i32: 2, 1>} : memref<304x8xf32, #tpu.memory_space<vmem>>, vector<128x8xf32>
    %c24_171 = arith.constant 24 : index
    %c0_172 = arith.constant 0 : index
    %197 = vector.load %arg11[%c24_171, %c0_172] : memref<304x8xf32, #tpu.memory_space<vmem>>, vector<128x8xf32>
    tpu.vector_store %arg11[%c24_171, %c0_172], %196 {strides = array<i32>} : memref<304x8xf32, #tpu.memory_space<vmem>>, vector<128x8xf32>,
    %c24_173 = arith.constant 24 : index
    %c0_174 = arith.constant 0 : index
    %198 = vector.load %arg11[%c24_173, %c0_174] : memref<304x8xf32, #tpu.memory_space<vmem>>, vector<8x8xf32>
    %c0_175 = arith.constant 0 : index
    %c0_176 = arith.constant 0 : index
    %c0_177 = arith.constant 0 : index
    %199 = vector.load %arg9[%c0_175, %c0_176, %c0_177] : memref<1x64x8xf32, #tpu.memory_space<vmem>>, vector<1x8x8xf32>
    %200 = vector.shape_cast %199 : vector<1x8x8xf32> to vector<8x8xf32>
    %201 = vector.shape_cast %198 : vector<8x8xf32> to vector<1x8x8xf32>
    tpu.vector_store %arg9[%c0_175, %c0_176, %c0_177], %201 {strides = array<i32>} : memref<1x64x8xf32, #tpu.memory_space<vmem>>, vector<1x8x8xf32>,
    %c40_178 = arith.constant 40 : index
    %c0_179 = arith.constant 0 : index
    %202 = vector.load %arg11[%c40_178, %c0_179] : memref<304x8xf32, #tpu.memory_space<vmem>>, vector<8x8xf32>
    %c0_180 = arith.constant 0 : index
    %c8_181 = arith.constant 8 : index
    %c0_182 = arith.constant 0 : index
    %203 = vector.load %arg9[%c0_180, %c8_181, %c0_182] : memref<1x64x8xf32, #tpu.memory_space<vmem>>, vector<1x8x8xf32>
    %204 = vector.shape_cast %203 : vector<1x8x8xf32> to vector<8x8xf32>
    %205 = vector.shape_cast %202 : vector<8x8xf32> to vector<1x8x8xf32>
    tpu.vector_store %arg9[%c0_180, %c8_181, %c0_182], %205 {strides = array<i32>} : memref<1x64x8xf32, #tpu.memory_space<vmem>>, vector<1x8x8xf32>,
    %c56 = arith.constant 56 : index
    %c0_183 = arith.constant 0 : index
    %206 = vector.load %arg11[%c56, %c0_183] : memref<304x8xf32, #tpu.memory_space<vmem>>, vector<8x8xf32>
    %c0_184 = arith.constant 0 : index
    %c16 = arith.constant 16 : index
    %c0_185 = arith.constant 0 : index
    %207 = vector.load %arg9[%c0_184, %c16, %c0_185] : memref<1x64x8xf32, #tpu.memory_space<vmem>>, vector<1x8x8xf32>
    %208 = vector.shape_cast %207 : vector<1x8x8xf32> to vector<8x8xf32>
    %209 = vector.shape_cast %206 : vector<8x8xf32> to vector<1x8x8xf32>
    tpu.vector_store %arg9[%c0_184, %c16, %c0_185], %209 {strides = array<i32>} : memref<1x64x8xf32, #tpu.memory_space<vmem>>, vector<1x8x8xf32>,
    %c72 = arith.constant 72 : index
    %c0_186 = arith.constant 0 : index
    %210 = vector.load %arg11[%c72, %c0_186] : memref<304x8xf32, #tpu.memory_space<vmem>>, vector<8x8xf32>
    %c0_187 = arith.constant 0 : index
    %c24_188 = arith.constant 24 : index
    %c0_189 = arith.constant 0 : index
    %211 = vector.load %arg9[%c0_187, %c24_188, %c0_189] : memref<1x64x8xf32, #tpu.memory_space<vmem>>, vector<1x8x8xf32>
    %212 = vector.shape_cast %211 : vector<1x8x8xf32> to vector<8x8xf32>
    %213 = vector.shape_cast %210 : vector<8x8xf32> to vector<1x8x8xf32>
    tpu.vector_store %arg9[%c0_187, %c24_188, %c0_189], %213 {strides = array<i32>} : memref<1x64x8xf32, #tpu.memory_space<vmem>>, vector<1x8x8xf32>,
    %c88 = arith.constant 88 : index
    %c0_190 = arith.constant 0 : index
    %214 = vector.load %arg11[%c88, %c0_190] : memref<304x8xf32, #tpu.memory_space<vmem>>, vector<8x8xf32>
    %c0_191 = arith.constant 0 : index
    %c32 = arith.constant 32 : index
    %c0_192 = arith.constant 0 : index
    %215 = vector.load %arg9[%c0_191, %c32, %c0_192] : memref<1x64x8xf32, #tpu.memory_space<vmem>>, vector<1x8x8xf32>
    %216 = vector.shape_cast %215 : vector<1x8x8xf32> to vector<8x8xf32>
    %217 = vector.shape_cast %214 : vector<8x8xf32> to vector<1x8x8xf32>
    tpu.vector_store %arg9[%c0_191, %c32, %c0_192], %217 {strides = array<i32>} : memref<1x64x8xf32, #tpu.memory_space<vmem>>, vector<1x8x8xf32>,
    %c104 = arith.constant 104 : index
    %c0_193 = arith.constant 0 : index
    %218 = vector.load %arg11[%c104, %c0_193] : memref<304x8xf32, #tpu.memory_space<vmem>>, vector<8x8xf32>
    %c0_194 = arith.constant 0 : index
    %c40_195 = arith.constant 40 : index
    %c0_196 = arith.constant 0 : index
    %219 = vector.load %arg9[%c0_194, %c40_195, %c0_196] : memref<1x64x8xf32, #tpu.memory_space<vmem>>, vector<1x8x8xf32>
    %220 = vector.shape_cast %219 : vector<1x8x8xf32> to vector<8x8xf32>
    %221 = vector.shape_cast %218 : vector<8x8xf32> to vector<1x8x8xf32>
    tpu.vector_store %arg9[%c0_194, %c40_195, %c0_196], %221 {strides = array<i32>} : memref<1x64x8xf32, #tpu.memory_space<vmem>>, vector<1x8x8xf32>,
    %c120 = arith.constant 120 : index
    %c0_197 = arith.constant 0 : index
    %222 = vector.load %arg11[%c120, %c0_197] : memref<304x8xf32, #tpu.memory_space<vmem>>, vector<8x8xf32>
    %c0_198 = arith.constant 0 : index
    %c48 = arith.constant 48 : index
    %c0_199 = arith.constant 0 : index
    %223 = vector.load %arg9[%c0_198, %c48, %c0_199] : memref<1x64x8xf32, #tpu.memory_space<vmem>>, vector<1x8x8xf32>
    %224 = vector.shape_cast %223 : vector<1x8x8xf32> to vector<8x8xf32>
    %225 = vector.shape_cast %222 : vector<8x8xf32> to vector<1x8x8xf32>
    tpu.vector_store %arg9[%c0_198, %c48, %c0_199], %225 {strides = array<i32>} : memref<1x64x8xf32, #tpu.memory_space<vmem>>, vector<1x8x8xf32>,
    %c136 = arith.constant 136 : index
    %c0_200 = arith.constant 0 : index
    %226 = vector.load %arg11[%c136, %c0_200] : memref<304x8xf32, #tpu.memory_space<vmem>>, vector<8x8xf32>
    %c0_201 = arith.constant 0 : index
    %c56_202 = arith.constant 56 : index
    %c0_203 = arith.constant 0 : index
    %227 = vector.load %arg9[%c0_201, %c56_202, %c0_203] : memref<1x64x8xf32, #tpu.memory_space<vmem>>, vector<1x8x8xf32>
    %228 = vector.shape_cast %227 : vector<1x8x8xf32> to vector<8x8xf32>
    %229 = vector.shape_cast %226 : vector<8x8xf32> to vector<1x8x8xf32>
    tpu.vector_store %arg9[%c0_201, %c56_202, %c0_203], %229 {strides = array<i32>} : memref<1x64x8xf32, #tpu.memory_space<vmem>>, vector<1x8x8xf32>,
    return
  }
  func.func @transform_0(%arg0: i32) -> (i32, i32, i32) {
    %c0_i32 = arith.constant 0 : i32
    %c0_i32_0 = arith.constant 0 : i32
    %c0_i32_1 = arith.constant 0 : i32
    return %arg0, %c0_i32, %c0_i32_0 : i32, i32, i32
  }
  func.func @transform_1(%arg0: i32) -> (i32, i32, i32) {
    %c0_i32 = arith.constant 0 : i32
    %c0_i32_0 = arith.constant 0 : i32
    %c0_i32_1 = arith.constant 0 : i32
    %c0_i32_2 = arith.constant 0 : i32
    return %c0_i32, %c0_i32_0, %c0_i32_1 : i32, i32, i32
  }
  func.func @transform_2(%arg0: i32) -> (i32, i32) {
    %c0_i32 = arith.constant 0 : i32
    %c0_i32_0 = arith.constant 0 : i32
    %c0_i32_1 = arith.constant 0 : i32
    return %c0_i32, %c0_i32_0 : i32, i32
  }
  func.func @transform_3(%arg0: i32) -> (i32, i32, i32) {
    %c0_i32 = arith.constant 0 : i32
    %c0_i32_0 = arith.constant 0 : i32
    %c0_i32_1 = arith.constant 0 : i32
    %c0_i32_2 = arith.constant 0 : i32
    return %c0_i32, %c0_i32_0, %c0_i32_1 : i32, i32, i32
  }
  func.func @transform_4(%arg0: i32) -> (i32, i32) {
    %c0_i32 = arith.constant 0 : i32
    %c0_i32_0 = arith.constant 0 : i32
    %c0_i32_1 = arith.constant 0 : i32
    return %c0_i32, %c0_i32_0 : i32, i32
  }
  func.func @transform_5(%arg0: i32) -> (i32, i32) {
    %c0_i32 = arith.constant 0 : i32
    %c0_i32_0 = arith.constant 0 : i32
    %c0_i32_1 = arith.constant 0 : i32
    return %c0_i32, %c0_i32_0 : i32, i32
  }
  func.func @transform_6(%arg0: i32) -> (i32, i32) {
    %c0_i32 = arith.constant 0 : i32
    %c0_i32_0 = arith.constant 0 : i32
    %c0_i32_1 = arith.constant 0 : i32
    return %c0_i32, %c0_i32_0 : i32, i32
  }
  func.func @transform_7(%arg0: i32) -> (i32, i32, i32) {
    %c0_i32 = arith.constant 0 : i32
    %c0_i32_0 = arith.constant 0 : i32
    %c0_i32_1 = arith.constant 0 : i32
    %c0_i32_2 = arith.constant 0 : i32
    return %c0_i32, %c0_i32_0, %c0_i32_1 : i32, i32, i32
  }
  func.func @transform_8(%arg0: i32) -> (i32, i32, i32) {
    %c0_i32 = arith.constant 0 : i32
    %c0_i32_0 = arith.constant 0 : i32
    %c0_i32_1 = arith.constant 0 : i32
    return %arg0, %c0_i32, %c0_i32_0 : i32, i32, i32
  }
}

</mosaic_0001>

<bundles_post_ra>
// kernel: tpu_custom_call.1
= control target key start
LH: loop header
LB: loop body
LE: loop exit
PB: predicated region body
PF: predicated region fallthrough
CT: control target
= control target key end

     0   :  { %s9621_s27 = smov 0   ;;  %s12197_s0 = inlined_call_operand.vmem [shape: f32[2,256,4], index: 0, kind: input, shape index: {}]   ;;  %s12198_s1 = inlined_call_operand.vmem [shape: bf16[9,4,8], index: 1, kind: input, shape index: {}]   ;;  %s12199_s2 = inlined_call_operand.vmem [shape: f32[1,8], index: 2, kind: input, shape index: {}]   ;;  %s12200_s3 = inlined_call_operand.vmem [shape: bf16[9,8,8], index: 3, kind: input, shape index: {}]   ;;  %s12201_s4 = inlined_call_operand.vmem [shape: f32[1,8], index: 4, kind: input, shape index: {}]   ;;  %s12202_s5 = inlined_call_operand.vmem [shape: bf16[4,8], index: 5, kind: input, shape index: {}]   ;;  %s12203_s6 = inlined_call_operand.vmem [shape: f32[1,8], index: 6, kind: input, shape index: {}]   ;;  %s12204_s7 = inlined_call_operand.vmem [shape: f32[3,256,1], index: 7, kind: input, shape index: {}]   ;;  %s12205_s8 = inlined_call_operand.vmem [shape: f32[2,64,8], index: 8, kind: output, shape index: {}]  }
   0x1 LB: > { %s7523_s28 = sadd.s32 4294967295, %s9572_s27   ;;  %p7527_p0 = scmp.ge.s32.totalorder %s9572_s27, 1  ;;  %s9572_s27 = sphi %s9621_s27, %s18_s27  }
   0x2   : > { %p262_p1 = scmp.lt.s32.totalorder %s9572_s27, 3 }
   0x4   : > { %p263_p2 = pnand %p7527_p0, %p262_p1 }
   0x6   : > { %266 = sbr.rel (%p263_p2) target bundleno = 1714 (0x6b2), region = 52 }
   0xd   : > { %v9632_v0 = vld [vmem:[%s12204_s7 + $0x10] sm:$0xff]  ;;  %v9637_v1 = vld [vmem:[%s12204_s7] sm:$0xff]  ;;  %vm339_vm0 = vcmask 31744   ;;  %v9574_v2 = vmov 0   ;;  %p296_p3 = scmp.lt.s32.totalorder %s7523_s28, 1  ;;  %v9575_v3 = vmov 0.0  }
   0xe   : > { %9533 = vset.pattern.permute.xlu1 %v9574_v2  ;;  %9532 = vset.pattern.permute.xlu0 %v9574_v2  ;;  %341 = vst.msk [vmem:[#allocation2 + $0x8] sm:$0xff] %vm339_vm0, %v9575_v3  ;;  %342 = vst.msk [vmem:[#allocation2 + $0x10] sm:$0xff] %vm339_vm0, %v9575_v3  ;;  %v9656_v4 = vld [vmem:[%s12204_s7 + $0x18] sm:$0xff]  ;;  %v9661_v5 = vld [vmem:[%s12204_s7 + $0x8] sm:$0xff]  ;;  %vm781_vm1 = vcmask 1041408   ;;  %vm3608_vm2 = vcmask 64512  }
   0xf   : > { %486 = vperm.xlu1 %9533, %v9632_v0   ;;  %476 = vperm.xlu0 %9532, %v9637_v1   ;;  %340 = vst.msk [vmem:[#allocation2] sm:$0xff] %vm339_vm0, %v9575_v3  ;;  %343 = vst.msk [vmem:[#allocation2 + $0x118] sm:$0xff] %vm339_vm0, %v9575_v3  ;;  %s12924_s28 = smov (!%p296_p3, %s7523_s28), 1  ;;  %v9670_v6 = vld [vmem:[%s12204_s7 + $0x28] sm:$0xff]  ;;  %v9675_v7 = vld [vmem:[%s12204_s7 + $0x20] sm:$0xff]  ;;  %vm4050_vm3 = vcmask 1043456  }
  0x10   : > { %344 = vst.msk [vmem:[#allocation2 + $0x120] sm:$0xff] %vm339_vm0, %v9575_v3  ;;  %345 = vst.msk [vmem:[#allocation2 + $0x128] sm:$0xff] %vm339_vm0, %v9575_v3  ;;  %s7921_s19 = sshll.u32 %s12924_s28, 8  ;;  %v9683_v8 = vld [vmem:[%s12204_s7 + $0x38] sm:$0xff]  ;;  %v9688_v9 = vld [vmem:[%s12204_s7 + $0x30] sm:$0xff] }
  0x11   : > { %v7532_v10 = vld [vmem:[%s12198_s1 + $0x2] sm:$0x3]  ;;  %s9696_s30 = scalar_lea.vmem %s12197_s0, %s7921_s19  ;;  %v9703_v12 = vld [vmem:[%s12198_s1] sm:$0x3]  ;;  %v9712_v18 = vld [vmem:[%s12204_s7 + $0x48] sm:$0xff]  ;;  %3610 = vst.msk [vmem:[#allocation3 + $0x8] sm:$0xff] %vm3608_vm2, %v9575_v3 }
  0x12   : > { %9502 = vmatprep.subr.msk.bf16.mxu0 %vm781_vm1, %v7532_v10  ;;  %v783_v11 = vsel %vm781_vm1, %v7532_v10, 0  ;;  %v307_v16 = vld [vmem:[%s9696_s30] sm:$0xff]  ;;  %v308_v17 = vld [vmem:[%s9696_s30 + $0x8] sm:$0xff]  ;;  %v309_v22 = vld [vmem:[%s9696_s30 + $0x10] sm:$0xff]  ;;  %v995_v54 = vsel %vm781_vm1, %v9703_v12, 0  ;;  %3611 = vst.msk [vmem:[#allocation3 + $0x10] sm:$0xff] %vm3608_vm2, %v9575_v3 }
  0x13   : > { %491 = vperm.xlu1 %9533, %v9656_v4   ;;  %481 = vperm.xlu0 %9532, %v9661_v5   ;;  %v9717_v19 = vld [vmem:[%s12204_s7 + $0x40] sm:$0xff]  ;;  %v346_v20 = vmax.f32 %v307_v16, 0.0  ;;  %v347_v21 = vmax.f32 %v308_v17, 0.0  ;;  %v310_v23 = vld [vmem:[%s9696_s30 + $0x18] sm:$0xff]  ;;  %v348_v25 = vmax.f32 %v309_v22, 0.0  ;;  %v312_v27 = vld [vmem:[%s9696_s30 + $0x28] sm:$0xff] }
  0x14   : > { %8247 = vmatpush3.bf16.msra.mxu0 %v783_v11  ;;  %v311_v24 = vld [vmem:[%s9696_s30 + $0x20] sm:$0xff]  ;;  %v349_v26 = vmax.f32 %v310_v23, 0.0  ;;  %v9733_v29 = vld [vmem:[%s12204_s7 + $0x58] sm:$0xff]  ;;  %v9738_v30 = vld [vmem:[%s12204_s7 + $0x50] sm:$0xff]  ;;  %v351_v31 = vmax.f32 %v312_v27, 0.0  ;;  %3609 = vst.msk [vmem:[#allocation3] sm:$0xff] %vm3608_vm2, %v9575_v3 }
  0x15   : > { %v683_v13 = vld [vmem:[#allocation2 + $0x8] sm:$0xff]  ;;  %v684_v14 = vld [vmem:[#allocation2 + $0x10] sm:$0xff]  ;;  %9503 = vmatprep.subr.msk.bf16.mxu0 %vm781_vm1, %v9703_v12  ;;  %378 = vst.msk [vmem:[#allocation2 + $0x18] sm:$0xff] %vm339_vm0, %v346_v20  ;;  %379 = vst.msk [vmem:[#allocation2 + $0x20] sm:$0xff] %vm339_vm0, %v347_v21  ;;  %v350_v28 = vmax.f32 %v311_v24, 0.0 }
  0x16   : > { %v715_v15 = vpack.c.bf16 %v684_v14, %v683_v13  ;;  %v313_v32 = vld [vmem:[%s9696_s30 + $0x30] sm:$0xff]  ;;  %380 = vst.msk [vmem:[#allocation2 + $0x28] sm:$0xff] %vm339_vm0, %v348_v25  ;;  %381 = vst.msk [vmem:[#allocation2 + $0x30] sm:$0xff] %vm339_vm0, %v349_v26  ;;  %v314_v33 = vld [vmem:[%s9696_s30 + $0x38] sm:$0xff] }
  0x17   : > { %501 = vperm.xlu1 %9533, %v9670_v6   ;;  %496 = vperm.xlu0 %9532, %v9675_v7   ;;  %382 = vst.msk [vmem:[#allocation2 + $0x38] sm:$0xff] %vm339_vm0, %v350_v28  ;;  %v352_v34 = vmax.f32 %v313_v32, 0.0  ;;  %v315_v35 = vld [vmem:[%s9696_s30 + $0x40] sm:$0xff]  ;;  %v316_v36 = vld [vmem:[%s9696_s30 + $0x48] sm:$0xff]  ;;  %383 = vst.msk [vmem:[#allocation2 + $0x40] sm:$0xff] %vm339_vm0, %v351_v31  ;;  %v353_v37 = vmax.f32 %v314_v33, 0.0 }
  0x18   : > { %8248 = vmatprep.mubr.msk.bf16.mxu0 %vm339_vm0, %v715_v15  ;;  %v354_v38 = vmax.f32 %v315_v35, 0.0  ;;  %v355_v39 = vmax.f32 %v316_v36, 0.0  ;;  %v317_v40 = vld [vmem:[%s9696_s30 + $0x50] sm:$0xff]  ;;  %v318_v41 = vld [vmem:[%s9696_s30 + $0x58] sm:$0xff]  ;;  %v319_v44 = vld [vmem:[%s9696_s30 + $0x60] sm:$0xff]  ;;  %3612 = vst.msk [vmem:[#allocation3 + $0x118] sm:$0xff] %vm3608_vm2, %v9575_v3 }
  0x19   : > { %384 = vst.msk [vmem:[#allocation2 + $0x48] sm:$0xff] %vm339_vm0, %v352_v34  ;;  %385 = vst.msk [vmem:[#allocation2 + $0x50] sm:$0xff] %vm339_vm0, %v353_v37  ;;  %v356_v42 = vmax.f32 %v317_v40, 0.0  ;;  %v357_v43 = vmax.f32 %v318_v41, 0.0  ;;  %v320_v45 = vld [vmem:[%s9696_s30 + $0x68] sm:$0xff]  ;;  %v9766_v47 = vld [vmem:[%s12204_s7 + $0x60] sm:$0xff] }
  0x1a   : > { %386 = vst.msk [vmem:[#allocation2 + $0x58] sm:$0xff] %vm339_vm0, %v354_v38  ;;  %387 = vst.msk [vmem:[#allocation2 + $0x60] sm:$0xff] %vm339_vm0, %v355_v39  ;;  %v9761_v46 = vld [vmem:[%s12204_s7 + $0x68] sm:$0xff]  ;;  %v358_v48 = vmax.f32 %v319_v44, 0.0  ;;  %v359_v49 = vmax.f32 %v320_v45, 0.0  ;;  %v321_v52 = vld [vmem:[%s9696_s30 + $0x70] sm:$0xff] }
  0x1b   : > { %511 = vperm.xlu1 %9533, %v9683_v8   ;;  %506 = vperm.xlu0 %9532, %v9688_v9   ;;  %388 = vst.msk [vmem:[#allocation2 + $0x68] sm:$0xff] %vm339_vm0, %v356_v42  ;;  %389 = vst.msk [vmem:[#allocation2 + $0x70] sm:$0xff] %vm339_vm0, %v357_v43  ;;  %v322_v55 = vld [vmem:[%s9696_s30 + $0x78] sm:$0xff]  ;;  %v360_v56 = vmax.f32 %v321_v52, 0.0  ;;  %v323_v57 = vld [vmem:[%s9696_s30 + $0x80] sm:$0xff] }
  0x1c   : > { %v685_v50 = vld [vmem:[#allocation2 + $0x18] sm:$0xff]  ;;  %v686_v51 = vld [vmem:[#allocation2 + $0x20] sm:$0xff]  ;;  %390 = vst.msk [vmem:[#allocation2 + $0x78] sm:$0xff] %vm339_vm0, %v358_v48  ;;  %391 = vst.msk [vmem:[#allocation2 + $0x80] sm:$0xff] %vm339_vm0, %v359_v49  ;;  %v361_v61 = vmax.f32 %v322_v55, 0.0  ;;  %v362_v62 = vmax.f32 %v323_v57, 0.0 }
  0x1d   : > { %v716_v53 = vpack.c.bf16 %v686_v51, %v685_v50  ;;  %v324_v58 = vld [vmem:[%s9696_s30 + $0x88] sm:$0xff]  ;;  %v688_v60 = vld [vmem:[#allocation2 + $0x30] sm:$0xff]  ;;  %v9783_v2 = vld [vmem:[%s12204_s7 + $0x78] sm:$0xff]  ;;  %392 = vst.msk [vmem:[#allocation2 + $0x88] sm:$0xff] %vm339_vm0, %v360_v56 }
  0x1e   : > { %v687_v59 = vld [vmem:[#allocation2 + $0x28] sm:$0xff]  ;;  %v363_v63 = vmax.f32 %v324_v58, 0.0  ;;  %v9788_v10 = vld [vmem:[%s12204_s7 + $0x70] sm:$0xff]  ;;  %v689_v12 = vld [vmem:[#allocation2 + $0x38] sm:$0xff]  ;;  %393 = vst.msk [vmem:[#allocation2 + $0x90] sm:$0xff] %vm339_vm0, %v361_v61 }
  0x1f   : > { %521 = vperm.xlu1 %9533, %v9712_v18   ;;  %516 = vperm.xlu0 %9532, %v9717_v19   ;;  %v717_v11 = vpack.c.bf16 %v688_v60, %v687_v59  ;;  %v690_v13 = vld [vmem:[#allocation2 + $0x40] sm:$0xff]  ;;  %394 = vst.msk [vmem:[#allocation2 + $0x98] sm:$0xff] %vm339_vm0, %v362_v62  ;;  %v325_v16 = vld [vmem:[%s9696_s30 + $0x90] sm:$0xff]  ;;  %v326_v17 = vld [vmem:[%s9696_s30 + $0x98] sm:$0xff] }
  0x20   : > { %8249 = vmatmul.mubr.msk.bf16.vlgmr.msra.gmra.mrb[0].mxu0 %vm339_vm0, %v716_v53  ;;  %395 = vst.msk [vmem:[#allocation2 + $0xa0] sm:$0xff] %vm339_vm0, %v363_v63  ;;  %v691_v14 = vld [vmem:[#allocation2 + $0x48] sm:$0xff]  ;;  %v692_v15 = vld [vmem:[#allocation2 + $0x50] sm:$0xff]  ;;  %v327_v20 = vld [vmem:[%s9696_s30 + $0xa0] sm:$0xff]  ;;  %v718_v23 = vpack.c.bf16 %v690_v13, %v689_v12  ;;  %v364_v24 = vmax.f32 %v325_v16, 0.0  ;;  %v365_v25 = vmax.f32 %v326_v17, 0.0 }
  0x21   : > { %8281 = vmatpush3.bf16.msra.mxu0 %v995_v54  ;;  %8252 = vmatprep.mubr.msk.bf16.mxu0 %vm339_vm0, %v717_v11  ;;  %v9804_v21 = vld [vmem:[%s12204_s7 + $0x88] sm:$0xff]  ;;  %v9809_v22 = vld [vmem:[%s12204_s7 + $0x80] sm:$0xff]  ;;  %v366_v27 = vmax.f32 %v327_v20, 0.0  ;;  %v719_v28 = vpack.c.bf16 %v692_v15, %v691_v14  ;;  %v329_v32 = vld [vmem:[%s9696_s30 + $0xb0] sm:$0xff]  ;;  %3613 = vst.msk [vmem:[#allocation3 + $0x120] sm:$0xff] %vm3608_vm2, %v9575_v3 }
  0x22   : > { %v328_v26 = vld [vmem:[%s9696_s30 + $0xa8] sm:$0xff]  ;;  %396 = vst.msk [vmem:[#allocation2 + $0xa8] sm:$0xff] %vm339_vm0, %v364_v24  ;;  %397 = vst.msk [vmem:[#allocation2 + $0xb0] sm:$0xff] %vm339_vm0, %v365_v25  ;;  %v330_v33 = vld [vmem:[%s9696_s30 + $0xb8] sm:$0xff]  ;;  %v368_v37 = vmax.f32 %v329_v32, 0.0 }
  0x23   : > { %531 = vperm.xlu1 %9533, %v9733_v29   ;;  %526 = vperm.xlu0 %9532, %v9738_v30   ;;  %v367_v31 = vmax.f32 %v328_v26, 0.0  ;;  %398 = vst.msk [vmem:[#allocation2 + $0xb8] sm:$0xff] %vm339_vm0, %v366_v27  ;;  %v9823_v34 = vld [vmem:[%s12204_s7 + $0x98] sm:$0xff]  ;;  %v9828_v35 = vld [vmem:[%s12204_s7 + $0x90] sm:$0xff]  ;;  %v369_v38 = vmax.f32 %v330_v33, 0.0  ;;  %v694_v39 = vld [vmem:[#allocation2 + $0x60] sm:$0xff] }
  0x24   : > { %v693_v36 = vld [vmem:[#allocation2 + $0x58] sm:$0xff]  ;;  %v331_v40 = vld [vmem:[%s9696_s30 + $0xc0] sm:$0xff]  ;;  %v332_v41 = vld [vmem:[%s9696_s30 + $0xc8] sm:$0xff]  ;;  %400 = vst.msk [vmem:[#allocation2 + $0xc8] sm:$0xff] %vm339_vm0, %v368_v37 }
  0x25   : > { %399 = vst.msk [vmem:[#allocation2 + $0xc0] sm:$0xff] %vm339_vm0, %v367_v31  ;;  %v695_v42 = vld [vmem:[#allocation2 + $0x68] sm:$0xff]  ;;  %v696_v43 = vld [vmem:[#allocation2 + $0x70] sm:$0xff]  ;;  %401 = vst.msk [vmem:[#allocation2 + $0xd0] sm:$0xff] %vm339_vm0, %v369_v38  ;;  %v370_v44 = vmax.f32 %v331_v40, 0.0  ;;  %v371_v45 = vmax.f32 %v332_v41, 0.0  ;;  %v720_v51 = vpack.c.bf16 %v694_v39, %v693_v36 }
  0x26   : > { %v9841_v48 = vld [vmem:[%s12204_s7 + $0xa8] sm:$0xff]  ;;  %v9846_v49 = vld [vmem:[%s12204_s7 + $0xa0] sm:$0xff]  ;;  %v333_v50 = vld [vmem:[%s9696_s30 + $0xd0] sm:$0xff]  ;;  %v721_v56 = vpack.c.bf16 %v696_v43, %v695_v42  ;;  %3614 = vst.msk [vmem:[#allocation3 + $0x128] sm:$0xff] %vm3608_vm2, %v9575_v3 }
  0x27   : > { %541 = vperm.xlu1 %9533, %v9761_v46   ;;  %536 = vperm.xlu0 %9532, %v9766_v47   ;;  %402 = vst.msk [vmem:[#allocation2 + $0xd8] sm:$0xff] %vm339_vm0, %v370_v44  ;;  %403 = vst.msk [vmem:[#allocation2 + $0xe0] sm:$0xff] %vm339_vm0, %v371_v45  ;;  %v334_v52 = vld [vmem:[%s9696_s30 + $0xd8] sm:$0xff]  ;;  %v372_v53 = vmax.f32 %v333_v50, 0.0  ;;  %v335_v54 = vld [vmem:[%s9696_s30 + $0xe0] sm:$0xff] }
  0x28   : > { %8253 = vmatmul.mubr.msk.bf16.gmra.mrb[4].mxu0 %vm339_vm0, %v718_v23  ;;  %v336_v55 = vld [vmem:[%s9696_s30 + $0xe8] sm:$0xff]  ;;  %v373_v57 = vmax.f32 %v334_v52, 0.0  ;;  %v374_v58 = vmax.f32 %v335_v54, 0.0  ;;  %v9863_v60 = vld [vmem:[%s12204_s7 + $0xb8] sm:$0xff]  ;;  %v9868_v61 = vld [vmem:[%s12204_s7 + $0xb0] sm:$0xff] }
  0x29   : > { %8256 = vmatprep.mubr.msk.bf16.mxu0 %vm339_vm0, %v719_v28  ;;  %v375_v59 = vmax.f32 %v336_v55, 0.0  ;;  %404 = vst.msk [vmem:[#allocation2 + $0xe8] sm:$0xff] %vm339_vm0, %v372_v53  ;;  %v9874_v62 = vld [vmem:[%s12198_s1 + $0x4] sm:$0x3]  ;;  %v697_v63 = vld [vmem:[#allocation2 + $0x78] sm:$0xff]  ;;  %v699_v12 = vld [vmem:[#allocation2 + $0x88] sm:$0xff] }
  0x2a   : > { %405 = vst.msk [vmem:[#allocation2 + $0xf0] sm:$0xff] %vm339_vm0, %v373_v57  ;;  %406 = vst.msk [vmem:[#allocation2 + $0xf8] sm:$0xff] %vm339_vm0, %v374_v58  ;;  %v698_v11 = vld [vmem:[#allocation2 + $0x80] sm:$0xff]  ;;  %9504 = vmatprep.subr.msk.bf16.mxu0 %vm781_vm1, %v9874_v62  ;;  %v700_v13 = vld [vmem:[#allocation2 + $0x90] sm:$0xff] }
  0x2b   : > { %551 = vperm.xlu1 %9533, %v9783_v2   ;;  %546 = vperm.xlu0 %9532, %v9788_v10   ;;  %407 = vst.msk [vmem:[#allocation2 + $0x100] sm:$0xff] %vm339_vm0, %v375_v59  ;;  %v467_v14 = vld [vmem:[%s12204_s7 + $0xc8] sm:$0xff]  ;;  %v466_v15 = vld [vmem:[%s12204_s7 + $0xc0] sm:$0xff]  ;;  %v722_v16 = vpack.c.bf16 %v698_v11, %v697_v63  ;;  %v723_v17 = vpack.c.bf16 %v700_v13, %v699_v12  ;;  %v469_v20 = vld [vmem:[%s12204_s7 + $0xd8] sm:$0xff] }
  0x2c   : > { %v468_v23 = vld [vmem:[%s12204_s7 + $0xd0] sm:$0xff]  ;;  %v701_v24 = vld [vmem:[#allocation2 + $0x98] sm:$0xff]  ;;  %v702_v25 = vld [vmem:[#allocation2 + $0xa0] sm:$0xff] }
  0x2d   : > { %v703_v26 = vld [vmem:[#allocation2 + $0xa8] sm:$0xff]  ;;  %v704_v27 = vld [vmem:[#allocation2 + $0xb0] sm:$0xff]  ;;  %v470_v33 = vld [vmem:[%s12204_s7 + $0xe0] sm:$0xff]  ;;  %v724_v36 = vpack.c.bf16 %v702_v25, %v701_v24 }
  0x2e   : > { %v337_v28 = vld [vmem:[%s9696_s30 + $0xf0] sm:$0xff]  ;;  %v471_v32 = vld [vmem:[%s12204_s7 + $0xe8] sm:$0xff]  ;;  %v338_v37 = vld [vmem:[%s9696_s30 + $0xf8] sm:$0xff]  ;;  %v725_v38 = vpack.c.bf16 %v704_v27, %v703_v26 }
  0x2f   : > { %561 = vperm.xlu1 %9533, %v9804_v21   ;;  %556 = vperm.xlu0 %9532, %v9809_v22   ;;  %v376_v31 = vmax.f32 %v337_v28, 0.0  ;;  %v377_v39 = vmax.f32 %v338_v37, 0.0  ;;  %v473_v40 = vld [vmem:[%s12204_s7 + $0xf8] sm:$0xff]  ;;  %v472_v41 = vld [vmem:[%s12204_s7 + $0xf0] sm:$0xff]  ;;  %v706_v43 = vld [vmem:[#allocation2 + $0xc0] sm:$0xff] }
  0x30   : > { %8257 = vmatmul.mubr.msk.bf16.gmra.mrb[8].mxu0 %vm339_vm0, %v720_v51  ;;  %v705_v42 = vld [vmem:[#allocation2 + $0xb8] sm:$0xff]  ;;  %v707_v44 = vld [vmem:[#allocation2 + $0xc8] sm:$0xff]  ;;  %v708_v45 = vld [vmem:[#allocation2 + $0xd0] sm:$0xff] }
  0x31   : > { %8260 = vmatprep.mubr.msk.bf16.mxu0 %vm339_vm0, %v721_v56  ;;  %408 = vst.msk [vmem:[#allocation2 + $0x108] sm:$0xff] %vm339_vm0, %v376_v31  ;;  %409 = vst.msk [vmem:[#allocation2 + $0x110] sm:$0xff] %vm339_vm0, %v377_v39  ;;  %v7566_v50 = vld [vmem:[%s12204_s7 + $0x208] sm:$0xff]  ;;  %v7565_v51 = vld [vmem:[%s12204_s7 + $0x200] sm:$0xff]  ;;  %v726_v52 = vpack.c.bf16 %v706_v43, %v705_v42  ;;  %v727_v53 = vpack.c.bf16 %v708_v45, %v707_v44 }
  0x32   : > { %v7568_v54 = vld [vmem:[%s12204_s7 + $0x218] sm:$0xff]  ;;  %v7567_v55 = vld [vmem:[%s12204_s7 + $0x210] sm:$0xff]  ;;  %v710_v57 = vld [vmem:[#allocation2 + $0xe0] sm:$0xff] }
  0x33   : > { %571 = vperm.xlu1 %9533, %v9823_v34   ;;  %566 = vperm.xlu0 %9532, %v9828_v35   ;;  %v709_v56 = vld [vmem:[#allocation2 + $0xd8] sm:$0xff]  ;;  %v711_v58 = vld [vmem:[#allocation2 + $0xe8] sm:$0xff]  ;;  %v712_v59 = vld [vmem:[#allocation2 + $0xf0] sm:$0xff] }
  0x34   : > { %v7570_v63 = vld [vmem:[%s12204_s7 + $0x228] sm:$0xff]  ;;  %v7569_v11 = vld [vmem:[%s12204_s7 + $0x220] sm:$0xff]  ;;  %v728_v12 = vpack.c.bf16 %v710_v57, %v709_v56  ;;  %v729_v13 = vpack.c.bf16 %v712_v59, %v711_v58  ;;  %v7576_v25 = vld [vmem:[%s12204_s7 + $0x258] sm:$0xff] }
  0x35   : > { %v7575_v26 = vld [vmem:[%s12204_s7 + $0x250] sm:$0xff]  ;;  %v7578_v27 = vld [vmem:[%s12204_s7 + $0x268] sm:$0xff]  ;;  %v7577_v28 = vld [vmem:[%s12204_s7 + $0x260] sm:$0xff] }
  0x36   : > { %v7580_v31 = vld [vmem:[%s12204_s7 + $0x278] sm:$0xff]  ;;  %v7586_v39 = vld [vmem:[%s12204_s7 + $0x2a8] sm:$0xff]  ;;  %v7587_v42 = vld [vmem:[%s12204_s7 + $0x2b0] sm:$0xff] }
  0x37   : > { %581 = vperm.xlu1 %9533, %v9841_v48   ;;  %576 = vperm.xlu0 %9532, %v9846_v49   ;;  %v7584_v37 = vld [vmem:[%s12204_s7 + $0x298] sm:$0xff]  ;;  %v7590_v43 = vld [vmem:[%s12204_s7 + $0x2c8] sm:$0xff]  ;;  %v7589_v44 = vld [vmem:[%s12204_s7 + $0x2c0] sm:$0xff] }
  0x38   : > { %8261 = vmatmul.mubr.msk.bf16.gmra.mrb[12].mxu0 %vm339_vm0, %v722_v16  ;;  %v713_v16 = vld [vmem:[#allocation2 + $0xf8] sm:$0xff]  ;;  %v1679_v57 = vld [vmem:[#allocation2 + $0x27] sm:$0xff] }
  0x39   : > { %8264 = vmatprep.mubr.msk.bf16.mxu0 %vm339_vm0, %v723_v17  ;;  %v714_v17 = vld [vmem:[#allocation2 + $0x100] sm:$0xff]  ;;  %v7592_v45 = vld [vmem:[%s12204_s7 + $0x2d8] sm:$0xff] }
  0x3a   : > { %v730_v24 = vpack.c.bf16 %v714_v17, %v713_v16  ;;  %v412_v56 = vld [vmem:[#allocation2 + $0x17] sm:$0xff] }
  0x3b   : > { %591 = vperm.xlu1 %9533, %v9863_v60   ;;  %586 = vperm.xlu0 %9532, %v9868_v61   ;;  %v2625_v59 = vld [vmem:[#allocation2 + $0x37] sm:$0xff] }
  0x3f   : > { %601 = vperm.xlu1 %9533, %v467_v14   ;;  %596 = vperm.xlu0 %9532, %v466_v15   ;;  %v7572_v14 = vld [vmem:[%s12204_s7 + $0x238] sm:$0xff]  ;;  %v7571_v15 = vld [vmem:[%s12204_s7 + $0x230] sm:$0xff] }
  0x40   : > { %8265 = vmatmul.mubr.msk.bf16.gmra.mrb[16].mxu0 %vm339_vm0, %v724_v36  ;;  %v7581_v36 = vld [vmem:[%s12204_s7 + $0x280] sm:$0xff] }
  0x41   : > { %8268 = vmatprep.mubr.msk.bf16.mxu0 %vm339_vm0, %v725_v38  ;;  %v7583_v38 = vld [vmem:[%s12204_s7 + $0x290] sm:$0xff] }
  0x43   : > { %611 = vperm.xlu1 %9533, %v469_v20   ;;  %606 = vperm.xlu0 %9532, %v468_v23   ;;  %v7574_v20 = vld [vmem:[%s12204_s7 + $0x248] sm:$0xff]  ;;  %v7573_v23 = vld [vmem:[%s12204_s7 + $0x240] sm:$0xff] }
  0x47   : > { %621 = vperm.xlu1 %9533, %v471_v32   ;;  %616 = vperm.xlu0 %9532, %v470_v33   ;;  %v7579_v32 = vld [vmem:[%s12204_s7 + $0x270] sm:$0xff]  ;;  %v7582_v33 = vld [vmem:[%s12204_s7 + $0x288] sm:$0xff] }
  0x48   : > { %8269 = vmatmul.mubr.msk.bf16.gmra.mrb[20].mxu0 %vm339_vm0, %v726_v52  ;;  %v7593_v52 = vld [vmem:[%s12204_s7 + $0x2e0] sm:$0xff] }
  0x49   : > { %8272 = vmatprep.mubr.msk.bf16.mxu0 %vm339_vm0, %v727_v53  ;;  %v7596_v53 = vld [vmem:[%s12204_s7 + $0x2f8] sm:$0xff] }
  0x4b   : > { %631 = vperm.xlu1 %9533, %v473_v40   ;;  %626 = vperm.xlu0 %9532, %v472_v41   ;;  %v7585_v40 = vld [vmem:[%s12204_s7 + $0x2a0] sm:$0xff]  ;;  %v7588_v41 = vld [vmem:[%s12204_s7 + $0x2b8] sm:$0xff] }
  0x4f   : > { %1230 = vperm.xlu1 %9533, %v7566_v50   ;;  %1225 = vperm.xlu0 %9532, %v7565_v51   ;;  %v7591_v50 = vld [vmem:[%s12204_s7 + $0x2d0] sm:$0xff]  ;;  %v7594_v51 = vld [vmem:[%s12204_s7 + $0x2e8] sm:$0xff] }
  0x50   : > { %8273 = vmatmul.mubr.msk.bf16.gmra.mrb[24].mxu0 %vm339_vm0, %v728_v12  ;;  %v1680_v12 = vld [vmem:[#allocation2 + $0x2f] sm:$0xff] }
  0x51   : > { %8276 = vmatprep.mubr.msk.bf16.mxu0 %vm339_vm0, %v729_v13  ;;  %v2626_v13 = vld [vmem:[#allocation2 + $0x3f] sm:$0xff] }
  0x53   : > { %1240 = vperm.xlu1 %9533, %v7568_v54   ;;  %1235 = vperm.xlu0 %9532, %v7567_v55   ;;  %v7595_v54 = vld [vmem:[%s12204_s7 + $0x2f0] sm:$0xff] }
  0x57   : > { %1250 = vperm.xlu1 %9533, %v7570_v63   ;;  %1245 = vperm.xlu0 %9532, %v7569_v11   ;;  %v410_v63 = vld [vmem:[#allocation2 + $0x7] sm:$0xff]  ;;  %v413_v11 = vld [vmem:[#allocation2 + $0x1f] sm:$0xff] }
  0x58   : > { %8277 = vmatmul.mubr.msk.bf16.gmra.mrb[28].mxu0 %vm339_vm0, %v730_v24 }
  0x5b   : > { %1260 = vperm.xlu1 %9533, %v7572_v14   ;;  %1255 = vperm.xlu0 %9532, %v7571_v15   ;;  %v411_v14 = vld [vmem:[#allocation2 + $0xf] sm:$0xff] }
  0x5f   : > { %1270 = vperm.xlu1 %9533, %v7574_v20   ;;  %1265 = vperm.xlu0 %9532, %v7573_v23  }
  0x63   : > { %1280 = vperm.xlu1 %9533, %v7576_v25   ;;  %1275 = vperm.xlu0 %9532, %v7575_v26  }
  0x67   : > { %1290 = vperm.xlu1 %9533, %v7578_v27   ;;  %1285 = vperm.xlu0 %9532, %v7577_v28  }
  0x6b   : > { %1300 = vperm.xlu1 %9533, %v7580_v31   ;;  %1295 = vperm.xlu0 %9532, %v7579_v32   ;;  %v2628_v32 = vld [vmem:[#allocation2 + $0x4f] sm:$0xff] }
  0x6f   : > { %1310 = vperm.xlu1 %9533, %v7582_v33   ;;  %1305 = vperm.xlu0 %9532, %v7581_v36  }
  0x73   : > { %1320 = vperm.xlu1 %9533, %v7584_v37   ;;  %1315 = vperm.xlu0 %9532, %v7583_v38   ;;  %v2627_v38 = vld [vmem:[#allocation2 + $0x47] sm:$0xff] }
  0x77   : > { %1330 = vperm.xlu1 %9533, %v7586_v39   ;;  %1325 = vperm.xlu0 %9532, %v7585_v40  }
  0x7b   : > { %1340 = vperm.xlu1 %9533, %v7588_v41   ;;  %1335 = vperm.xlu0 %9532, %v7587_v42   ;;  %v1482_v41 = vsel %vm781_vm1, %v9874_v62, 0  ;;  %v2630_v62 = vld [vmem:[#allocation2 + $0x5f] sm:$0xff] }
  0x7f   : > { %1350 = vperm.xlu1 %9533, %v7590_v43   ;;  %1345 = vperm.xlu0 %9532, %v7589_v44  }
  0x83   : > { %1360 = vperm.xlu1 %9533, %v7592_v45   ;;  %1355 = vperm.xlu0 %9532, %v7591_v50  }
  0x87   : > { %1370 = vperm.xlu1 %9533, %v7594_v51   ;;  %1365 = vperm.xlu0 %9532, %v7593_v52  }
  0x8b   : > { %1380 = vperm.xlu1 %9533, %v7596_v53   ;;  %1375 = vperm.xlu0 %9532, %v7595_v54   ;;  %v2629_v53 = vld [vmem:[#allocation2 + $0x57] sm:$0xff] }
  0x8e   : > { %v487_v55 = vpop.permute.xlu1 %486  ;;  %v477_v58 = vpop.permute.xlu0 %476 }
  0x8f   : > { %3750 = vperm.xlu1 %9533, %v9661_v5   ;;  %3745 = vperm.xlu0 %9532, %v9637_v1   ;;  %v636_v15 = vmul.f32 %v487_v55, %v412_v56  ;;  %v10028_v16 = vmul.f32 %v1679_v57, %v487_v55  ;;  %v10030_v3 = vmul.f32 %v2625_v59, %v487_v55 }
  0x90   : > { %v634_v17 = vmul.f32 %v477_v58, %v410_v63  ;;  %v10037_v1 = vmul.f32 %v477_v58, %v412_v56  ;;  %v10039_v27 = vmul.f32 %v1679_v57, %v477_v58 }
  0x91   : > { %12438 = vst [vmem:[#allocation4_spill] sm:$0xff] %v10030_v3 }
  0x92   : > { %v492_v20 = vpop.permute.xlu1 %491  ;;  %v482_v23 = vpop.permute.xlu0 %481  ;;  %12440 = vst [vmem:[#allocation6_spill] sm:$0xff] %v10039_v27  ;;  %v3254_v27 = vld [vmem:[#allocation2 + $0x81] sm:$0xff] }
  0x93   : > { %v637_v24 = vmul.f32 %v492_v20, %v413_v11  ;;  %v10032_v25 = vmul.f32 %v1680_v12, %v492_v20  ;;  %v10034_v26 = vmul.f32 %v2626_v13, %v492_v20  ;;  %v635_v5 = vmul.f32 %v482_v23, %v411_v14  ;;  %3760 = vperm.xlu1 %9533, %v9656_v4   ;;  %v2631_v20 = vld [vmem:[#allocation2 + $0x67] sm:$0xff] }
  0x94   : > { %v10041_v28 = vmul.f32 %v482_v23, %v413_v11  ;;  %v10043_v31 = vmul.f32 %v1680_v12, %v482_v23  ;;  %3755 = vperm.xlu0 %9532, %v9632_v0  }
  0x95   : > { %12439 = vst [vmem:[#allocation5_spill] sm:$0xff] %v10034_v26  ;;  %v667_v33 = vpack.c.bf16 %v637_v24, %v636_v15  ;;  %v666_v4 = vpack.c.bf16 %v635_v5, %v634_v17  ;;  %v2632_v17 = vld [vmem:[#allocation2 + $0x6f] sm:$0xff] }
  0x96   : > { %12441 = vst [vmem:[#allocation7_spill] sm:$0xff] %v10043_v31  ;;  %v502_v39 = vpop.permute.xlu1 %501  ;;  %v497_v40 = vpop.permute.xlu0 %496 }
  0x97   : > { %v639_v43 = vmul.f32 %v1680_v12, %v502_v39  ;;  %v10056_v44 = vmul.f32 %v2626_v13, %v502_v39  ;;  %v10058_v45 = vmul.f32 %v2628_v32, %v502_v39  ;;  %v638_v50 = vmul.f32 %v1679_v57, %v497_v40  ;;  %3770 = vperm.xlu1 %9533, %v9670_v6   ;;  %v10071_v6 = vld [vmem:[%s12198_s1 + $0x6] sm:$0x3] }
  0x98   : > { %v10061_v51 = vmul.f32 %v2625_v59, %v497_v40  ;;  %v10063_v52 = vmul.f32 %v2627_v38, %v497_v40  ;;  %3765 = vperm.xlu0 %9532, %v9675_v7   ;;  %8282 = vmatprep.mubr.msk.bf16.mxu0 %vm339_vm0, %v666_v4 }
  0x99   : > { %12442 = vst [vmem:[#allocation8_spill] sm:$0xff] %v10058_v45  ;;  %8283 = vmatmul.mubr.msk.bf16.vlgmr.msra.gmra.mrb[0].mxu0 %vm339_vm0, %v667_v33  ;;  %v668_v54 = vpack.c.bf16 %v639_v43, %v638_v50  ;;  %v2633_v43 = vld [vmem:[#allocation2 + $0x77] sm:$0xff] }
  0x9a   : > { %12443 = vst [vmem:[#allocation9_spill] sm:$0xff] %v10063_v52  ;;  %8315 = vmatpush3.bf16.msra.mxu0 %v1482_v41  ;;  %v512_v55 = vpop.permute.xlu1 %511  ;;  %v507_v56 = vpop.permute.xlu0 %506  ;;  %v2634_v41 = vld [vmem:[#allocation2 + $0x7f] sm:$0xff] }
  0x9b   : > { %v641_v58 = vmul.f32 %v2626_v13, %v512_v55  ;;  %v10077_v63 = vmul.f32 %v2628_v32, %v512_v55  ;;  %v10079_v11 = vmul.f32 %v2630_v62, %v512_v55  ;;  %v640_v12 = vmul.f32 %v2625_v59, %v507_v56  ;;  %3780 = vperm.xlu1 %9533, %v9683_v8  }
  0x9c   : > { %v10082_v14 = vmul.f32 %v2627_v38, %v507_v56  ;;  %v10084_v15 = vmul.f32 %v2629_v53, %v507_v56  ;;  %3775 = vperm.xlu0 %9532, %v9688_v9   ;;  %8286 = vmatprep.mubr.msk.bf16.mxu0 %vm339_vm0, %v668_v54 }
  0x9d   : > { %12444 = vst [vmem:[#allocation10_spill] sm:$0xff] %v10079_v11  ;;  %v669_v23 = vpack.c.bf16 %v641_v58, %v640_v12  ;;  %9505 = vmatprep.subr.msk.bf16.mxu0 %vm781_vm1, %v10071_v6 }
  0x9e   : > { %12445 = vst [vmem:[#allocation11_spill] sm:$0xff] %v10084_v15  ;;  %v522_v13 = vpop.permute.xlu1 %521  ;;  %v517_v24 = vpop.permute.xlu0 %516 }
  0x9f   : > { %v643_v5 = vmul.f32 %v2628_v32, %v522_v13  ;;  %v10094_v33 = vmul.f32 %v2630_v62, %v522_v13  ;;  %v10096_v9 = vmul.f32 %v2632_v17, %v522_v13  ;;  %v642_v4 = vmul.f32 %v2627_v38, %v517_v24  ;;  %3790 = vperm.xlu1 %9533, %v9712_v18   ;;  %v2636_v13 = vld [vmem:[#allocation2 + $0x8f] sm:$0xff] }
  0xa0   : > { %v10099_v39 = vmul.f32 %v2629_v53, %v517_v24  ;;  %v10101_v40 = vmul.f32 %v2631_v20, %v517_v24  ;;  %3785 = vperm.xlu0 %9532, %v9717_v19   ;;  %v2635_v24 = vld [vmem:[#allocation2 + $0x87] sm:$0xff] }
  0xa1   : > { %12446 = vst [vmem:[#allocation12_spill] sm:$0xff] %v10096_v9  ;;  %8287 = vmatmul.mubr.msk.bf16.gmra.mrb[4].mxu0 %vm339_vm0, %v669_v23  ;;  %v670_v50 = vpack.c.bf16 %v643_v5, %v642_v4 }
  0xa2   : > { %12447 = vst [vmem:[#allocation13_spill] sm:$0xff] %v10101_v40  ;;  %v532_v54 = vpop.permute.xlu1 %531  ;;  %v527_v32 = vpop.permute.xlu0 %526 }
  0xa3   : > { %v645_v18 = vmul.f32 %v2630_v62, %v532_v54  ;;  %v10109_v56 = vmul.f32 %v2632_v17, %v532_v54  ;;  %v10111_v58 = vmul.f32 %v2634_v41, %v532_v54  ;;  %v644_v12 = vmul.f32 %v2629_v53, %v527_v32  ;;  %3800 = vperm.xlu1 %9533, %v9733_v29  }
  0xa4   : > { %v10114_v19 = vmul.f32 %v2631_v20, %v527_v32  ;;  %v10116_v23 = vmul.f32 %v2633_v43, %v527_v32  ;;  %3795 = vperm.xlu0 %9532, %v9738_v30   ;;  %8290 = vmatprep.mubr.msk.bf16.mxu0 %vm339_vm0, %v670_v50 }
  0xa5   : > { %12448 = vst [vmem:[#allocation14_spill] sm:$0xff] %v10111_v58  ;;  %v671_v5 = vpack.c.bf16 %v645_v18, %v644_v12  ;;  %v2638_v18 = vld [vmem:[#allocation2 + $0x9f] sm:$0xff]  ;;  %v2637_v12 = vld [vmem:[#allocation2 + $0x97] sm:$0xff] }
  0xa6   : > { %12449 = vst [vmem:[#allocation15_spill] sm:$0xff] %v10116_v23  ;;  %v542_v4 = vpop.permute.xlu1 %541  ;;  %v537_v62 = vpop.permute.xlu0 %536  ;;  %v1159_v23 = vld [vmem:[#allocation2 + $0x11] sm:$0xff]  ;;  %v2298_v58 = vld [vmem:[#allocation2 + $0x21] sm:$0xff] }
  0xa7   : > { %v647_v29 = vmul.f32 %v2632_v17, %v542_v4  ;;  %v10124_v38 = vmul.f32 %v2634_v41, %v542_v4  ;;  %v10126_v32 = vmul.f32 %v2636_v13, %v542_v4  ;;  %v646_v8 = vmul.f32 %v2631_v20, %v537_v62  ;;  %3810 = vperm.xlu1 %9533, %v9761_v46  }
  0xa8   : > { %v10129_v30 = vmul.f32 %v2633_v43, %v537_v62  ;;  %v10131_v50 = vmul.f32 %v2635_v24, %v537_v62  ;;  %3805 = vperm.xlu0 %9532, %v9766_v47  }
  0xa9   : > { %12450 = vst [vmem:[#allocation16_spill] sm:$0xff] %v10126_v32  ;;  %8291 = vmatmul.mubr.msk.bf16.gmra.mrb[8].mxu0 %vm339_vm0, %v671_v5  ;;  %v672_v7 = vpack.c.bf16 %v647_v29, %v646_v8  ;;  %v2640_v8 = vld [vmem:[#allocation2 + $0xaf] sm:$0xff]  ;;  %v2639_v29 = vld [vmem:[#allocation2 + $0xa7] sm:$0xff] }
  0xaa   : > { %12451 = vst [vmem:[#allocation17_spill] sm:$0xff] %v10131_v50  ;;  %v552_v53 = vpop.permute.xlu1 %551  ;;  %v547_v17 = vpop.permute.xlu0 %546 }
  0xab   : > { %v649_v46 = vmul.f32 %v2634_v41, %v552_v53  ;;  %v10139_v37 = vmul.f32 %v2636_v13, %v552_v53  ;;  %v10141_v62 = vmul.f32 %v2638_v18, %v552_v53  ;;  %v648_v0 = vmul.f32 %v2633_v43, %v547_v17  ;;  %3820 = vperm.xlu1 %9533, %v9783_v2  }
  0xac   : > { %v10144_v47 = vmul.f32 %v2635_v24, %v547_v17  ;;  %v10146_v5 = vmul.f32 %v2637_v12, %v547_v17  ;;  %3815 = vperm.xlu0 %9532, %v9788_v10   ;;  %8294 = vmatprep.mubr.msk.bf16.mxu0 %vm339_vm0, %v672_v7 }
  0xad   : > { %12452 = vst [vmem:[#allocation18_spill] sm:$0xff] %v10141_v62  ;;  %v673_v4 = vpack.c.bf16 %v649_v46, %v648_v0  ;;  %v2642_v0 = vld [vmem:[#allocation2 + $0xbf] sm:$0xff]  ;;  %v2641_v46 = vld [vmem:[#allocation2 + $0xb7] sm:$0xff] }
  0xae   : > { %12453 = vst [vmem:[#allocation19_spill] sm:$0xff] %v10146_v5  ;;  %v562_v20 = vpop.permute.xlu1 %561  ;;  %v557_v41 = vpop.permute.xlu0 %556 }
  0xaf   : > { %v651_v2 = vmul.f32 %v2636_v13, %v562_v20  ;;  %v10154_v54 = vmul.f32 %v2638_v18, %v562_v20  ;;  %v10156_v17 = vmul.f32 %v2640_v8, %v562_v20  ;;  %v650_v55 = vmul.f32 %v2635_v24, %v557_v41  ;;  %3830 = vperm.xlu1 %9533, %v9804_v21  }
  0xb0   : > { %v10159_v10 = vmul.f32 %v2637_v12, %v557_v41  ;;  %v10161_v7 = vmul.f32 %v2639_v29, %v557_v41  ;;  %3825 = vperm.xlu0 %9532, %v9809_v22  }
  0xb1   : > { %12454 = vst [vmem:[#allocation20_spill] sm:$0xff] %v10156_v17  ;;  %8295 = vmatmul.mubr.msk.bf16.gmra.mrb[12].mxu0 %vm339_vm0, %v673_v4  ;;  %v674_v53 = vpack.c.bf16 %v651_v2, %v650_v55  ;;  %v2644_v55 = vld [vmem:[#allocation2 + $0xcf] sm:$0xff]  ;;  %v2643_v2 = vld [vmem:[#allocation2 + $0xc7] sm:$0xff] }
  0xb2   : > { %12455 = vst [vmem:[#allocation21_spill] sm:$0xff] %v10161_v7  ;;  %v572_v43 = vpop.permute.xlu1 %571  ;;  %v567_v13 = vpop.permute.xlu0 %566 }
  0xb3   : > { %v653_v21 = vmul.f32 %v2638_v18, %v572_v43  ;;  %v10169_v59 = vmul.f32 %v2640_v8, %v572_v43  ;;  %v10171_v41 = vmul.f32 %v2642_v0, %v572_v43  ;;  %v652_v57 = vmul.f32 %v2637_v12, %v567_v13  ;;  %3840 = vperm.xlu1 %9533, %v9823_v34  }
  0xb4   : > { %v10174_v22 = vmul.f32 %v2639_v29, %v567_v13  ;;  %v10176_v4 = vmul.f32 %v2641_v46, %v567_v13  ;;  %3835 = vperm.xlu0 %9532, %v9828_v35   ;;  %8298 = vmatprep.mubr.msk.bf16.mxu0 %vm339_vm0, %v674_v53 }
  0xb5   : > { %12456 = vst [vmem:[#allocation22_spill] sm:$0xff] %v10171_v41  ;;  %v675_v20 = vpack.c.bf16 %v653_v21, %v652_v57  ;;  %v2646_v57 = vld [vmem:[#allocation2 + $0xdf] sm:$0xff]  ;;  %v2645_v21 = vld [vmem:[#allocation2 + $0xd7] sm:$0xff] }
  0xb6   : > { %12457 = vst [vmem:[#allocation23_spill] sm:$0xff] %v10176_v4  ;;  %v582_v24 = vpop.permute.xlu1 %581  ;;  %v577_v18 = vpop.permute.xlu0 %576 }
  0xb7   : > { %v655_v34 = vmul.f32 %v2640_v8, %v582_v24  ;;  %v10184_v36 = vmul.f32 %v2642_v0, %v582_v24  ;;  %v10186_v13 = vmul.f32 %v2644_v55, %v582_v24  ;;  %v654_v42 = vmul.f32 %v2639_v29, %v577_v18  ;;  %3850 = vperm.xlu1 %9533, %v9841_v48  }
  0xb8   : > { %v10189_v35 = vmul.f32 %v2641_v46, %v577_v18  ;;  %v10191_v53 = vmul.f32 %v2643_v2, %v577_v18  ;;  %3845 = vperm.xlu0 %9532, %v9846_v49  }
  0xb9   : > { %12458 = vst [vmem:[#allocation24_spill] sm:$0xff] %v10186_v13  ;;  %8299 = vmatmul.mubr.msk.bf16.gmra.mrb[16].mxu0 %vm339_vm0, %v675_v20  ;;  %v676_v43 = vpack.c.bf16 %v655_v34, %v654_v42  ;;  %v2648_v42 = vld [vmem:[#allocation2 + $0xef] sm:$0xff]  ;;  %v2647_v34 = vld [vmem:[#allocation2 + $0xe7] sm:$0xff] }
  0xba   : > { %12459 = vst [vmem:[#allocation25_spill] sm:$0xff] %v10191_v53  ;;  %v592_v12 = vpop.permute.xlu1 %591  ;;  %v587_v8 = vpop.permute.xlu0 %586 }
  0xbb   : > { %v657_v48 = vmul.f32 %v2642_v0, %v592_v12  ;;  %v10199_v4 = vmul.f32 %v2644_v55, %v592_v12  ;;  %v10201_v18 = vmul.f32 %v2646_v57, %v592_v12  ;;  %v656_v41 = vmul.f32 %v2641_v46, %v587_v8  ;;  %3860 = vperm.xlu1 %9533, %v9863_v60   ;;  %v3736_v0 = vld [vmem:[%s12204_s7 + $0xc8] sm:$0xff]  ;;  %v3735_v46 = vld [vmem:[%s12204_s7 + $0xc0] sm:$0xff] }
  0xbc   : > { %v10204_v49 = vmul.f32 %v2643_v2, %v587_v8  ;;  %v10206_v20 = vmul.f32 %v2645_v21, %v587_v8  ;;  %3855 = vperm.xlu0 %9532, %v9868_v61   ;;  %8302 = vmatprep.mubr.msk.bf16.mxu0 %vm339_vm0, %v676_v43  ;;  %v2649_v61 = vld [vmem:[#allocation2 + $0xf7] sm:$0xff] }
  0xbd   : > { %12460 = vst [vmem:[#allocation26_spill] sm:$0xff] %v10201_v18  ;;  %v677_v12 = vpack.c.bf16 %v657_v48, %v656_v41  ;;  %v2650_v41 = vld [vmem:[#allocation2 + $0xff] sm:$0xff] }
  0xbe   : > { %12461 = vst [vmem:[#allocation27_spill] sm:$0xff] %v10206_v20  ;;  %v602_v60 = vpop.permute.xlu1 %601  ;;  %v597_v29 = vpop.permute.xlu0 %596  ;;  %v3738_v48 = vld [vmem:[%s12204_s7 + $0xd8] sm:$0xff] }
  0xbf   : > { %v659_v43 = vmul.f32 %v2644_v55, %v602_v60  ;;  %v10220_v24 = vmul.f32 %v2646_v57, %v602_v60  ;;  %v10222_v53 = vmul.f32 %v2648_v42, %v602_v60  ;;  %v658_v13 = vmul.f32 %v2643_v2, %v597_v29  ;;  %3870 = vperm.xlu1 %9533, %v3736_v0   ;;  %v3737_v55 = vld [vmem:[%s12204_s7 + $0xd0] sm:$0xff] }
  0xc0   : > { %v10224_v7 = vmul.f32 %v2645_v21, %v597_v29  ;;  %v10226_v17 = vmul.f32 %v2647_v34, %v597_v29  ;;  %3865 = vperm.xlu0 %9532, %v3735_v46   ;;  %v2651_v46 = vld [vmem:[#allocation2 + $0x107] sm:$0xff] }
  0xc1   : > { %12462 = vst [vmem:[#allocation28_spill] sm:$0xff] %v10222_v53  ;;  %8303 = vmatmul.mubr.msk.bf16.gmra.mrb[20].mxu0 %vm339_vm0, %v677_v12  ;;  %v678_v60 = vpack.c.bf16 %v659_v43, %v658_v13  ;;  %v2652_v13 = vld [vmem:[#allocation2 + $0x10f] sm:$0xff] }
  0xc2   : > { %12463 = vst [vmem:[#allocation29_spill] sm:$0xff] %v10226_v17  ;;  %v612_v2 = vpop.permute.xlu1 %611  ;;  %v607_v0 = vpop.permute.xlu0 %606  ;;  %v3740_v43 = vld [vmem:[%s12204_s7 + $0xe8] sm:$0xff] }
  0xc3   : > { %v661_v8 = vmul.f32 %v2646_v57, %v612_v2  ;;  %v10239_v20 = vmul.f32 %v2648_v42, %v612_v2  ;;  %v10241_v18 = vmul.f32 %v2650_v41, %v612_v2  ;;  %v660_v12 = vmul.f32 %v2645_v21, %v607_v0  ;;  %3880 = vperm.xlu1 %9533, %v3738_v48   ;;  %v3739_v57 = vld [vmem:[%s12204_s7 + $0xe0] sm:$0xff] }
  0xc4   : > { %v10243_v5 = vmul.f32 %v2647_v34, %v607_v0  ;;  %v10245_v62 = vmul.f32 %v2649_v61, %v607_v0  ;;  %3875 = vperm.xlu0 %9532, %v3737_v55   ;;  %8306 = vmatprep.mubr.msk.bf16.mxu0 %vm339_vm0, %v678_v60  ;;  %v2653_v55 = vld [vmem:[#allocation2 + $0x117] sm:$0xff] }
  0xc5   : > { %12464 = vst [vmem:[#allocation30_spill] sm:$0xff] %v10241_v18  ;;  %v679_v2 = vpack.c.bf16 %v661_v8, %v660_v12  ;;  %v2654_v8 = vld [vmem:[#allocation2 + $0x11f] sm:$0xff] }
  0xc6   : > { %12465 = vst [vmem:[#allocation31_spill] sm:$0xff] %v10245_v62  ;;  %v622_v21 = vpop.permute.xlu1 %621  ;;  %v617_v48 = vpop.permute.xlu0 %616  ;;  %v3742_v12 = vld [vmem:[%s12204_s7 + $0xf8] sm:$0xff] }
  0xc7   : > { %v663_v60 = vmul.f32 %v2648_v42, %v622_v21  ;;  %v10258_v29 = vmul.f32 %v2650_v41, %v622_v21  ;;  %v10260_v17 = vmul.f32 %v2652_v13, %v622_v21  ;;  %v662_v53 = vmul.f32 %v2647_v34, %v617_v48  ;;  %3890 = vperm.xlu1 %9533, %v3740_v43   ;;  %v3741_v42 = vld [vmem:[%s12204_s7 + $0xf0] sm:$0xff] }
  0xc8   : > { %v10262_v50 = vmul.f32 %v2649_v61, %v617_v48  ;;  %v10264_v32 = vmul.f32 %v2651_v46, %v617_v48  ;;  %3885 = vperm.xlu0 %9532, %v3739_v57   ;;  %v1158_v48 = vld [vmem:[#allocation2 + $0x9] sm:$0xff] }
  0xc9   : > { %12466 = vst [vmem:[#allocation32_spill] sm:$0xff] %v10260_v17  ;;  %8307 = vmatmul.mubr.msk.bf16.gmra.mrb[24].mxu0 %vm339_vm0, %v679_v2  ;;  %v680_v21 = vpack.c.bf16 %v663_v60, %v662_v53  ;;  %v3244_v60 = vld [vmem:[#allocation2 + $0x31] sm:$0xff]  ;;  %v3246_v17 = vld [vmem:[#allocation2 + $0x41] sm:$0xff] }
  0xca   : > { %12467 = vst [vmem:[#allocation33_spill] sm:$0xff] %v10264_v32  ;;  %v632_v34 = vpop.permute.xlu1 %631  ;;  %v627_v43 = vpop.permute.xlu0 %626 }
  0xcb   : > { %v665_v0 = vmul.f32 %v2650_v41, %v632_v34  ;;  %v10277_v62 = vmul.f32 %v2652_v13, %v632_v34  ;;  %v10279_v18 = vmul.f32 %v2654_v8, %v632_v34  ;;  %v664_v2 = vmul.f32 %v2649_v61, %v627_v43  ;;  %3900 = vperm.xlu1 %9533, %v3742_v12   ;;  %v7751_v41 = vld [vmem:[%s12204_s7 + $0x208] sm:$0xff]  ;;  %v2297_v8 = vld [vmem:[#allocation2 + $0x19] sm:$0xff] }
  0xcc   : > { %v10281_v40 = vmul.f32 %v2651_v46, %v627_v43  ;;  %v10283_v53 = vmul.f32 %v2653_v55, %v627_v43  ;;  %3895 = vperm.xlu0 %9532, %v3741_v42   ;;  %8310 = vmatprep.mubr.msk.bf16.mxu0 %vm339_vm0, %v680_v21  ;;  %v3243_v34 = vld [vmem:[#allocation2 + $0x29] sm:$0xff]  ;;  %v7750_v61 = vld [vmem:[%s12204_s7 + $0x200] sm:$0xff]  ;;  %v7753_v46 = vld [vmem:[%s12204_s7 + $0x218] sm:$0xff] }
  0xcd   : > { %12468 = vst [vmem:[#allocation34_spill] sm:$0xff] %v10279_v18  ;;  %v681_v13 = vpack.c.bf16 %v665_v0, %v664_v2 }
  0xce   : > { %12469 = vst [vmem:[#allocation35_spill] sm:$0xff] %v10283_v53  ;;  %v1231_v12 = vpop.permute.xlu1 %1230  ;;  %v1226_v42 = vpop.permute.xlu0 %1225 }
  0xcf   : > { %v1384_v21 = vmul.f32 %v1231_v12, %v1159_v23  ;;  %v10296_v43 = vmul.f32 %v2298_v58, %v1231_v12  ;;  %v10298_v57 = vmul.f32 %v3244_v60, %v1231_v12  ;;  %v1383_v0 = vmul.f32 %v1226_v42, %v1158_v48  ;;  %4498 = vperm.xlu1 %9533, %v7751_v41   ;;  %v3245_v23 = vld [vmem:[#allocation2 + $0x39] sm:$0xff]  ;;  %v7752_v12 = vld [vmem:[%s12204_s7 + $0x210] sm:$0xff]  ;;  %v7755_v41 = vld [vmem:[%s12204_s7 + $0x228] sm:$0xff] }
  0xd0   : > { %v10300_v2 = vmul.f32 %v2297_v8, %v1226_v42  ;;  %v10302_v32 = vmul.f32 %v3243_v34, %v1226_v42  ;;  %4493 = vperm.xlu0 %9532, %v7750_v61   ;;  %v3248_v48 = vld [vmem:[#allocation2 + $0x51] sm:$0xff] }
  0xd1   : > { %12470 = vst [vmem:[#allocation36_spill] sm:$0xff] %v10298_v57  ;;  %v1415_v55 = vpack.c.bf16 %v1384_v21, %v1383_v0  ;;  %8311 = vmatmul.mubr.msk.bf16.gmra.mrb[28].mxu0 %vm339_vm0, %v681_v13 }
  0xd2   : > { %12471 = vst [vmem:[#allocation37_spill] sm:$0xff] %v10302_v32  ;;  %v1241_v61 = vpop.permute.xlu1 %1240  ;;  %v1236_v42 = vpop.permute.xlu0 %1235 }
  0xd3   : > { %v1386_v53 = vmul.f32 %v2298_v58, %v1241_v61  ;;  %v10315_v18 = vmul.f32 %v3244_v60, %v1241_v61  ;;  %v10317_v9 = vmul.f32 %v3246_v17, %v1241_v61  ;;  %v1385_v21 = vmul.f32 %v2297_v8, %v1236_v42  ;;  %4508 = vperm.xlu1 %9533, %v7753_v46   ;;  %v3247_v58 = vld [vmem:[#allocation2 + $0x49] sm:$0xff]  ;;  %v7754_v61 = vld [vmem:[%s12204_s7 + $0x220] sm:$0xff]  ;;  %v7757_v46 = vld [vmem:[%s12204_s7 + $0x238] sm:$0xff] }
  0xd4   : > { %v10319_v13 = vmul.f32 %v3243_v34, %v1236_v42  ;;  %v10321_v0 = vmul.f32 %v3245_v23, %v1236_v42  ;;  %4503 = vperm.xlu0 %9532, %v7752_v12   ;;  %8316 = vmatprep.mubr.msk.bf16.mxu0 %vm339_vm0, %v1415_v55  ;;  %v1808_v55 = vsel %vm781_vm1, %v10071_v6, 0  ;;  %v3250_v8 = vld [vmem:[#allocation2 + $0x61] sm:$0xff]  ;;  %v3249_v6 = vld [vmem:[#allocation2 + $0x59] sm:$0xff] }
  0xd5   : > { %12472 = vst [vmem:[#allocation38_spill] sm:$0xff] %v10317_v9  ;;  %v1416_v32 = vpack.c.bf16 %v1386_v53, %v1385_v21 }
  0xd6   : > { %12473 = vst [vmem:[#allocation39_spill] sm:$0xff] %v10321_v0  ;;  %v1251_v12 = vpop.permute.xlu1 %1250  ;;  %v1246_v42 = vpop.permute.xlu0 %1245 }
  0xd7   : > { %v1388_v57 = vmul.f32 %v3244_v60, %v1251_v12  ;;  %v10336_v15 = vmul.f32 %v3246_v17, %v1251_v12  ;;  %v10338_v53 = vmul.f32 %v3248_v48, %v1251_v12  ;;  %v1387_v21 = vmul.f32 %v3243_v34, %v1246_v42  ;;  %4518 = vperm.xlu1 %9533, %v7755_v41   ;;  %v7756_v60 = vld [vmem:[%s12204_s7 + $0x230] sm:$0xff]  ;;  %v7759_v41 = vld [vmem:[%s12204_s7 + $0x248] sm:$0xff] }
  0xd8   : > { %v10340_v11 = vmul.f32 %v3245_v23, %v1246_v42  ;;  %v10342_v52 = vmul.f32 %v3247_v58, %v1246_v42  ;;  %4513 = vperm.xlu0 %9532, %v7754_v61  }
  0xd9   : > { %12474 = vst [vmem:[#allocation40_spill] sm:$0xff] %v10338_v53  ;;  %v1417_v0 = vpack.c.bf16 %v1388_v57, %v1387_v21  ;;  %8317 = vmatmul.mubr.msk.bf16.vlgmr.msra.gmra.mrb[0].mxu0 %vm339_vm0, %v1416_v32  ;;  %v10358_v57 = vld [vmem:[%s12198_s1 + $0x8] sm:$0x3] }
  0xda   : > { %12475 = vst [vmem:[#allocation41_spill] sm:$0xff] %v10342_v52  ;;  %8349 = vmatpush3.bf16.msra.mxu0 %v1808_v55  ;;  %v1261_v61 = vpop.permute.xlu1 %1260  ;;  %v1256_v12 = vpop.permute.xlu0 %1255  ;;  %v3252_v55 = vld [vmem:[#allocation2 + $0x71] sm:$0xff] }
  0xdb   : > { %v1390_v32 = vmul.f32 %v3246_v17, %v1261_v61  ;;  %v10360_v42 = vmul.f32 %v3248_v48, %v1261_v61  ;;  %v10362_v21 = vmul.f32 %v3250_v8, %v1261_v61  ;;  %v1389_v9 = vmul.f32 %v3245_v23, %v1256_v12  ;;  %4528 = vperm.xlu1 %9533, %v7757_v46   ;;  %v3251_v17 = vld [vmem:[#allocation2 + $0x69] sm:$0xff]  ;;  %v7758_v61 = vld [vmem:[%s12204_s7 + $0x240] sm:$0xff]  ;;  %v7761_v23 = vld [vmem:[%s12204_s7 + $0x258] sm:$0xff] }
  0xdc   : > { %v10364_v45 = vmul.f32 %v3247_v58, %v1256_v12  ;;  %v10366_v34 = vmul.f32 %v3249_v6, %v1256_v12  ;;  %4523 = vperm.xlu0 %9532, %v7756_v60   ;;  %8320 = vmatprep.mubr.msk.bf16.mxu0 %vm339_vm0, %v1417_v0 }
  0xdd   : > { %12476 = vst [vmem:[#allocation42_spill] sm:$0xff] %v10362_v21  ;;  %v1418_v52 = vpack.c.bf16 %v1390_v32, %v1389_v9  ;;  %9506 = vmatprep.subr.msk.bf16.mxu0 %vm781_vm1, %v10358_v57 }
  0xde   : > { %12477 = vst [vmem:[#allocation43_spill] sm:$0xff] %v10364_v45  ;;  %12478 = vst [vmem:[#allocation44_spill] sm:$0xff] %v10366_v34  ;;  %v1271_v46 = vpop.permute.xlu1 %1270  ;;  %v1266_v60 = vpop.permute.xlu0 %1265  ;;  %v3258_v45 = vld [vmem:[#allocation2 + $0xa1] sm:$0xff] }
  0xdf   : > { %v1392_v12 = vmul.f32 %v3248_v48, %v1271_v46  ;;  %v10381_v53 = vmul.f32 %v3250_v8, %v1271_v46  ;;  %v10383_v9 = vmul.f32 %v3252_v55, %v1271_v46  ;;  %v1391_v32 = vmul.f32 %v3247_v58, %v1266_v60  ;;  %4538 = vperm.xlu1 %9533, %v7759_v41   ;;  %v3253_v48 = vld [vmem:[#allocation2 + $0x79] sm:$0xff]  ;;  %v7760_v46 = vld [vmem:[%s12204_s7 + $0x250] sm:$0xff]  ;;  %v7763_v41 = vld [vmem:[%s12204_s7 + $0x268] sm:$0xff] }
  0xe0   : > { %v10385_v3 = vmul.f32 %v3249_v6, %v1266_v60  ;;  %v10387_v26 = vmul.f32 %v3251_v17, %v1266_v60  ;;  %4533 = vperm.xlu0 %9532, %v7758_v61   ;;  %v3256_v58 = vld [vmem:[#allocation2 + $0x91] sm:$0xff] }
  0xe1   : > { %12479 = vst [vmem:[#allocation45_spill] sm:$0xff] %v10381_v53  ;;  %12480 = vst [vmem:[#allocation46_spill] sm:$0xff] %v10383_v9  ;;  %v1419_v0 = vpack.c.bf16 %v1392_v12, %v1391_v32  ;;  %8321 = vmatmul.mubr.msk.bf16.gmra.mrb[4].mxu0 %vm339_vm0, %v1418_v52 }
  0xe2   : > { %12481 = vst [vmem:[#allocation47_spill] sm:$0xff] %v10385_v3  ;;  %12482 = vst [vmem:[#allocation48_spill] sm:$0xff] %v10387_v26  ;;  %v1281_v61 = vpop.permute.xlu1 %1280  ;;  %v1276_v60 = vpop.permute.xlu0 %1275 }
  0xe3   : > { %v1394_v34 = vmul.f32 %v3250_v8, %v1281_v61  ;;  %v10400_v21 = vmul.f32 %v3252_v55, %v1281_v61  ;;  %v10402_v31 = vmul.f32 %v3254_v27, %v1281_v61  ;;  %v1393_v12 = vmul.f32 %v3249_v6, %v1276_v60  ;;  %4548 = vperm.xlu1 %9533, %v7761_v23   ;;  %v3255_v8 = vld [vmem:[#allocation2 + $0x89] sm:$0xff]  ;;  %v7762_v61 = vld [vmem:[%s12204_s7 + $0x260] sm:$0xff]  ;;  %v7765_v6 = vld [vmem:[%s12204_s7 + $0x278] sm:$0xff] }
  0xe4   : > { %v10404_v52 = vmul.f32 %v3251_v17, %v1276_v60  ;;  %v10406_v32 = vmul.f32 %v3253_v48, %v1276_v60  ;;  %4543 = vperm.xlu0 %9532, %v7760_v46   ;;  %8324 = vmatprep.mubr.msk.bf16.mxu0 %vm339_vm0, %v1419_v0 }
  0xe5   : > { %12483 = vst [vmem:[#allocation49_spill] sm:$0xff] %v10400_v21  ;;  %12484 = vst [vmem:[#allocation50_spill] sm:$0xff] %v10402_v31  ;;  %v1420_v26 = vpack.c.bf16 %v1394_v34, %v1393_v12  ;;  %v3262_v21 = vld [vmem:[#allocation2 + $0xc1] sm:$0xff] }
  0xe6   : > { %12485 = vst [vmem:[#allocation51_spill] sm:$0xff] %v10404_v52  ;;  %12486 = vst [vmem:[#allocation52_spill] sm:$0xff] %v10406_v32  ;;  %v1291_v46 = vpop.permute.xlu1 %1290  ;;  %v1286_v60 = vpop.permute.xlu0 %1285 }
  0xe7   : > { %v1396_v0 = vmul.f32 %v3252_v55, %v1291_v46  ;;  %v10419_v9 = vmul.f32 %v3254_v27, %v1291_v46  ;;  %v10421_v3 = vmul.f32 %v3256_v58, %v1291_v46  ;;  %v1395_v53 = vmul.f32 %v3251_v17, %v1286_v60  ;;  %4558 = vperm.xlu1 %9533, %v7763_v41   ;;  %v3257_v55 = vld [vmem:[#allocation2 + $0x99] sm:$0xff]  ;;  %v7764_v46 = vld [vmem:[%s12204_s7 + $0x270] sm:$0xff]  ;;  %v7767_v41 = vld [vmem:[%s12204_s7 + $0x288] sm:$0xff] }
  0xe8   : > { %v10423_v34 = vmul.f32 %v3253_v48, %v1286_v60  ;;  %v10425_v12 = vmul.f32 %v3255_v8, %v1286_v60  ;;  %4553 = vperm.xlu0 %9532, %v7762_v61   ;;  %v3260_v17 = vld [vmem:[#allocation2 + $0xb1] sm:$0xff] }
  0xe9   : > { %12487 = vst [vmem:[#allocation53_spill] sm:$0xff] %v10419_v9  ;;  %12488 = vst [vmem:[#allocation54_spill] sm:$0xff] %v10421_v3  ;;  %v1421_v23 = vpack.c.bf16 %v1396_v0, %v1395_v53  ;;  %8325 = vmatmul.mubr.msk.bf16.gmra.mrb[8].mxu0 %vm339_vm0, %v1420_v26 }
  0xea   : > { %12489 = vst [vmem:[#allocation55_spill] sm:$0xff] %v10423_v34  ;;  %12490 = vst [vmem:[#allocation56_spill] sm:$0xff] %v10425_v12  ;;  %v1301_v61 = vpop.permute.xlu1 %1300  ;;  %v1296_v60 = vpop.permute.xlu0 %1295 }
  0xeb   : > { %v1398_v32 = vmul.f32 %v3254_v27, %v1301_v61  ;;  %v10438_v31 = vmul.f32 %v3256_v58, %v1301_v61  ;;  %v10440_v52 = vmul.f32 %v3258_v45, %v1301_v61  ;;  %v1397_v53 = vmul.f32 %v3253_v48, %v1296_v60  ;;  %4568 = vperm.xlu1 %9533, %v7765_v6   ;;  %v3259_v27 = vld [vmem:[#allocation2 + $0xa9] sm:$0xff]  ;;  %v7766_v61 = vld [vmem:[%s12204_s7 + $0x280] sm:$0xff]  ;;  %v7769_v48 = vld [vmem:[%s12204_s7 + $0x298] sm:$0xff] }
  0xec   : > { %v10442_v26 = vmul.f32 %v3255_v8, %v1296_v60  ;;  %v10444_v0 = vmul.f32 %v3257_v55, %v1296_v60  ;;  %4563 = vperm.xlu0 %9532, %v7764_v46   ;;  %8328 = vmatprep.mubr.msk.bf16.mxu0 %vm339_vm0, %v1421_v23 }
  0xed   : > { %12491 = vst [vmem:[#allocation57_spill] sm:$0xff] %v10438_v31  ;;  %12492 = vst [vmem:[#allocation58_spill] sm:$0xff] %v10440_v52  ;;  %v1422_v12 = vpack.c.bf16 %v1398_v32, %v1397_v53  ;;  %v3266_v31 = vld [vmem:[#allocation2 + $0xe1] sm:$0xff] }
  0xee   : > { %12493 = vst [vmem:[#allocation59_spill] sm:$0xff] %v10442_v26  ;;  %12494 = vst [vmem:[#allocation60_spill] sm:$0xff] %v10444_v0  ;;  %v1311_v46 = vpop.permute.xlu1 %1310  ;;  %v1306_v60 = vpop.permute.xlu0 %1305 }
  0xef   : > { %v1400_v23 = vmul.f32 %v3256_v58, %v1311_v46  ;;  %v10457_v3 = vmul.f32 %v3258_v45, %v1311_v46  ;;  %v10459_v34 = vmul.f32 %v3260_v17, %v1311_v46  ;;  %v1399_v9 = vmul.f32 %v3255_v8, %v1306_v60  ;;  %4578 = vperm.xlu1 %9533, %v7767_v41   ;;  %v3261_v58 = vld [vmem:[#allocation2 + $0xb9] sm:$0xff]  ;;  %v7768_v46 = vld [vmem:[%s12204_s7 + $0x290] sm:$0xff]  ;;  %v7771_v41 = vld [vmem:[%s12204_s7 + $0x2a8] sm:$0xff] }
  0xf0   : > { %v10461_v32 = vmul.f32 %v3257_v55, %v1306_v60  ;;  %v10463_v53 = vmul.f32 %v3259_v27, %v1306_v60  ;;  %4573 = vperm.xlu0 %9532, %v7766_v61   ;;  %v3264_v8 = vld [vmem:[#allocation2 + $0xd1] sm:$0xff] }
  0xf1   : > { %12495 = vst [vmem:[#allocation61_spill] sm:$0xff] %v10457_v3  ;;  %12496 = vst [vmem:[#allocation62_spill] sm:$0xff] %v10459_v34  ;;  %v1423_v6 = vpack.c.bf16 %v1400_v23, %v1399_v9  ;;  %8329 = vmatmul.mubr.msk.bf16.gmra.mrb[12].mxu0 %vm339_vm0, %v1422_v12 }
  0xf2   : > { %12497 = vst [vmem:[#allocation63_spill] sm:$0xff] %v10461_v32  ;;  %12498 = vst [vmem:[#allocation64_spill] sm:$0xff] %v10463_v53  ;;  %v1321_v61 = vpop.permute.xlu1 %1320  ;;  %v1316_v60 = vpop.permute.xlu0 %1315 }
  0xf3   : > { %v1402_v0 = vmul.f32 %v3258_v45, %v1321_v61  ;;  %v10476_v52 = vmul.f32 %v3260_v17, %v1321_v61  ;;  %v10478_v26 = vmul.f32 %v3262_v21, %v1321_v61  ;;  %v1401_v9 = vmul.f32 %v3257_v55, %v1316_v60  ;;  %4588 = vperm.xlu1 %9533, %v7769_v48   ;;  %v3263_v45 = vld [vmem:[#allocation2 + $0xc9] sm:$0xff]  ;;  %v7770_v61 = vld [vmem:[%s12204_s7 + $0x2a0] sm:$0xff]  ;;  %v7773_v55 = vld [vmem:[%s12204_s7 + $0x2b8] sm:$0xff] }
  0xf4   : > { %v10480_v12 = vmul.f32 %v3259_v27, %v1316_v60  ;;  %v10482_v23 = vmul.f32 %v3261_v58, %v1316_v60  ;;  %4583 = vperm.xlu0 %9532, %v7768_v46   ;;  %8332 = vmatprep.mubr.msk.bf16.mxu0 %vm339_vm0, %v1423_v6 }
  0xf5   : > { %12499 = vst [vmem:[#allocation65_spill] sm:$0xff] %v10476_v52  ;;  %12500 = vst [vmem:[#allocation66_spill] sm:$0xff] %v10478_v26  ;;  %v1424_v53 = vpack.c.bf16 %v1402_v0, %v1401_v9  ;;  %v3270_v52 = vld [vmem:[#allocation2 + $0x101] sm:$0xff] }
  0xf6   : > { %12501 = vst [vmem:[#allocation67_spill] sm:$0xff] %v10480_v12  ;;  %12502 = vst [vmem:[#allocation68_spill] sm:$0xff] %v10482_v23  ;;  %v1331_v46 = vpop.permute.xlu1 %1330  ;;  %v1326_v60 = vpop.permute.xlu0 %1325 }
  0xf7   : > { %v1404_v6 = vmul.f32 %v3260_v17, %v1331_v46  ;;  %v10495_v34 = vmul.f32 %v3262_v21, %v1331_v46  ;;  %v10497_v32 = vmul.f32 %v3264_v8, %v1331_v46  ;;  %v1403_v3 = vmul.f32 %v3259_v27, %v1326_v60  ;;  %4598 = vperm.xlu1 %9533, %v7771_v41   ;;  %v3265_v17 = vld [vmem:[#allocation2 + $0xd9] sm:$0xff]  ;;  %v7772_v46 = vld [vmem:[%s12204_s7 + $0x2b0] sm:$0xff]  ;;  %v7775_v41 = vld [vmem:[%s12204_s7 + $0x2c8] sm:$0xff] }
  0xf8   : > { %v10499_v0 = vmul.f32 %v3261_v58, %v1326_v60  ;;  %v10501_v9 = vmul.f32 %v3263_v45, %v1326_v60  ;;  %4593 = vperm.xlu0 %9532, %v7770_v61   ;;  %v3268_v27 = vld [vmem:[#allocation2 + $0xf1] sm:$0xff] }
  0xf9   : > { %12503 = vst [vmem:[#allocation69_spill] sm:$0xff] %v10495_v34  ;;  %12504 = vst [vmem:[#allocation70_spill] sm:$0xff] %v10497_v32  ;;  %v1425_v48 = vpack.c.bf16 %v1404_v6, %v1403_v3  ;;  %8333 = vmatmul.mubr.msk.bf16.gmra.mrb[16].mxu0 %vm339_vm0, %v1424_v53 }
  0xfa   : > { %12505 = vst [vmem:[#allocation71_spill] sm:$0xff] %v10499_v0  ;;  %12506 = vst [vmem:[#allocation72_spill] sm:$0xff] %v10501_v9  ;;  %v1341_v61 = vpop.permute.xlu1 %1340  ;;  %v1336_v60 = vpop.permute.xlu0 %1335 }
  0xfb   : > { %v1406_v23 = vmul.f32 %v3262_v21, %v1341_v61  ;;  %v10514_v26 = vmul.f32 %v3264_v8, %v1341_v61  ;;  %v10516_v12 = vmul.f32 %v3266_v31, %v1341_v61  ;;  %v1405_v3 = vmul.f32 %v3261_v58, %v1336_v60  ;;  %4608 = vperm.xlu1 %9533, %v7773_v55   ;;  %v3267_v21 = vld [vmem:[#allocation2 + $0xe9] sm:$0xff]  ;;  %v7774_v61 = vld [vmem:[%s12204_s7 + $0x2c0] sm:$0xff]  ;;  %v7777_v58 = vld [vmem:[%s12204_s7 + $0x2d8] sm:$0xff] }
  0xfc   : > { %v10518_v53 = vmul.f32 %v3263_v45, %v1336_v60  ;;  %v10520_v6 = vmul.f32 %v3265_v17, %v1336_v60  ;;  %4603 = vperm.xlu0 %9532, %v7772_v46   ;;  %8336 = vmatprep.mubr.msk.bf16.mxu0 %vm339_vm0, %v1425_v48 }
  0xfd   : > { %12507 = vst [vmem:[#allocation73_spill] sm:$0xff] %v10514_v26  ;;  %12508 = vst [vmem:[#allocation74_spill] sm:$0xff] %v10516_v12  ;;  %v1426_v9 = vpack.c.bf16 %v1406_v23, %v1405_v3  ;;  %v3274_v26 = vld [vmem:[#allocation2 + $0x121] sm:$0xff] }
  0xfe   : > { %12509 = vst [vmem:[#allocation75_spill] sm:$0xff] %v10518_v53  ;;  %12510 = vst [vmem:[#allocation76_spill] sm:$0xff] %v10520_v6  ;;  %v1351_v46 = vpop.permute.xlu1 %1350  ;;  %v1346_v60 = vpop.permute.xlu0 %1345 }
  0xff   : > { %v1408_v48 = vmul.f32 %v3264_v8, %v1351_v46  ;;  %v10533_v32 = vmul.f32 %v3266_v31, %v1351_v46  ;;  %v10535_v0 = vmul.f32 %v3268_v27, %v1351_v46  ;;  %v1407_v34 = vmul.f32 %v3263_v45, %v1346_v60  ;;  %4618 = vperm.xlu1 %9533, %v7775_v41   ;;  %v3269_v8 = vld [vmem:[#allocation2 + $0xf9] sm:$0xff]  ;;  %v7776_v46 = vld [vmem:[%s12204_s7 + $0x2d0] sm:$0xff]  ;;  %v7779_v41 = vld [vmem:[%s12204_s7 + $0x2e8] sm:$0xff] }
 0x100   : > { %v10537_v23 = vmul.f32 %v3265_v17, %v1346_v60  ;;  %v10539_v3 = vmul.f32 %v3267_v21, %v1346_v60  ;;  %4613 = vperm.xlu0 %9532, %v7774_v61   ;;  %v3272_v45 = vld [vmem:[#allocation2 + $0x111] sm:$0xff] }
 0x101   : > { %12511 = vst [vmem:[#allocation77_spill] sm:$0xff] %v10533_v32  ;;  %12512 = vst [vmem:[#allocation78_spill] sm:$0xff] %v10535_v0  ;;  %v1427_v55 = vpack.c.bf16 %v1408_v48, %v1407_v34  ;;  %8337 = vmatmul.mubr.msk.bf16.gmra.mrb[20].mxu0 %vm339_vm0, %v1426_v9 }
 0x102   : > { %12513 = vst [vmem:[#allocation79_spill] sm:$0xff] %v10537_v23  ;;  %12514 = vst [vmem:[#allocation80_spill] sm:$0xff] %v10539_v3  ;;  %v1361_v61 = vpop.permute.xlu1 %1360  ;;  %v1356_v60 = vpop.permute.xlu0 %1355 }
 0x103   : > { %v1410_v6 = vmul.f32 %v3266_v31, %v1361_v61  ;;  %v10552_v12 = vmul.f32 %v3268_v27, %v1361_v61  ;;  %v10554_v53 = vmul.f32 %v3270_v52, %v1361_v61  ;;  %v1409_v34 = vmul.f32 %v3265_v17, %v1356_v60  ;;  %4628 = vperm.xlu1 %9533, %v7777_v58   ;;  %v3271_v31 = vld [vmem:[#allocation2 + $0x109] sm:$0xff]  ;;  %v7778_v61 = vld [vmem:[%s12204_s7 + $0x2e0] sm:$0xff]  ;;  %v7781_v17 = vld [vmem:[%s12204_s7 + $0x2f8] sm:$0xff] }
 0x104   : > { %v10556_v9 = vmul.f32 %v3267_v21, %v1356_v60  ;;  %v10558_v48 = vmul.f32 %v3269_v8, %v1356_v60  ;;  %4623 = vperm.xlu0 %9532, %v7776_v46   ;;  %8340 = vmatprep.mubr.msk.bf16.mxu0 %vm339_vm0, %v1427_v55 }
 0x105   : > { %12515 = vst [vmem:[#allocation81_spill] sm:$0xff] %v10554_v53  ;;  %v1428_v3 = vpack.c.bf16 %v1410_v6, %v1409_v34 }
 0x106   : > { %12516 = vst [vmem:[#allocation82_spill] sm:$0xff] %v10556_v9  ;;  %12517 = vst [vmem:[#allocation83_spill] sm:$0xff] %v10558_v48  ;;  %v1371_v46 = vpop.permute.xlu1 %1370  ;;  %v1366_v60 = vpop.permute.xlu0 %1365 }
 0x107   : > { %v1412_v55 = vmul.f32 %v3268_v27, %v1371_v46  ;;  %v10571_v0 = vmul.f32 %v3270_v52, %v1371_v46  ;;  %v10573_v23 = vmul.f32 %v3272_v45, %v1371_v46  ;;  %v1411_v32 = vmul.f32 %v3267_v21, %v1366_v60  ;;  %4638 = vperm.xlu1 %9533, %v7779_v41   ;;  %v3273_v27 = vld [vmem:[#allocation2 + $0x119] sm:$0xff]  ;;  %v7780_v46 = vld [vmem:[%s12204_s7 + $0x2f0] sm:$0xff] }
 0x108   : > { %v10575_v6 = vmul.f32 %v3269_v8, %v1366_v60  ;;  %v10577_v34 = vmul.f32 %v3271_v31, %v1366_v60  ;;  %4633 = vperm.xlu0 %9532, %v7778_v61  }
 0x109   : > { %v1429_v58 = vpack.c.bf16 %v1412_v55, %v1411_v32  ;;  %8341 = vmatmul.mubr.msk.bf16.gmra.mrb[24].mxu0 %vm339_vm0, %v1428_v3 }
 0x10a   : > { %v1381_v61 = vpop.permute.xlu1 %1380  ;;  %v1376_v60 = vpop.permute.xlu0 %1375 }
 0x10b   : > { %v1414_v48 = vmul.f32 %v3270_v52, %v1381_v61  ;;  %v10590_v53 = vmul.f32 %v3272_v45, %v1381_v61  ;;  %v10592_v9 = vmul.f32 %v3274_v26, %v1381_v61  ;;  %v1413_v32 = vmul.f32 %v3269_v8, %v1376_v60  ;;  %4648 = vperm.xlu1 %9533, %v7781_v17   ;;  %v7648_v45 = vld [vmem:[%s12198_s1 + $0xa] sm:$0x3]  ;;  %v2016_v17 = vld [vmem:[#allocation2 + $0x80] sm:$0xff]  ;;  %v2019_v61 = vld [vmem:[#allocation2 + $0x98] sm:$0xff] }
 0x10c   : > { %v10594_v3 = vmul.f32 %v3271_v31, %v1376_v60  ;;  %v10596_v55 = vmul.f32 %v3273_v27, %v1376_v60  ;;  %4643 = vperm.xlu0 %9532, %v7780_v46   ;;  %8344 = vmatprep.mubr.msk.bf16.mxu0 %vm339_vm0, %v1429_v58  ;;  %v12518_v26 = vpack.c.bf16 %v10041_v28, %v10037_v1  ;;  %v2102_v8 = vsel %vm781_vm1, %v10358_v57, 0  ;;  %v2015_v57 = vld [vmem:[#allocation2 + $0x78] sm:$0xff]  ;;  %v2017_v46 = vld [vmem:[#allocation2 + $0x88] sm:$0xff]  ;;  %v2020_v60 = vld [vmem:[#allocation2 + $0xa0] sm:$0xff] }
 0x10d   : > { %v1430_v21 = vpack.c.bf16 %v1414_v48, %v1413_v32  ;;  %v12519_v48 = vpack.c.bf16 %v10032_v25, %v10028_v16  ;;  %v12520_v31 = vpack.c.bf16 %v10056_v44, %v10061_v51  ;;  %v12521_v1 = vpack.c.bf16 %v10077_v63, %v10082_v14 }
 0x10e   : > { %v2376_v41 = vpack.c.bf16 %v10590_v53, %v10594_v3  ;;  %v3322_v52 = vpack.c.bf16 %v10592_v9, %v10596_v55  ;;  %v12522_v28 = vpack.c.bf16 %v10094_v33, %v10099_v39  ;;  %v12523_v16 = vpack.c.bf16 %v10109_v56, %v10114_v19  ;;  %v2003_v39 = vld [vmem:[#allocation2 + $0x18] sm:$0xff]  ;;  %v12575_v53 = vld [vmem:[#allocation8_spill] sm:$0xff]  ;;  %v12576_v3 = vld [vmem:[#allocation9_spill] sm:$0xff] }
 0x10f   : > { %v12524_v25 = vpack.c.bf16 %v10124_v38, %v10129_v30  ;;  %v12525_v44 = vpack.c.bf16 %v10139_v37, %v10144_v47  ;;  %v12526_v51 = vpack.c.bf16 %v10154_v54, %v10159_v10  ;;  %v12527_v63 = vpack.c.bf16 %v10169_v59, %v10174_v22  ;;  %v2004_v38 = vld [vmem:[#allocation2 + $0x20] sm:$0xff]  ;;  %v2005_v54 = vld [vmem:[#allocation2 + $0x28] sm:$0xff]  ;;  %v2006_v30 = vld [vmem:[#allocation2 + $0x30] sm:$0xff] }
 0x110   : > { %v12528_v14 = vpack.c.bf16 %v10184_v36, %v10189_v35  ;;  %v12529_v37 = vpack.c.bf16 %v10199_v4, %v10204_v49  ;;  %v12530_v33 = vpack.c.bf16 %v10220_v24, %v10224_v7  ;;  %v12531_v59 = vpack.c.bf16 %v10239_v20, %v10243_v5  ;;  %v2007_v47 = vld [vmem:[#allocation2 + $0x38] sm:$0xff]  ;;  %v2008_v5 = vld [vmem:[#allocation2 + $0x40] sm:$0xff]  ;;  %v7665_v22 = vld [vmem:[%s12198_s1 + $0xc] sm:$0x3] }
 0x111   : > { %8345 = vmatmul.mubr.msk.bf16.gmra.mrb[28].mxu0 %vm339_vm0, %v1430_v21  ;;  %v12532_v36 = vpack.c.bf16 %v10258_v29, %v10262_v50  ;;  %v2035_v56 = vpack.c.bf16 %v2004_v38, %v2003_v39  ;;  %v12533_v19 = vpack.c.bf16 %v10277_v62, %v10281_v40  ;;  %v10675_v10 = vpack.c.bf16 %v2006_v30, %v2005_v54  ;;  %v2009_v40 = vld [vmem:[#allocation2 + $0x48] sm:$0xff]  ;;  %v2010_v62 = vld [vmem:[#allocation2 + $0x50] sm:$0xff]  ;;  %v2011_v4 = vld [vmem:[#allocation2 + $0x58] sm:$0xff] }
 0x112   : > { %8350 = vmatprep.mubr.msk.bf16.mxu0 %vm339_vm0, %v12518_v26  ;;  %v10677_v7 = vpack.c.bf16 %v2008_v5, %v2007_v47  ;;  %v2428_v50 = vsel %vm781_vm1, %v7648_v45, 0  ;;  %v2012_v35 = vld [vmem:[#allocation2 + $0x60] sm:$0xff]  ;;  %v10688_v24 = vpack.c.bf16 %v2010_v62, %v2009_v40  ;;  %v2013_v20 = vld [vmem:[#allocation2 + $0x68] sm:$0xff]  ;;  %v2014_v29 = vld [vmem:[#allocation2 + $0x70] sm:$0xff]  ;;  %v10698_v27 = vpack.c.bf16 %v2016_v17, %v2015_v57 }
 0x113   : > { %v10690_v49 = vpack.c.bf16 %v2012_v35, %v2011_v4  ;;  %v10696_v58 = vpack.c.bf16 %v2014_v29, %v2013_v20  ;;  %v2018_v21 = vld [vmem:[#allocation2 + $0x90] sm:$0xff]  ;;  %v10706_v26 = vpack.c.bf16 %v2020_v60, %v2019_v61  ;;  %v12534_v30 = vpack.c.bf16 %v10296_v43, %v10300_v2  ;;  %v7682_v5 = vld [vmem:[%s12198_s1 + $0xe] sm:$0x3]  ;;  %v12537_v43 = vld [vmem:[#allocation43_spill] sm:$0xff] }
 0x114   : > { %v10704_v32 = vpack.c.bf16 %v2018_v21, %v2017_v46  ;;  %v2754_v47 = vsel %vm781_vm1, %v7665_v22, 0  ;;  %v12536_v40 = vpack.c.bf16 %v10336_v15, %v10340_v11  ;;  %v12538_v2 = vpack.c.bf16 %v10360_v42, %v12537_v43  ;;  %v12540_v62 = vld [vmem:[#allocation47_spill] sm:$0xff]  ;;  %v12545_v11 = vld [vmem:[#allocation53_spill] sm:$0xff]  ;;  %v12578_v43 = vld [vmem:[#allocation10_spill] sm:$0xff] }
 0x115   : > { %v12546_v15 = vld [vmem:[#allocation55_spill] sm:$0xff]  ;;  %v12548_v29 = vld [vmem:[#allocation57_spill] sm:$0xff]  ;;  %v10972_v9 = vld [vmem:[%s12200_s3] sm:$0xf] }
 0x116   : > { %v12547_v20 = vpack.c.bf16 %v12545_v11, %v12546_v15  ;;  %v12549_v57 = vld [vmem:[#allocation59_spill] sm:$0xff]  ;;  %v12551_v17 = vld [vmem:[#allocation61_spill] sm:$0xff]  ;;  %v12587_v11 = vld [vmem:[#allocation16_spill] sm:$0xff] }
 0x117   : > { %v12550_v42 = vpack.c.bf16 %v12548_v29, %v12549_v57  ;;  %v12552_v46 = vld [vmem:[#allocation63_spill] sm:$0xff]  ;;  %v12554_v61 = vld [vmem:[#allocation65_spill] sm:$0xff]  ;;  %v12590_v29 = vld [vmem:[#allocation18_spill] sm:$0xff] }
 0x118   : > { %v12553_v21 = vpack.c.bf16 %v12551_v17, %v12552_v46  ;;  %v12555_v60 = vld [vmem:[#allocation67_spill] sm:$0xff]  ;;  %v12588_v15 = vld [vmem:[#allocation17_spill] sm:$0xff]  ;;  %v12593_v17 = vld [vmem:[#allocation20_spill] sm:$0xff] }
 0x119   : > { %8351 = vmatmul.mubr.msk.bf16.vlgmr.msra.gmra.mrb[0].mxu0 %vm339_vm0, %v12519_v48  ;;  %v2023_v48 = vld [vmem:[#allocation2 + $0xb8] sm:$0xff]  ;;  %v12594_v46 = vld [vmem:[#allocation21_spill] sm:$0xff] }
 0x11a   : > { %8383 = vmatpush3.bf16.msra.mxu0 %v2102_v8  ;;  %8354 = vmatprep.mubr.msk.bf16.mxu0 %vm339_vm0, %v12520_v31  ;;  %v2021_v8 = vld [vmem:[#allocation2 + $0xa8] sm:$0xff]  ;;  %v2024_v31 = vld [vmem:[#allocation2 + $0xc0] sm:$0xff]  ;;  %v12591_v57 = vld [vmem:[#allocation19_spill] sm:$0xff] }
 0x11b   : > { %9507 = vmatprep.subr.msk.bf16.mxu0 %vm781_vm1, %v7648_v45  ;;  %v2022_v45 = vld [vmem:[#allocation2 + $0xb0] sm:$0xff] }
 0x121   : > { %8355 = vmatmul.mubr.msk.bf16.gmra.mrb[4].mxu0 %vm339_vm0, %v12521_v1  ;;  %v10712_v1 = vpack.c.bf16 %v2022_v45, %v2021_v8  ;;  %v12556_v8 = vpack.c.bf16 %v12554_v61, %v12555_v60  ;;  %v12557_v45 = vld [vmem:[#allocation69_spill] sm:$0xff]  ;;  %v12596_v61 = vld [vmem:[#allocation22_spill] sm:$0xff]  ;;  %v12597_v60 = vld [vmem:[#allocation23_spill] sm:$0xff] }
 0x122   : > { %8358 = vmatprep.mubr.msk.bf16.mxu0 %vm339_vm0, %v12522_v28  ;;  %v10714_v28 = vpack.c.bf16 %v2024_v31, %v2023_v48  ;;  %v12558_v48 = vld [vmem:[#allocation71_spill] sm:$0xff] }
 0x123   : > { %v12559_v31 = vpack.c.bf16 %v12557_v45, %v12558_v48  ;;  %v12599_v45 = vld [vmem:[#allocation24_spill] sm:$0xff]  ;;  %v12600_v48 = vld [vmem:[#allocation25_spill] sm:$0xff] }
 0x129   : > { %8359 = vmatmul.mubr.msk.bf16.gmra.mrb[8].mxu0 %vm339_vm0, %v12523_v16  ;;  %v2025_v16 = vld [vmem:[#allocation2 + $0xc8] sm:$0xff] }
 0x12a   : > { %8362 = vmatprep.mubr.msk.bf16.mxu0 %vm339_vm0, %v12524_v25  ;;  %v2026_v25 = vld [vmem:[#allocation2 + $0xd0] sm:$0xff] }
 0x131   : > { %8363 = vmatmul.mubr.msk.bf16.gmra.mrb[12].mxu0 %vm339_vm0, %v12525_v44  ;;  %v2027_v44 = vld [vmem:[#allocation2 + $0xd8] sm:$0xff] }
 0x132   : > { %8366 = vmatprep.mubr.msk.bf16.mxu0 %vm339_vm0, %v12526_v51  ;;  %v2028_v51 = vld [vmem:[#allocation2 + $0xe0] sm:$0xff] }
 0x139   : > { %8367 = vmatmul.mubr.msk.bf16.gmra.mrb[16].mxu0 %vm339_vm0, %v12527_v63  ;;  %v10720_v63 = vpack.c.bf16 %v2026_v25, %v2025_v16  ;;  %v12560_v16 = vld [vmem:[#allocation73_spill] sm:$0xff]  ;;  %v12561_v25 = vld [vmem:[#allocation75_spill] sm:$0xff] }
 0x13a   : > { %8370 = vmatprep.mubr.msk.bf16.mxu0 %vm339_vm0, %v12528_v14  ;;  %v10722_v14 = vpack.c.bf16 %v2028_v51, %v2027_v44  ;;  %v12562_v44 = vpack.c.bf16 %v12560_v16, %v12561_v25  ;;  %v12563_v51 = vld [vmem:[#allocation77_spill] sm:$0xff]  ;;  %v12602_v16 = vld [vmem:[#allocation26_spill] sm:$0xff]  ;;  %v12603_v25 = vld [vmem:[#allocation27_spill] sm:$0xff] }
 0x141   : > { %8371 = vmatmul.mubr.msk.bf16.gmra.mrb[20].mxu0 %vm339_vm0, %v12529_v37  ;;  %v2029_v37 = vld [vmem:[#allocation2 + $0xe8] sm:$0xff] }
 0x142   : > { %8374 = vmatprep.mubr.msk.bf16.mxu0 %vm339_vm0, %v12530_v33  ;;  %v2030_v33 = vld [vmem:[#allocation2 + $0xf0] sm:$0xff] }
 0x143   : > { %v2048_v39 = vpack.c.bf16 %v2030_v33, %v2029_v37  ;;  %v12564_v37 = vld [vmem:[#allocation79_spill] sm:$0xff] }
 0x144   : > { %v12565_v33 = vpack.c.bf16 %v12563_v51, %v12564_v37  ;;  %v12605_v51 = vld [vmem:[#allocation28_spill] sm:$0xff]  ;;  %v12606_v37 = vld [vmem:[#allocation29_spill] sm:$0xff] }
 0x149   : > { %8375 = vmatmul.mubr.msk.bf16.gmra.mrb[24].mxu0 %vm339_vm0, %v12531_v59  ;;  %v2031_v59 = vld [vmem:[#allocation2 + $0xf8] sm:$0xff] }
 0x14a   : > { %8378 = vmatprep.mubr.msk.bf16.mxu0 %vm339_vm0, %v12532_v36  ;;  %v2032_v36 = vld [vmem:[#allocation2 + $0x100] sm:$0xff] }
 0x14b   : > { %v2049_v38 = vpack.c.bf16 %v2032_v36, %v2031_v59  ;;  %v12566_v59 = vld [vmem:[#allocation82_spill] sm:$0xff] }
 0x14c   : > { %v12567_v36 = vpack.c.bf16 %v10552_v12, %v12566_v59  ;;  %v7699_v12 = vld [vmem:[%s12198_s1 + $0x10] sm:$0x3] }
 0x14d   : > { %v12608_v59 = vld [vmem:[#allocation30_spill] sm:$0xff] }
 0x151   : > { %8379 = vmatmul.mubr.msk.bf16.gmra.mrb[28].mxu0 %vm339_vm0, %v12533_v19  ;;  %v2034_v19 = vld [vmem:[#allocation2 + $0x110] sm:$0xff] }
 0x152   : > { %8384 = vmatprep.mubr.msk.bf16.mxu0 %vm339_vm0, %v2035_v56  ;;  %v2033_v56 = vld [vmem:[#allocation2 + $0x108] sm:$0xff] }
 0x153   : > { %v2050_v54 = vpack.c.bf16 %v2034_v19, %v2033_v56  ;;  %v12568_v56 = vpack.c.bf16 %v10571_v0, %v10575_v6  ;;  %v12569_v19 = vld [vmem:[#allocation7_spill] sm:$0xff]  ;;  %v12573_v0 = vld [vmem:[#allocation4_spill] sm:$0xff] }
 0x159   : > { %8385 = vmatmul.mubr.msk.bf16.vlgmr.msra.gmra.mrb[0].mxu0 %vm339_vm0, %v10675_v10 }
 0x15a   : > { %8417 = vmatpush3.bf16.msra.mxu0 %v2428_v50  ;;  %8388 = vmatprep.mubr.msk.bf16.mxu0 %vm339_vm0, %v10677_v7  ;;  %v12535_v50 = vpack.c.bf16 %v10315_v18, %v10319_v13  ;;  %v12542_v18 = vld [vmem:[#allocation49_spill] sm:$0xff]  ;;  %v12543_v13 = vld [vmem:[#allocation51_spill] sm:$0xff] }
 0x15b   : > { %9508 = vmatprep.subr.msk.bf16.mxu0 %vm781_vm1, %v7665_v22  ;;  %v12539_v22 = vld [vmem:[#allocation45_spill] sm:$0xff]  ;;  %v12544_v35 = vpack.c.bf16 %v12542_v18, %v12543_v13  ;;  %v12584_v18 = vld [vmem:[#allocation14_spill] sm:$0xff]  ;;  %v12585_v13 = vld [vmem:[#allocation15_spill] sm:$0xff] }
 0x15c   : > { %v12541_v4 = vpack.c.bf16 %v12539_v22, %v12540_v62  ;;  %v12581_v22 = vld [vmem:[#allocation12_spill] sm:$0xff]  ;;  %v12582_v62 = vld [vmem:[#allocation13_spill] sm:$0xff] }
 0x161   : > { %8389 = vmatmul.mubr.msk.bf16.gmra.mrb[4].mxu0 %vm339_vm0, %v10688_v24 }
 0x162   : > { %8392 = vmatprep.mubr.msk.bf16.mxu0 %vm339_vm0, %v10690_v49 }
 0x169   : > { %8393 = vmatmul.mubr.msk.bf16.gmra.mrb[8].mxu0 %vm339_vm0, %v10696_v58 }
 0x16a   : > { %8396 = vmatprep.mubr.msk.bf16.mxu0 %vm339_vm0, %v10698_v27 }
 0x171   : > { %8397 = vmatmul.mubr.msk.bf16.gmra.mrb[12].mxu0 %vm339_vm0, %v10704_v32 }
 0x172   : > { %8400 = vmatprep.mubr.msk.bf16.mxu0 %vm339_vm0, %v10706_v26 }
 0x179   : > { %8401 = vmatmul.mubr.msk.bf16.gmra.mrb[16].mxu0 %vm339_vm0, %v10712_v1 }
 0x17a   : > { %8404 = vmatprep.mubr.msk.bf16.mxu0 %vm339_vm0, %v10714_v28 }
 0x181   : > { %8405 = vmatmul.mubr.msk.bf16.gmra.mrb[20].mxu0 %vm339_vm0, %v10720_v63 }
 0x182   : > { %8408 = vmatprep.mubr.msk.bf16.mxu0 %vm339_vm0, %v10722_v14 }
 0x189   : > { %8409 = vmatmul.mubr.msk.bf16.gmra.mrb[24].mxu0 %vm339_vm0, %v2048_v39 }
 0x18a   : > { %8412 = vmatprep.mubr.msk.bf16.mxu0 %vm339_vm0, %v2049_v38 }
 0x191   : > { %8413 = vmatmul.mubr.msk.bf16.gmra.mrb[28].mxu0 %vm339_vm0, %v2050_v54 }
 0x192   : > { %8418 = vmatprep.mubr.msk.bf16.mxu0 %vm339_vm0, %v12534_v30  ;;  %v12570_v30 = vld [vmem:[#allocation6_spill] sm:$0xff] }
 0x199   : > { %8419 = vmatmul.mubr.msk.bf16.vlgmr.msra.gmra.mrb[0].mxu0 %vm339_vm0, %v12535_v50  ;;  %v3048_v50 = vsel %vm781_vm1, %v7682_v5, 0 }
 0x19a   : > { %8451 = vmatpush3.bf16.msra.mxu0 %v2754_v47  ;;  %8422 = vmatprep.mubr.msk.bf16.mxu0 %vm339_vm0, %v12536_v40  ;;  %v12571_v47 = vpack.c.bf16 %v12569_v19, %v12570_v30  ;;  %v12572_v40 = vld [vmem:[#allocation5_spill] sm:$0xff]  ;;  %v12611_v19 = vld [vmem:[#allocation32_spill] sm:$0xff] }
 0x19b   : > { %9509 = vmatprep.subr.msk.bf16.mxu0 %vm781_vm1, %v7682_v5  ;;  %v12574_v6 = vpack.c.bf16 %v12572_v40, %v12573_v0  ;;  %v12612_v30 = vld [vmem:[#allocation33_spill] sm:$0xff]  ;;  %v12615_v40 = vld [vmem:[#allocation35_spill] sm:$0xff] }
 0x1a1   : > { %8423 = vmatmul.mubr.msk.bf16.gmra.mrb[4].mxu0 %vm339_vm0, %v12538_v2  ;;  %v12579_v2 = vld [vmem:[#allocation11_spill] sm:$0xff] }
 0x1a2   : > { %8426 = vmatprep.mubr.msk.bf16.mxu0 %vm339_vm0, %v12541_v4  ;;  %v12580_v5 = vpack.c.bf16 %v12578_v43, %v12579_v2  ;;  %v12583_v4 = vpack.c.bf16 %v12581_v22, %v12582_v62  ;;  %v12633_v43 = vld [vmem:[#allocation52_spill] sm:$0xff] }
 0x1a3   : > { %v12636_v22 = vld [vmem:[#allocation56_spill] sm:$0xff] }
 0x1a9   : > { %8427 = vmatmul.mubr.msk.bf16.gmra.mrb[8].mxu0 %vm339_vm0, %v12544_v35  ;;  %v12586_v35 = vpack.c.bf16 %v12584_v18, %v12585_v13  ;;  %v12639_v18 = vld [vmem:[#allocation60_spill] sm:$0xff] }
 0x1aa   : > { %8430 = vmatprep.mubr.msk.bf16.mxu0 %vm339_vm0, %v12547_v20  ;;  %v12589_v20 = vpack.c.bf16 %v12587_v11, %v12588_v15  ;;  %v12642_v11 = vld [vmem:[#allocation64_spill] sm:$0xff] }
 0x1b1   : > { %8431 = vmatmul.mubr.msk.bf16.gmra.mrb[12].mxu0 %vm339_vm0, %v12550_v42  ;;  %v12592_v42 = vpack.c.bf16 %v12590_v29, %v12591_v57  ;;  %v12645_v29 = vld [vmem:[#allocation68_spill] sm:$0xff] }
 0x1b2   : > { %8434 = vmatprep.mubr.msk.bf16.mxu0 %vm339_vm0, %v12553_v21  ;;  %v12595_v21 = vpack.c.bf16 %v12593_v17, %v12594_v46  ;;  %v12648_v17 = vld [vmem:[#allocation72_spill] sm:$0xff] }
 0x1b9   : > { %8435 = vmatmul.mubr.msk.bf16.gmra.mrb[16].mxu0 %vm339_vm0, %v12556_v8  ;;  %v12598_v8 = vpack.c.bf16 %v12596_v61, %v12597_v60  ;;  %v12651_v61 = vld [vmem:[#allocation76_spill] sm:$0xff] }
 0x1ba   : > { %8438 = vmatprep.mubr.msk.bf16.mxu0 %vm339_vm0, %v12559_v31  ;;  %v12601_v31 = vpack.c.bf16 %v12599_v45, %v12600_v48  ;;  %v12654_v45 = vld [vmem:[#allocation80_spill] sm:$0xff] }
 0x1c1   : > { %8439 = vmatmul.mubr.msk.bf16.gmra.mrb[20].mxu0 %vm339_vm0, %v12562_v44  ;;  %v12604_v44 = vpack.c.bf16 %v12602_v16, %v12603_v25  ;;  %v12657_v16 = vld [vmem:[#allocation83_spill] sm:$0xff] }
 0x1c2   : > { %8442 = vmatprep.mubr.msk.bf16.mxu0 %vm339_vm0, %v12565_v33  ;;  %v12607_v33 = vpack.c.bf16 %v12605_v51, %v12606_v37  ;;  %v7717_v51 = vld [vmem:[%s12200_s3 + $0x4] sm:$0xf] }
 0x1c3   : > { %v4052_v37 = vsel %vm4050_vm3, %v7717_v51, 0  ;;  %9512 = vmatprep.subr.msk.bf16.mxu1 %vm4050_vm3, %v7717_v51 }
 0x1c4   : > { %8893 = vmatpush3.bf16.msra.mxu1 %v4052_v37 }
 0x1c5   : > { %9513 = vmatprep.subr.msk.bf16.mxu1 %vm4050_vm3, %v10972_v9 }
 0x1c9   : > { %8443 = vmatmul.mubr.msk.bf16.gmra.mrb[24].mxu0 %vm339_vm0, %v12567_v36  ;;  %v12609_v36 = vld [vmem:[#allocation31_spill] sm:$0xff] }
 0x1ca   : > { %8446 = vmatprep.mubr.msk.bf16.mxu0 %vm339_vm0, %v12568_v56  ;;  %v12610_v56 = vpack.c.bf16 %v12608_v59, %v12609_v36  ;;  %v3953_v59 = vld [vmem:[#allocation3 + $0x10] sm:$0xff] }
 0x1d1   : > { %8447 = vmatmul.mubr.msk.bf16.gmra.mrb[28].mxu0 %vm339_vm0, %v2376_v41  ;;  %v12577_v41 = vpack.c.bf16 %v12575_v53, %v12576_v3  ;;  %v12630_v53 = vld [vmem:[#allocation48_spill] sm:$0xff] }
 0x1d2   : > { %8452 = vmatprep.mubr.msk.bf16.mxu0 %vm339_vm0, %v12571_v47  ;;  %v12613_v47 = vpack.c.bf16 %v12611_v19, %v12612_v30 }
 0x1d9   : > { %8453 = vmatmul.mubr.msk.bf16.vlgmr.msra.gmra.mrb[0].mxu0 %vm339_vm0, %v12574_v6  ;;  %v3374_v6 = vsel %vm781_vm1, %v7699_v12, 0 }
 0x1da   : > { %8485 = vmatpush3.bf16.msra.mxu0 %v3048_v50  ;;  %8456 = vmatprep.mubr.msk.bf16.mxu0 %vm339_vm0, %v12577_v41  ;;  %v12614_v50 = vld [vmem:[#allocation34_spill] sm:$0xff] }
 0x1db   : > { %9510 = vmatprep.subr.msk.bf16.mxu0 %vm781_vm1, %v7699_v12  ;;  %v12616_v0 = vpack.c.bf16 %v12614_v50, %v12615_v40  ;;  %v12629_v12 = vld [vmem:[#allocation46_spill] sm:$0xff] }
 0x1dc   : > { %v12631_v3 = vpack.c.bf16 %v12629_v12, %v12630_v53  ;;  %v12632_v41 = vld [vmem:[#allocation50_spill] sm:$0xff] }
 0x1dd   : > { %v12634_v2 = vpack.c.bf16 %v12632_v41, %v12633_v43 }
 0x1e1   : > { %8457 = vmatmul.mubr.msk.bf16.gmra.mrb[4].mxu0 %vm339_vm0, %v12580_v5  ;;  %v12635_v5 = vld [vmem:[#allocation54_spill] sm:$0xff] }
 0x1e2   : > { %8460 = vmatprep.mubr.msk.bf16.mxu0 %vm339_vm0, %v12583_v4  ;;  %v12637_v62 = vpack.c.bf16 %v12635_v5, %v12636_v22  ;;  %v12638_v4 = vld [vmem:[#allocation58_spill] sm:$0xff] }
 0x1e3   : > { %v12640_v13 = vpack.c.bf16 %v12638_v4, %v12639_v18 }
 0x1e9   : > { %8461 = vmatmul.mubr.msk.bf16.gmra.mrb[8].mxu0 %vm339_vm0, %v12586_v35  ;;  %v12641_v35 = vld [vmem:[#allocation62_spill] sm:$0xff] }
 0x1ea   : > { %8464 = vmatprep.mubr.msk.bf16.mxu0 %vm339_vm0, %v12589_v20  ;;  %v12643_v15 = vpack.c.bf16 %v12641_v35, %v12642_v11  ;;  %v12644_v20 = vld [vmem:[#allocation66_spill] sm:$0xff] }
 0x1eb   : > { %v12646_v57 = vpack.c.bf16 %v12644_v20, %v12645_v29 }
 0x1f1   : > { %8465 = vmatmul.mubr.msk.bf16.gmra.mrb[12].mxu0 %vm339_vm0, %v12592_v42  ;;  %v12647_v42 = vld [vmem:[#allocation70_spill] sm:$0xff] }
 0x1f2   : > { %8468 = vmatprep.mubr.msk.bf16.mxu0 %vm339_vm0, %v12595_v21  ;;  %v12649_v46 = vpack.c.bf16 %v12647_v42, %v12648_v17  ;;  %v12650_v21 = vld [vmem:[#allocation74_spill] sm:$0xff] }
 0x1f3   : > { %v12652_v60 = vpack.c.bf16 %v12650_v21, %v12651_v61 }
 0x1f9   : > { %8469 = vmatmul.mubr.msk.bf16.gmra.mrb[16].mxu0 %vm339_vm0, %v12598_v8  ;;  %v12653_v8 = vld [vmem:[#allocation78_spill] sm:$0xff] }
 0x1fa   : > { %8472 = vmatprep.mubr.msk.bf16.mxu0 %vm339_vm0, %v12601_v31  ;;  %v12655_v48 = vpack.c.bf16 %v12653_v8, %v12654_v45  ;;  %v12656_v31 = vld [vmem:[#allocation81_spill] sm:$0xff] }
 0x1fb   : > { %v12658_v25 = vpack.c.bf16 %v12656_v31, %v12657_v16 }
 0x201   : > { %8473 = vmatmul.mubr.msk.bf16.gmra.mrb[20].mxu0 %vm339_vm0, %v12604_v44  ;;  %v12659_v44 = vpack.c.bf16 %v10573_v23, %v10577_v34  ;;  %v10979_v34 = vld [vmem:[%s12199_s2] ss:$0 sm:$0xff] }
 0x202   : > { %8476 = vmatprep.mubr.msk.bf16.mxu0 %vm339_vm0, %v12607_v33  ;;  %v3952_v33 = vld [vmem:[#allocation3 + $0x8] sm:$0xff] }
 0x203   : > { %v3984_v23 = vpack.c.bf16 %v3953_v59, %v3952_v33 }
 0x209   : > { %8477 = vmatmul.mubr.msk.bf16.gmra.mrb[24].mxu0 %vm339_vm0, %v12610_v56 }
 0x20a   : > { %8480 = vmatprep.mubr.msk.bf16.mxu0 %vm339_vm0, %v12613_v47 }
 0x211   : > { %8481 = vmatmul.mubr.msk.bf16.gmra.mrb[28].mxu0 %vm339_vm0, %v12616_v0 }
 0x212   : > { %8486 = vmatprep.mubr.msk.bf16.mxu0 %vm339_vm0, %v10675_v10  ;;  %v2979_v10 = vld [vmem:[#allocation2 + $0x118] sm:$0xff] }
 0x219   : > { %8487 = vmatmul.mubr.msk.bf16.vlgmr.msra.gmra.mrb[0].mxu0 %vm339_vm0, %v10677_v7  ;;  %v2980_v7 = vld [vmem:[#allocation2 + $0x120] sm:$0xff] }
 0x21a   : > { %8519 = vmatpush3.bf16.msra.mxu0 %v3374_v6  ;;  %8490 = vmatprep.mubr.msk.bf16.mxu0 %vm339_vm0, %v10688_v24  ;;  %v2996_v24 = vpack.c.bf16 %v2980_v7, %v2979_v10  ;;  %v10988_v7 = vpop.permute.xlu1 %3750 }
 0x21b   : > { %9511 = vmatprep.subr.msk.bf16.mxu0 %vm4050_vm3, %v7717_v51  ;;  %12660 = vst [vmem:[#allocation43_spill] sm:$0xff] %v10988_v7 }
 0x221   : > { %8491 = vmatmul.mubr.msk.bf16.gmra.mrb[4].mxu0 %vm339_vm0, %v10690_v49  ;;  %v12617_v49 = vld [vmem:[#allocation36_spill] sm:$0xff] }
 0x222   : > { %8494 = vmatprep.mubr.msk.bf16.mxu0 %vm339_vm0, %v10696_v58  ;;  %v12618_v58 = vld [vmem:[#allocation37_spill] sm:$0xff] }
 0x229   : > { %8495 = vmatmul.mubr.msk.bf16.gmra.mrb[8].mxu0 %vm339_vm0, %v10698_v27  ;;  %v12619_v27 = vpack.c.bf16 %v12617_v49, %v12618_v58  ;;  %v10991_v49 = vpop.permute.xlu0 %3745 }
 0x22a   : > { %8498 = vmatprep.mubr.msk.bf16.mxu0 %vm339_vm0, %v10704_v32  ;;  %v12620_v32 = vld [vmem:[#allocation38_spill] sm:$0xff] }
 0x231   : > { %8499 = vmatmul.mubr.msk.bf16.gmra.mrb[12].mxu0 %vm339_vm0, %v10706_v26  ;;  %v12621_v26 = vld [vmem:[#allocation39_spill] sm:$0xff] }
 0x232   : > { %8502 = vmatprep.mubr.msk.bf16.mxu0 %vm339_vm0, %v10712_v1  ;;  %v12622_v1 = vpack.c.bf16 %v12620_v32, %v12621_v26 }
 0x239   : > { %8503 = vmatmul.mubr.msk.bf16.gmra.mrb[16].mxu0 %vm339_vm0, %v10714_v28  ;;  %v12623_v28 = vld [vmem:[#allocation40_spill] sm:$0xff] }
 0x23a   : > { %8506 = vmatprep.mubr.msk.bf16.mxu0 %vm339_vm0, %v10720_v63  ;;  %v12624_v63 = vld [vmem:[#allocation41_spill] sm:$0xff] }
 0x241   : > { %8507 = vmatmul.mubr.msk.bf16.gmra.mrb[20].mxu0 %vm339_vm0, %v10722_v14  ;;  %v12625_v14 = vpack.c.bf16 %v12623_v28, %v12624_v63 }
 0x242   : > { %8510 = vmatprep.mubr.msk.bf16.mxu0 %vm339_vm0, %v2048_v39  ;;  %v12626_v39 = vld [vmem:[#allocation42_spill] sm:$0xff] }
 0x249   : > { %8511 = vmatmul.mubr.msk.bf16.gmra.mrb[24].mxu0 %vm339_vm0, %v2049_v38  ;;  %v12627_v38 = vld [vmem:[#allocation44_spill] sm:$0xff] }
 0x24a   : > { %8514 = vmatprep.mubr.msk.bf16.mxu0 %vm339_vm0, %v2050_v54  ;;  %v12628_v54 = vpack.c.bf16 %v12626_v39, %v12627_v38 }
 0x251   : > { %8515 = vmatmul.mubr.msk.bf16.gmra.mrb[28].mxu0 %vm339_vm0, %v2996_v24 }
 0x252   : > { %8520 = vmatprep.mubr.msk.bf16.mxu0 %vm339_vm0, %v12619_v27 }
 0x259   : > { %8521 = vmatmul.mubr.msk.bf16.vlgmr.msra.gmra.mrb[0].mxu0 %vm339_vm0, %v12622_v1 }
 0x25a   : > { %8524 = vmatprep.mubr.msk.bf16.mxu0 %vm339_vm0, %v12625_v14  ;;  %8553 = vmatpush3.bf16.msra.mxu0 %v4052_v37 }
 0x261   : > { %8525 = vmatmul.mubr.msk.bf16.gmra.mrb[4].mxu0 %vm339_vm0, %v12628_v54  ;;  %v10998_v54 = vpop.permute.xlu1 %3760 }
 0x262   : > { %8528 = vmatprep.mubr.msk.bf16.mxu0 %vm339_vm0, %v12631_v3  ;;  %v11001_v3 = vpop.permute.xlu0 %3755 }
 0x265   : > { %v11016_v29 = vpop.permute.xlu1 %3770 }
 0x266   : > { %v11019_v17 = vpop.permute.xlu0 %3765 }
 0x269   : > { %8529 = vmatmul.mubr.msk.bf16.gmra.mrb[8].mxu0 %vm339_vm0, %v12634_v2  ;;  %v11030_v51 = vpop.permute.xlu1 %3780 }
 0x26a   : > { %8532 = vmatprep.mubr.msk.bf16.mxu0 %vm339_vm0, %v12637_v62  ;;  %v11035_v59 = vpop.permute.xlu0 %3775 }
 0x271   : > { %8533 = vmatmul.mubr.msk.bf16.gmra.mrb[12].mxu0 %vm339_vm0, %v12640_v13 }
 0x272   : > { %8536 = vmatprep.mubr.msk.bf16.mxu0 %vm339_vm0, %v12643_v15 }
 0x279   : > { %8537 = vmatmul.mubr.msk.bf16.gmra.mrb[16].mxu0 %vm339_vm0, %v12646_v57 }
 0x27a   : > { %8540 = vmatprep.mubr.msk.bf16.mxu0 %vm339_vm0, %v12649_v46 }
 0x281   : > { %8541 = vmatmul.mubr.msk.bf16.gmra.mrb[20].mxu0 %vm339_vm0, %v12652_v60 }
 0x282   : > { %8544 = vmatprep.mubr.msk.bf16.mxu0 %vm339_vm0, %v12655_v48 }
 0x289   : > { %8545 = vmatmul.mubr.msk.bf16.gmra.mrb[24].mxu0 %vm339_vm0, %v12658_v25 }
 0x28a   : > { %8548 = vmatprep.mubr.msk.bf16.mxu0 %vm339_vm0, %v12659_v44 }
 0x291   : > { %8549 = vmatmul.mubr.msk.bf16.gmra.mrb[28].mxu0 %vm339_vm0, %v3322_v52 }
 0x292   : > { %8554 = vmatprep.mubr.msk.bf16.mxu0 %vm3608_vm2, %v3984_v23 }
 0x32c   : > { %v8522_v55 = vpop.f32.mrb[0].mxu0 }
 0x32d   : > { %v3578_v52 = vadd.f32 %v8522_v55, %v10979_v34  ;;  %v3410_v36 = vpop.f32.mrb[1].mxu0 }
 0x32e   : > { %v3576_v56 = vadd.f32 %v10979_v34, %v3410_v36  ;;  %v8523_v19 = vpop.f32.mrb[2].mxu0 }
 0x32f   : > { %v3617_v30 = vmax.f32 %v3578_v52, 0.0  ;;  %v3579_v47 = vadd.f32 %v8523_v19, %v10979_v34  ;;  %v3413_v50 = vpop.f32.mrb[3].mxu0 }
 0x330   : > { %v3615_v40 = vmax.f32 %v3576_v56, 0.0  ;;  %v3577_v0 = vadd.f32 %v10979_v34, %v3413_v50 }
 0x331   : > { %3649 = vst.msk [vmem:[#allocation3 + $0x28] sm:$0xff] %vm3608_vm2, %v3617_v30  ;;  %v3618_v6 = vmax.f32 %v3579_v47, 0.0 }
 0x332   : > { %3647 = vst.msk [vmem:[#allocation3 + $0x18] sm:$0xff] %vm3608_vm2, %v3615_v40  ;;  %v3616_v10 = vmax.f32 %v3577_v0, 0.0  ;;  %v11044_v0 = vpop.permute.xlu1 %3790 }
 0x333   : > { %3650 = vst.msk [vmem:[#allocation3 + $0x30] sm:$0xff] %vm3608_vm2, %v3618_v6 }
 0x334   : > { %3648 = vst.msk [vmem:[#allocation3 + $0x20] sm:$0xff] %vm3608_vm2, %v3616_v10  ;;  %v8526_v24 = vpop.f32.mrb[4].mxu0 }
 0x335   : > { %v3582_v58 = vadd.f32 %v8526_v24, %v10979_v34  ;;  %v3426_v27 = vpop.f32.mrb[5].mxu0 }
 0x336   : > { %v3580_v32 = vadd.f32 %v10979_v34, %v3426_v27  ;;  %v8527_v26 = vpop.f32.mrb[6].mxu0 }
 0x337   : > { %v3621_v1 = vmax.f32 %v3582_v58, 0.0  ;;  %v3583_v28 = vadd.f32 %v8527_v26, %v10979_v34  ;;  %v3429_v63 = vpop.f32.mrb[7].mxu0  ;;  %v11049_v58 = vpop.permute.xlu0 %3785 }
 0x338   : > { %v3619_v14 = vmax.f32 %v3580_v32, 0.0  ;;  %v3581_v39 = vadd.f32 %v10979_v34, %v3429_v63  ;;  %v3956_v22 = vld [vmem:[#allocation3 + $0x28] sm:$0xff] }
 0x339   : > { %3653 = vst.msk [vmem:[#allocation3 + $0x48] sm:$0xff] %vm3608_vm2, %v3621_v1  ;;  %v3622_v38 = vmax.f32 %v3583_v28, 0.0  ;;  %v3954_v41 = vld [vmem:[#allocation3 + $0x18] sm:$0xff] }
 0x33a   : > { %3651 = vst.msk [vmem:[#allocation3 + $0x38] sm:$0xff] %vm3608_vm2, %v3619_v14  ;;  %v3620_v12 = vmax.f32 %v3581_v39, 0.0  ;;  %v3957_v53 = vld [vmem:[#allocation3 + $0x30] sm:$0xff] }
 0x33b   : > { %3654 = vst.msk [vmem:[#allocation3 + $0x50] sm:$0xff] %vm3608_vm2, %v3622_v38  ;;  %v3955_v43 = vld [vmem:[#allocation3 + $0x20] sm:$0xff]  ;;  %v11008_v18 = vpack.c.bf16 %v3957_v53, %v3956_v22 }
 0x33c   : > { %3652 = vst.msk [vmem:[#allocation3 + $0x40] sm:$0xff] %vm3608_vm2, %v3620_v12  ;;  %v8530_v2 = vpop.f32.mrb[8].mxu0  ;;  %v11005_v5 = vpack.c.bf16 %v3955_v43, %v3954_v41  ;;  %v11062_v41 = vpop.permute.xlu1 %3800 }
 0x33d   : > { %v3586_v62 = vadd.f32 %v8530_v2, %v10979_v34  ;;  %v3442_v4 = vpop.f32.mrb[9].mxu0  ;;  %12662 = vst [vmem:[#allocation47_spill] sm:$0xff] %v11008_v18 }
 0x33e   : > { %12661 = vst [vmem:[#allocation45_spill] sm:$0xff] %v11005_v5  ;;  %v3584_v13 = vadd.f32 %v10979_v34, %v3442_v4  ;;  %v8531_v35 = vpop.f32.mrb[10].mxu0  ;;  %8555 = vmatmul.mubr.msk.bf16.vlgmr.msra.gmra.mrb[32].mxu0 %vm3608_vm2, %v11005_v5 }
 0x33f   : > { %v3625_v11 = vmax.f32 %v3586_v62, 0.0  ;;  %v3587_v15 = vadd.f32 %v8531_v35, %v10979_v34  ;;  %v3445_v20 = vpop.f32.mrb[11].mxu0  ;;  %8558 = vmatprep.mubr.msk.bf16.mxu0 %vm3608_vm2, %v11008_v18  ;;  %v11065_v62 = vpop.permute.xlu0 %3795 }
 0x340   : > { %v3623_v57 = vmax.f32 %v3584_v13, 0.0  ;;  %v3585_v42 = vadd.f32 %v10979_v34, %v3445_v20  ;;  %v3960_v31 = vld [vmem:[#allocation3 + $0x48] sm:$0xff]  ;;  %12667 = vst [vmem:[#allocation57_spill] sm:$0xff] %v11065_v62 }
 0x341   : > { %3657 = vst.msk [vmem:[#allocation3 + $0x68] sm:$0xff] %vm3608_vm2, %v3625_v11  ;;  %v3626_v46 = vmax.f32 %v3587_v15, 0.0  ;;  %v3958_v60 = vld [vmem:[#allocation3 + $0x38] sm:$0xff] }
 0x342   : > { %3655 = vst.msk [vmem:[#allocation3 + $0x58] sm:$0xff] %vm3608_vm2, %v3623_v57  ;;  %v3624_v21 = vmax.f32 %v3585_v42, 0.0  ;;  %v3961_v61 = vld [vmem:[#allocation3 + $0x50] sm:$0xff] }
 0x343   : > { %3658 = vst.msk [vmem:[#allocation3 + $0x70] sm:$0xff] %vm3608_vm2, %v3626_v46  ;;  %v3959_v8 = vld [vmem:[#allocation3 + $0x40] sm:$0xff]  ;;  %v11028_v44 = vpack.c.bf16 %v3961_v61, %v3960_v31 }
 0x344   : > { %3656 = vst.msk [vmem:[#allocation3 + $0x60] sm:$0xff] %vm3608_vm2, %v3624_v21  ;;  %v8534_v45 = vpop.f32.mrb[12].mxu0  ;;  %v11025_v48 = vpack.c.bf16 %v3959_v8, %v3958_v60  ;;  %v11080_v8 = vpop.permute.xlu1 %3810 }
 0x345   : > { %v3590_v16 = vadd.f32 %v8534_v45, %v10979_v34  ;;  %v3458_v25 = vpop.f32.mrb[13].mxu0  ;;  %12664 = vst [vmem:[#allocation51_spill] sm:$0xff] %v11028_v44  ;;  %12670 = vst [vmem:[#allocation63_spill] sm:$0xff] %v11080_v8 }
 0x346   : > { %12663 = vst [vmem:[#allocation49_spill] sm:$0xff] %v11025_v48  ;;  %v3588_v37 = vadd.f32 %v10979_v34, %v3458_v25  ;;  %v8535_v33 = vpop.f32.mrb[14].mxu0  ;;  %8559 = vmatmul.mubr.msk.bf16.gmra.mrb[36].mxu0 %vm3608_vm2, %v11025_v48 }
 0x347   : > { %v3629_v23 = vmax.f32 %v3590_v16, 0.0  ;;  %v3591_v55 = vadd.f32 %v8535_v33, %v10979_v34  ;;  %v3461_v52 = vpop.f32.mrb[15].mxu0  ;;  %8562 = vmatprep.mubr.msk.bf16.mxu0 %vm3608_vm2, %v11028_v44  ;;  %v11083_v16 = vpop.permute.xlu0 %3805 }
 0x348   : > { %v3627_v36 = vmax.f32 %v3588_v37, 0.0  ;;  %v3589_v56 = vadd.f32 %v10979_v34, %v3461_v52  ;;  %v3964_v24 = vld [vmem:[#allocation3 + $0x68] sm:$0xff] }
 0x349   : > { %3661 = vst.msk [vmem:[#allocation3 + $0x88] sm:$0xff] %vm3608_vm2, %v3629_v23  ;;  %v3630_v19 = vmax.f32 %v3591_v55, 0.0  ;;  %v3962_v50 = vld [vmem:[#allocation3 + $0x58] sm:$0xff] }
 0x34a   : > { %3659 = vst.msk [vmem:[#allocation3 + $0x78] sm:$0xff] %vm3608_vm2, %v3627_v36  ;;  %v3628_v30 = vmax.f32 %v3589_v56, 0.0  ;;  %v3965_v47 = vld [vmem:[#allocation3 + $0x70] sm:$0xff]  ;;  %v4264_v56 = vsel %vm4050_vm3, %v10972_v9, 0 }
 0x34b   : > { %3662 = vst.msk [vmem:[#allocation3 + $0x90] sm:$0xff] %vm3608_vm2, %v3630_v19  ;;  %v3963_v40 = vld [vmem:[#allocation3 + $0x60] sm:$0xff]  ;;  %v11052_v26 = vpack.c.bf16 %v3965_v47, %v3964_v24  ;;  %v11106_v9 = vpop.permute.xlu0 %3815 }
 0x34c   : > { %3660 = vst.msk [vmem:[#allocation3 + $0x80] sm:$0xff] %vm3608_vm2, %v3628_v30  ;;  %v8538_v6 = vpop.f32.mrb[16].mxu0  ;;  %v11047_v10 = vpack.c.bf16 %v3963_v40, %v3962_v50  ;;  %v11099_v40 = vld [vmem:[%s12200_s3 + $0x8] sm:$0xf]  ;;  %12674 = vst [vmem:[#allocation71_spill] sm:$0xff] %v11106_v9 }
 0x34d   : > { %v3594_v27 = vadd.f32 %v8538_v6, %v10979_v34  ;;  %v3474_v32 = vpop.f32.mrb[17].mxu0  ;;  %12666 = vst [vmem:[#allocation55_spill] sm:$0xff] %v11052_v26  ;;  %v11101_v6 = vpop.permute.xlu1 %3820 }
 0x34e   : > { %12665 = vst [vmem:[#allocation53_spill] sm:$0xff] %v11047_v10  ;;  %v3592_v1 = vadd.f32 %v10979_v34, %v3474_v32  ;;  %v8539_v28 = vpop.f32.mrb[18].mxu0  ;;  %8563 = vmatmul.mubr.msk.bf16.gmra.mrb[40].mxu0 %vm3608_vm2, %v11047_v10  ;;  %12673 = vst [vmem:[#allocation69_spill] sm:$0xff] %v11101_v6 }
 0x34f   : > { %v3633_v63 = vmax.f32 %v3594_v27, 0.0  ;;  %v3595_v14 = vadd.f32 %v8539_v28, %v10979_v34  ;;  %v3477_v39 = vpop.f32.mrb[19].mxu0  ;;  %8566 = vmatprep.mubr.msk.bf16.mxu0 %vm3608_vm2, %v11052_v26 }
 0x350   : > { %v3631_v38 = vmax.f32 %v3592_v1, 0.0  ;;  %v3593_v12 = vadd.f32 %v10979_v34, %v3477_v39  ;;  %v3968_v2 = vld [vmem:[#allocation3 + $0x88] sm:$0xff] }
 0x351   : > { %3665 = vst.msk [vmem:[#allocation3 + $0xa8] sm:$0xff] %vm3608_vm2, %v3633_v63  ;;  %v3634_v53 = vmax.f32 %v3595_v14, 0.0  ;;  %v3966_v13 = vld [vmem:[#allocation3 + $0x78] sm:$0xff] }
 0x352   : > { %3663 = vst.msk [vmem:[#allocation3 + $0x98] sm:$0xff] %vm3608_vm2, %v3631_v38  ;;  %v3632_v43 = vmax.f32 %v3593_v12, 0.0  ;;  %v3969_v22 = vld [vmem:[#allocation3 + $0x90] sm:$0xff] }
 0x353   : > { %3666 = vst.msk [vmem:[#allocation3 + $0xb0] sm:$0xff] %vm3608_vm2, %v3634_v53  ;;  %v11068_v4 = vpack.c.bf16 %v3969_v22, %v3968_v2  ;;  %v3967_v35 = vld [vmem:[#allocation3 + $0x80] sm:$0xff]  ;;  %v11117_v2 = vpop.permute.xlu1 %3830 }
 0x354   : > { %3664 = vst.msk [vmem:[#allocation3 + $0xa0] sm:$0xff] %vm3608_vm2, %v3632_v43  ;;  %v8542_v11 = vpop.f32.mrb[20].mxu0  ;;  %v11071_v15 = vpack.c.bf16 %v3967_v35, %v3966_v13  ;;  %12675 = vst [vmem:[#allocation73_spill] sm:$0xff] %v11117_v2 }
 0x355   : > { %12668 = vst [vmem:[#allocation59_spill] sm:$0xff] %v11068_v4  ;;  %v3598_v20 = vadd.f32 %v8542_v11, %v10979_v34  ;;  %v3490_v57 = vpop.f32.mrb[21].mxu0  ;;  %8570 = vmatprep.mubr.msk.bf16.mxu1 %vm3608_vm2, %v11068_v4  ;;  %v11122_v11 = vpop.permute.xlu0 %3825 }
 0x356   : > { %12669 = vst [vmem:[#allocation61_spill] sm:$0xff] %v11071_v15  ;;  %v3596_v42 = vadd.f32 %v10979_v34, %v3490_v57  ;;  %v8543_v46 = vpop.f32.mrb[22].mxu0  ;;  %8567 = vmatmul.mubr.msk.bf16.gmra.mrb[44].mxu0 %vm3608_vm2, %v11071_v15  ;;  %12677 = vst [vmem:[#allocation77_spill] sm:$0xff] %v11122_v11 }
 0x357   : > { %v3637_v21 = vmax.f32 %v3598_v20, 0.0  ;;  %v3599_v61 = vadd.f32 %v8543_v46, %v10979_v34  ;;  %v3493_v60 = vpop.f32.mrb[23].mxu0 }
 0x358   : > { %v3635_v45 = vmax.f32 %v3596_v42, 0.0  ;;  %v3597_v31 = vadd.f32 %v10979_v34, %v3493_v60  ;;  %v3972_v19 = vld [vmem:[#allocation3 + $0xa8] sm:$0xff] }
 0x359   : > { %3669 = vst.msk [vmem:[#allocation3 + $0xc8] sm:$0xff] %vm3608_vm2, %v3637_v21  ;;  %v3638_v25 = vmax.f32 %v3599_v61, 0.0  ;;  %v3970_v23 = vld [vmem:[#allocation3 + $0x98] sm:$0xff] }
 0x35a   : > { %3667 = vst.msk [vmem:[#allocation3 + $0xb8] sm:$0xff] %vm3608_vm2, %v3635_v45  ;;  %v3636_v37 = vmax.f32 %v3597_v31, 0.0  ;;  %v3973_v33 = vld [vmem:[#allocation3 + $0xb0] sm:$0xff] }
 0x35b   : > { %3670 = vst.msk [vmem:[#allocation3 + $0xd0] sm:$0xff] %vm3608_vm2, %v3638_v25  ;;  %v3971_v55 = vld [vmem:[#allocation3 + $0xa0] sm:$0xff]  ;;  %v11094_v50 = vpack.c.bf16 %v3973_v33, %v3972_v19  ;;  %v11135_v33 = vpop.permute.xlu1 %3840  ;;  %v11269_v10 = vld [vmem:[#allocation3 + $0xaf] sm:$0xff]  ;;  %v11272_v44 = vld [vmem:[#allocation3 + $0x97] sm:$0xff] }
 0x35c   : > { %3668 = vst.msk [vmem:[#allocation3 + $0xc0] sm:$0xff] %vm3608_vm2, %v3636_v37  ;;  %v8546_v52 = vpop.f32.mrb[24].mxu0  ;;  %v11089_v36 = vpack.c.bf16 %v3971_v55, %v3970_v23  ;;  %12679 = vst [vmem:[#allocation82_spill] sm:$0xff] %v11135_v33  ;;  %v11264_v15 = vld [vmem:[#allocation3 + $0x9f] sm:$0xff]  ;;  %v11267_v26 = vld [vmem:[#allocation3 + $0xa7] sm:$0xff] }
 0x35d   : > { %v3602_v30 = vadd.f32 %v8546_v52, %v10979_v34  ;;  %v3506_v47 = vpop.f32.mrb[25].mxu0  ;;  %12672 = vst [vmem:[#allocation67_spill] sm:$0xff] %v11094_v50  ;;  %v11138_v52 = vpop.permute.xlu0 %3835  ;;  %12699 = vst [vmem:[#allocation23_spill] sm:$0xff] %v11264_v15  ;;  %v3922_v48 = vmul.f32 %v11135_v33, %v11264_v15 }
 0x35e   : > { %12671 = vst [vmem:[#allocation65_spill] sm:$0xff] %v11089_v36  ;;  %v3600_v24 = vadd.f32 %v10979_v34, %v3506_v47  ;;  %v8547_v27 = vpop.f32.mrb[26].mxu0  ;;  %8571 = vmatmul.mubr.msk.bf16.vlgmr.msra.gmra.mrb[0].mxu1 %vm3608_vm2, %v11089_v36  ;;  %12680 = vst [vmem:[#allocation7_spill] sm:$0xff] %v11138_v52 }
 0x35f   : > { %v3641_v32 = vmax.f32 %v3602_v30, 0.0  ;;  %v3603_v1 = vadd.f32 %v8547_v27, %v10979_v34  ;;  %8587 = vmatpush3.bf16.msra.mxu1 %v4264_v56  ;;  %v3509_v28 = vpop.f32.mrb[27].mxu0  ;;  %8574 = vmatprep.mubr.msk.bf16.mxu1 %vm3608_vm2, %v11094_v50  ;;  %v3679_v27 = vld [vmem:[#allocation3 + $0x7] sm:$0xff]  ;;  %v11250_v50 = vld [vmem:[#allocation3 + $0x77] sm:$0xff]  ;;  %12700 = vst [vmem:[#allocation24_spill] sm:$0xff] %v11267_v26  ;;  %12701 = vst [vmem:[#allocation25_spill] sm:$0xff] %v11269_v10 }
 0x360   : > { %v3639_v63 = vmax.f32 %v3600_v24, 0.0  ;;  %v3601_v14 = vadd.f32 %v10979_v34, %v3509_v28  ;;  %9514 = vmatprep.subr.msk.bf16.mxu1 %vm4050_vm3, %v11099_v40  ;;  %v3976_v35 = vld [vmem:[#allocation3 + $0xc8] sm:$0xff]  ;;  %v3903_v28 = vmul.f32 %v10991_v49, %v3679_v27  ;;  %12696 = vst [vmem:[#allocation20_spill] sm:$0xff] %v11250_v50  ;;  %12702 = vst [vmem:[#allocation26_spill] sm:$0xff] %v11272_v44 }
 0x361   : > { %3673 = vst.msk [vmem:[#allocation3 + $0xe8] sm:$0xff] %vm3608_vm2, %v3641_v32  ;;  %v3642_v39 = vmax.f32 %v3603_v1, 0.0  ;;  %v3974_v53 = vld [vmem:[#allocation3 + $0xb8] sm:$0xff]  ;;  %v3680_v24 = vld [vmem:[#allocation3 + $0xf] sm:$0xff]  ;;  %v11150_v32 = vpop.permute.xlu1 %3850 }
 0x362   : > { %3671 = vst.msk [vmem:[#allocation3 + $0xd8] sm:$0xff] %vm3608_vm2, %v3639_v63  ;;  %v3640_v38 = vmax.f32 %v3601_v14, 0.0  ;;  %v3977_v12 = vld [vmem:[#allocation3 + $0xd0] sm:$0xff]  ;;  %12683 = vst [vmem:[#allocation4_spill] sm:$0xff] %v11150_v32  ;;  %v3904_v1 = vmul.f32 %v10988_v7, %v3680_v24  ;;  %v11154_v63 = vpop.permute.xlu0 %3845 }
 0x363   : > { %3674 = vst.msk [vmem:[#allocation3 + $0xf0] sm:$0xff] %vm3608_vm2, %v3642_v39  ;;  %v3975_v43 = vld [vmem:[#allocation3 + $0xc0] sm:$0xff]  ;;  %v11125_v42 = vpack.c.bf16 %v3977_v12, %v3976_v35  ;;  %12684 = vst [vmem:[#allocation8_spill] sm:$0xff] %v11154_v63  ;;  %v11166_v35 = vld [vmem:[#allocation3 + $0x2f] sm:$0xff] }
 0x364   : > { %3672 = vst.msk [vmem:[#allocation3 + $0xe0] sm:$0xff] %vm3608_vm2, %v3640_v38  ;;  %v8550_v22 = vpop.f32.mrb[28].mxu0  ;;  %v11120_v13 = vpack.c.bf16 %v3975_v43, %v3974_v53  ;;  %v3935_v12 = vpack.c.bf16 %v3904_v1, %v3903_v28  ;;  %v11158_v53 = vld [vmem:[#allocation3 + $0x1f] sm:$0xff]  ;;  %v11289_v33 = vld [vmem:[#allocation3 + $0xc7] sm:$0xff] }
 0x365   : > { %v3606_v20 = vadd.f32 %v8550_v22, %v10979_v34  ;;  %v3522_v57 = vpop.f32.mrb[29].mxu0  ;;  %12678 = vst [vmem:[#allocation79_spill] sm:$0xff] %v11125_v42  ;;  %v11160_v43 = vpop.permute.xlu1 %3860  ;;  %v11164_v22 = vld [vmem:[#allocation3 + $0x27] sm:$0xff]  ;;  %v11286_v5 = vld [vmem:[#allocation3 + $0xbf] sm:$0xff] }
 0x366   : > { %12676 = vst [vmem:[#allocation75_spill] sm:$0xff] %v11120_v13  ;;  %v3604_v46 = vadd.f32 %v10979_v34, %v3522_v57  ;;  %v8551_v21 = vpop.f32.mrb[30].mxu0  ;;  %8575 = vmatmul.mubr.msk.bf16.gmra.mrb[4].mxu1 %vm3608_vm2, %v11120_v13  ;;  %12686 = vst [vmem:[#allocation10_spill] sm:$0xff] %v11160_v43  ;;  %v11171_v57 = vld [vmem:[#allocation3 + $0x17] sm:$0xff] }
 0x367   : > { %v3645_v61 = vmax.f32 %v3606_v20, 0.0  ;;  %v3607_v60 = vadd.f32 %v8551_v21, %v10979_v34  ;;  %v3525_v45 = vpop.f32.mrb[31].mxu0  ;;  %8578 = vmatprep.mubr.msk.bf16.mxu1 %vm3608_vm2, %v11125_v42  ;;  %v11168_v20 = vpop.permute.xlu0 %3855  ;;  %v3907_v21 = vmul.f32 %v11019_v17, %v11164_v22  ;;  %v11245_v42 = vld [vmem:[#allocation3 + $0x8f] sm:$0xff]  ;;  %12705 = vst [vmem:[#allocation29_spill] sm:$0xff] %v11286_v5 }
 0x368   : > { %v3643_v31 = vmax.f32 %v3604_v46, 0.0  ;;  %v3605_v25 = vadd.f32 %v10979_v34, %v3525_v45  ;;  %v3980_v34 = vld [vmem:[#allocation3 + $0xe8] sm:$0xff]  ;;  %12687 = vst [vmem:[#allocation11_spill] sm:$0xff] %v11168_v20  ;;  %v3906_v46 = vmul.f32 %v10998_v54, %v11158_v53 }
 0x369   : > { %3677 = vst.msk [vmem:[#allocation3 + $0x108] sm:$0xff] %vm3608_vm2, %v3645_v61  ;;  %v3646_v37 = vmax.f32 %v3607_v60, 0.0  ;;  %v3978_v56 = vld [vmem:[#allocation3 + $0xd8] sm:$0xff]  ;;  %v3908_v61 = vmul.f32 %v11016_v29, %v11166_v35  ;;  %v3905_v60 = vmul.f32 %v11001_v3, %v11171_v57  ;;  %v11181_v45 = vpop.permute.xlu1 %3870 }
 0x36a   : > { %3675 = vst.msk [vmem:[#allocation3 + $0xf8] sm:$0xff] %vm3608_vm2, %v3643_v31  ;;  %v3644_v23 = vmax.f32 %v3605_v25, 0.0  ;;  %v3981_v55 = vld [vmem:[#allocation3 + $0xf0] sm:$0xff]  ;;  %12688 = vst [vmem:[#allocation12_spill] sm:$0xff] %v11181_v45  ;;  %v4750_v25 = vsel %vm4050_vm3, %v11099_v40, 0 }
 0x36b   : > { %3678 = vst.msk [vmem:[#allocation3 + $0x110] sm:$0xff] %vm3608_vm2, %v3646_v37  ;;  %v3979_v19 = vld [vmem:[#allocation3 + $0xe0] sm:$0xff]  ;;  %v11144_v47 = vpack.c.bf16 %v3981_v55, %v3980_v34  ;;  %v3936_v31 = vpack.c.bf16 %v3906_v46, %v3905_v60  ;;  %v11185_v37 = vpop.permute.xlu0 %3865  ;;  %v11197_v34 = vld [vmem:[#allocation3 + $0x4f] sm:$0xff]  ;;  %v11200_v40 = vld [vmem:[#allocation3 + $0x37] sm:$0xff] }
 0x36c   : > { %3676 = vst.msk [vmem:[#allocation3 + $0x100] sm:$0xff] %vm3608_vm2, %v3644_v23  ;;  %v11142_v30 = vpack.c.bf16 %v3979_v19, %v3978_v56  ;;  %12689 = vst [vmem:[#allocation13_spill] sm:$0xff] %v11185_v37  ;;  %v3937_v23 = vpack.c.bf16 %v3908_v61, %v3907_v21  ;;  %v11187_v55 = vld [vmem:[#allocation3 + $0x3f] sm:$0xff]  ;;  %v11195_v19 = vld [vmem:[#allocation3 + $0x47] sm:$0xff]  ;;  %v3912_v1 = vmul.f32 %v11044_v0, %v11197_v34 }
 0x36d   : > { %12682 = vst [vmem:[#allocation5_spill] sm:$0xff] %v11144_v47  ;;  %v11192_v56 = vld [vmem:[%s12200_s3 + $0xc] sm:$0xf]  ;;  %v3910_v24 = vmul.f32 %v11030_v51, %v11187_v55  ;;  %v3911_v27 = vmul.f32 %v11049_v58, %v11195_v19  ;;  %v11210_v28 = vpop.permute.xlu1 %3880  ;;  %v11219_v61 = vld [vmem:[#allocation3 + $0x67] sm:$0xff]  ;;  %v11221_v60 = vld [vmem:[#allocation3 + $0x6f] sm:$0xff] }
 0x36e   : > { %12681 = vst [vmem:[#allocation6_spill] sm:$0xff] %v11142_v30  ;;  %8579 = vmatmul.mubr.msk.bf16.gmra.mrb[8].mxu1 %vm3608_vm2, %v11142_v30  ;;  %12690 = vst [vmem:[#allocation14_spill] sm:$0xff] %v11210_v28  ;;  %v11216_v21 = vld [vmem:[#allocation3 + $0x5f] sm:$0xff]  ;;  %v11243_v30 = vld [vmem:[#allocation3 + $0x87] sm:$0xff] }
 0x36f   : > { %8582 = vmatprep.mubr.msk.bf16.mxu1 %vm3608_vm2, %v11144_v47  ;;  %v3939_v46 = vpack.c.bf16 %v3912_v1, %v3911_v27  ;;  %v3916_v27 = vmul.f32 %v11080_v8, %v11221_v60 }
 0x371   : > { %v3982_v14 = vld [vmem:[#allocation3 + $0xf8] sm:$0xff] }
 0x373   : > { %v3983_v39 = vld [vmem:[#allocation3 + $0x100] sm:$0xff] }
 0x374   : > { %v11156_v38 = vpack.c.bf16 %v3983_v39, %v3982_v14  ;;  %v3909_v14 = vmul.f32 %v11035_v59, %v11200_v40  ;;  %v11214_v39 = vpop.permute.xlu0 %3875 }
 0x375   : > { %12691 = vst [vmem:[#allocation15_spill] sm:$0xff] %v11214_v39 }
 0x376   : > { %12685 = vst [vmem:[#allocation9_spill] sm:$0xff] %v11156_v38  ;;  %8583 = vmatmul.mubr.msk.bf16.gmra.mrb[12].mxu1 %vm3608_vm2, %v11156_v38 }
 0x377   : > { %8588 = vmatprep.mubr.msk.bf16.mxu1 %vm3608_vm2, %v3935_v12  ;;  %v3938_v12 = vpack.c.bf16 %v3910_v24, %v3909_v14  ;;  %v3915_v24 = vmul.f32 %v11083_v16, %v11219_v61 }
 0x378   : > { %v11230_v38 = vpop.permute.xlu0 %3885 }
 0x379   : > { %12693 = vst [vmem:[#allocation17_spill] sm:$0xff] %v11230_v38 }
 0x37c   : > { %v11247_v13 = vpop.permute.xlu0 %3895 }
 0x37d   : > { %12695 = vst [vmem:[#allocation19_spill] sm:$0xff] %v11247_v13 }
 0x37e   : > { %8589 = vmatmul.mubr.msk.bf16.vlgmr.msra.gmra.mrb[16].mxu1 %vm3608_vm2, %v3936_v31  ;;  %v11224_v31 = vld [vmem:[#allocation3 + $0x57] sm:$0xff] }
 0x37f   : > { %8621 = vmatpush3.bf16.msra.mxu1 %v4750_v25  ;;  %8592 = vmatprep.mubr.msk.bf16.mxu1 %vm3608_vm2, %v3937_v23  ;;  %v11226_v25 = vpop.permute.xlu1 %3890  ;;  %v3914_v23 = vmul.f32 %v11062_v41, %v11216_v21  ;;  %v3913_v1 = vmul.f32 %v11065_v62, %v11224_v31 }
 0x380   : > { %9515 = vmatprep.subr.msk.bf16.mxu1 %vm4050_vm3, %v11192_v56  ;;  %12692 = vst [vmem:[#allocation16_spill] sm:$0xff] %v11226_v25  ;;  %v11262_v4 = vpop.permute.xlu0 %4493 }
 0x381   : > { %v3940_v14 = vpack.c.bf16 %v3914_v23, %v3913_v1  ;;  %v3917_v1 = vmul.f32 %v11106_v9, %v11250_v50  ;;  %12698 = vst [vmem:[#allocation22_spill] sm:$0xff] %v11262_v4 }
 0x383   : > { %v11240_v47 = vpop.permute.xlu1 %3900 }
 0x384   : > { %12694 = vst [vmem:[#allocation18_spill] sm:$0xff] %v11240_v47 }
 0x386   : > { %8593 = vmatmul.mubr.msk.bf16.gmra.mrb[20].mxu1 %vm3608_vm2, %v3938_v12  ;;  %v3941_v12 = vpack.c.bf16 %v3916_v27, %v3915_v24  ;;  %v3919_v24 = vmul.f32 %v11122_v11, %v11243_v30  ;;  %v3920_v27 = vmul.f32 %v11117_v2, %v11245_v42  ;;  %v11291_v11 = vld [vmem:[#allocation3 + $0xcf] sm:$0xff] }
 0x387   : > { %8596 = vmatprep.mubr.msk.bf16.mxu1 %vm3608_vm2, %v3939_v46  ;;  %v11238_v46 = vld [vmem:[#allocation3 + $0x7f] sm:$0xff]  ;;  %12706 = vst [vmem:[#allocation30_spill] sm:$0xff] %v11291_v11 }
 0x388   : > { %v3918_v23 = vmul.f32 %v11101_v6, %v11238_v46 }
 0x38a   : > { %v3942_v36 = vpack.c.bf16 %v3918_v23, %v3917_v1  ;;  %v3923_v23 = vmul.f32 %v11154_v63, %v11267_v26  ;;  %v11284_v1 = vpop.permute.xlu0 %4503  ;;  %v11294_v63 = vld [vmem:[#allocation3 + $0xb7] sm:$0xff] }
 0x38b   : > { %12704 = vst [vmem:[#allocation28_spill] sm:$0xff] %v11284_v1  ;;  %12707 = vst [vmem:[#allocation31_spill] sm:$0xff] %v11294_v63 }
 0x38e   : > { %8597 = vmatmul.mubr.msk.bf16.gmra.mrb[24].mxu1 %vm3608_vm2, %v3940_v14  ;;  %v11260_v14 = vpop.permute.xlu1 %4498 }
 0x38f   : > { %8600 = vmatprep.mubr.msk.bf16.mxu1 %vm3608_vm2, %v3941_v12  ;;  %12697 = vst [vmem:[#allocation21_spill] sm:$0xff] %v11260_v14  ;;  %v3943_v12 = vpack.c.bf16 %v3920_v27, %v3919_v24  ;;  %v3924_v24 = vmul.f32 %v11150_v32, %v11269_v10  ;;  %v3926_v10 = vmul.f32 %v11160_v43, %v11286_v5  ;;  %v11313_v43 = vld [vmem:[#allocation3 + $0xe7] sm:$0xff]  ;;  %v11315_v5 = vld [vmem:[#allocation3 + $0xef] sm:$0xff] }
 0x390   : > { %12712 = vst [vmem:[#allocation36_spill] sm:$0xff] %v11313_v43  ;;  %12713 = vst [vmem:[#allocation37_spill] sm:$0xff] %v11315_v5 }
 0x392   : > { %v11280_v27 = vpop.permute.xlu1 %4508 }
 0x393   : > { %12703 = vst [vmem:[#allocation27_spill] sm:$0xff] %v11280_v27 }
 0x396   : > { %8601 = vmatmul.mubr.msk.bf16.gmra.mrb[28].mxu1 %vm3608_vm2, %v3942_v36  ;;  %v3921_v36 = vmul.f32 %v11138_v52, %v11272_v44  ;;  %v11296_v32 = vpop.permute.xlu1 %4518  ;;  %v11300_v52 = vpop.permute.xlu0 %4513 }
 0x397   : > { %8604 = vmatprep.mubr.msk.bf16.mxu1 %vm3608_vm2, %v3943_v12  ;;  %v3945_v12 = vpack.c.bf16 %v3924_v24, %v3923_v23  ;;  %12708 = vst [vmem:[#allocation32_spill] sm:$0xff] %v11296_v32  ;;  %12709 = vst [vmem:[#allocation33_spill] sm:$0xff] %v11300_v52  ;;  %v3925_v23 = vmul.f32 %v11168_v20, %v11294_v63  ;;  %v11334_v20 = vld [vmem:[#allocation3 + $0xff] sm:$0xff] }
 0x398   : > { %v3944_v18 = vpack.c.bf16 %v3922_v48, %v3921_v36  ;;  %v3927_v48 = vmul.f32 %v11185_v37, %v11289_v33  ;;  %v11320_v37 = vld [vmem:[#allocation3 + $0xd7] sm:$0xff] }
 0x399   : > { %v3946_v24 = vpack.c.bf16 %v3926_v10, %v3925_v23  ;;  %12715 = vst [vmem:[#allocation39_spill] sm:$0xff] %v11320_v37  ;;  %v3929_v23 = vmul.f32 %v11214_v39, %v11320_v37  ;;  %v11352_v37 = vld [vmem:[#allocation3 + $0x21] sm:$0xff] }
 0x39a   : > { %v11310_v26 = vpop.permute.xlu1 %4528  ;;  %v11317_v44 = vpop.permute.xlu0 %4523  ;;  %12721 = vst [vmem:[#allocation48_spill] sm:$0xff] %v11352_v37 }
 0x39b   : > { %12711 = vst [vmem:[#allocation35_spill] sm:$0xff] %v11310_v26  ;;  %12714 = vst [vmem:[#allocation38_spill] sm:$0xff] %v11317_v44 }
 0x39e   : > { %8605 = vmatmul.mubr.msk.bf16.gmra.mrb[0].mxu1 %vm3608_vm2, %v3944_v18  ;;  %v3928_v18 = vmul.f32 %v11181_v45, %v11291_v11  ;;  %v11332_v11 = vpop.permute.xlu0 %4533 }
 0x39f   : > { %8608 = vmatprep.mubr.msk.bf16.mxu1 %vm3608_vm2, %v3945_v12  ;;  %v11308_v12 = vld [vmem:[#allocation3 + $0xdf] sm:$0xff]  ;;  %12717 = vst [vmem:[#allocation41_spill] sm:$0xff] %v11332_v11 }
 0x3a0   : > { %v3947_v36 = vpack.c.bf16 %v3928_v18, %v3927_v48  ;;  %12710 = vst [vmem:[#allocation34_spill] sm:$0xff] %v11308_v12  ;;  %v3930_v10 = vmul.f32 %v11210_v28, %v11308_v12  ;;  %v3931_v48 = vmul.f32 %v11230_v38, %v11313_v43  ;;  %v3932_v18 = vmul.f32 %v11226_v25, %v11315_v5  ;;  %v4428_v28 = vld [vmem:[#allocation3 + $0x11] sm:$0xff]  ;;  %v4427_v43 = vld [vmem:[#allocation3 + $0x9] sm:$0xff] }
 0x3a1   : > { %v11338_v38 = vld [vmem:[#allocation3 + $0xf7] sm:$0xff]  ;;  %v3934_v25 = vmul.f32 %v11240_v47, %v11334_v20  ;;  %v4652_v5 = vmul.f32 %v11260_v14, %v4428_v28 }
 0x3a2   : > { %v3948_v45 = vpack.c.bf16 %v3930_v10, %v3929_v23  ;;  %12718 = vst [vmem:[#allocation42_spill] sm:$0xff] %v11338_v38  ;;  %v3933_v10 = vmul.f32 %v11247_v13, %v11338_v38  ;;  %v11355_v47 = vld [vmem:[#allocation3 + $0x31] sm:$0xff]  ;;  %v11374_v13 = vld [vmem:[#allocation3 + $0x39] sm:$0xff] }
 0x3a6   : > { %8609 = vmatmul.mubr.msk.bf16.gmra.mrb[4].mxu1 %vm3608_vm2, %v3946_v24  ;;  %v11330_v24 = vpop.permute.xlu1 %4538 }
 0x3a7   : > { %8612 = vmatprep.mubr.msk.bf16.mxu1 %vm3608_vm2, %v3947_v36  ;;  %12716 = vst [vmem:[#allocation40_spill] sm:$0xff] %v11330_v24  ;;  %v3949_v36 = vpack.c.bf16 %v3932_v18, %v3931_v48  ;;  %v4651_v48 = vmul.f32 %v11262_v4, %v4427_v43  ;;  %v11348_v18 = vpop.permute.xlu0 %4543  ;;  %v4654_v43 = vmul.f32 %v11280_v27, %v11352_v37  ;;  %v11381_v27 = vld [vmem:[%s12200_s3 + $0x10] sm:$0xf] }
 0x3a8   : > { %12720 = vst [vmem:[#allocation46_spill] sm:$0xff] %v11348_v18 }
 0x3a9   : > { %v4683_v23 = vpack.c.bf16 %v4652_v5, %v4651_v48 }
 0x3aa   : > { %v11343_v39 = vpop.permute.xlu1 %4548 }
 0x3ab   : > { %12719 = vst [vmem:[#allocation44_spill] sm:$0xff] %v11343_v39  ;;  %v11366_v5 = vpop.permute.xlu0 %4553 }
 0x3ac   : > { %12724 = vst [vmem:[#allocation54_spill] sm:$0xff] %v11366_v5 }
 0x3ae   : > { %8613 = vmatmul.mubr.msk.bf16.gmra.mrb[8].mxu1 %vm3608_vm2, %v3948_v45  ;;  %v3950_v45 = vpack.c.bf16 %v3934_v25, %v3933_v10  ;;  %v11358_v28 = vpop.permute.xlu1 %4558  ;;  %v11364_v25 = vld [vmem:[#allocation3 + $0x29] sm:$0xff]  ;;  %v4656_v10 = vmul.f32 %v11296_v32, %v11355_v47  ;;  %v11386_v32 = vld [vmem:[#allocation3 + $0x51] sm:$0xff] }
 0x3af   : > { %8616 = vmatprep.mubr.msk.bf16.mxu1 %vm3608_vm2, %v3949_v36  ;;  %v11350_v36 = vld [vmem:[#allocation3 + $0x19] sm:$0xff]  ;;  %12722 = vst [vmem:[#allocation50_spill] sm:$0xff] %v11358_v28  ;;  %12723 = vst [vmem:[#allocation52_spill] sm:$0xff] %v11364_v25  ;;  %v4655_v48 = vmul.f32 %v11300_v52, %v11364_v25 }
 0x3b0   : > { %v4653_v14 = vmul.f32 %v11284_v1, %v11350_v36  ;;  %v11376_v1 = vld [vmem:[#allocation3 + $0x41] sm:$0xff]  ;;  %12727 = vst [vmem:[#allocation60_spill] sm:$0xff] %v11386_v32  ;;  %v11407_v52 = vld [vmem:[#allocation3 + $0x59] sm:$0xff] }
 0x3b1   : > { %v4685_v4 = vpack.c.bf16 %v4656_v10, %v4655_v48  ;;  %12725 = vst [vmem:[#allocation56_spill] sm:$0xff] %v11376_v1  ;;  %v11395_v10 = vld [vmem:[#allocation3 + $0x49] sm:$0xff]  ;;  %v4660_v48 = vmul.f32 %v11330_v24, %v11386_v32  ;;  %v4661_v24 = vmul.f32 %v11348_v18, %v11407_v52  ;;  %v11429_v32 = vld [vmem:[#allocation3 + $0x79] sm:$0xff]  ;;  %v11431_v18 = vld [vmem:[#allocation3 + $0x81] sm:$0xff] }
 0x3b2   : > { %v11383_v37 = vpop.permute.xlu1 %4568  ;;  %12729 = vst [vmem:[#allocation64_spill] sm:$0xff] %v11395_v10  ;;  %12737 = vst [vmem:[#allocation80_spill] sm:$0xff] %v11431_v18 }
 0x3b3   : > { %12726 = vst [vmem:[#allocation58_spill] sm:$0xff] %v11383_v37 }
 0x3b6   : > { %8617 = vmatmul.mubr.msk.bf16.gmra.mrb[12].mxu1 %vm3608_vm2, %v3950_v45  ;;  %v4684_v45 = vpack.c.bf16 %v4654_v43, %v4653_v14  ;;  %v11388_v14 = vpop.permute.xlu0 %4563  ;;  %v4658_v43 = vmul.f32 %v11310_v26, %v11376_v1  ;;  %v11409_v26 = vld [vmem:[#allocation3 + $0x61] sm:$0xff]  ;;  %v11412_v1 = vld [vmem:[#allocation3 + $0x71] sm:$0xff] }
 0x3b7   : > { %8622 = vmatprep.mubr.msk.bf16.mxu1 %vm3608_vm2, %v4683_v23  ;;  %v5076_v23 = vsel %vm4050_vm3, %v11192_v56, 0  ;;  %12728 = vst [vmem:[#allocation62_spill] sm:$0xff] %v11388_v14  ;;  %v4657_v56 = vmul.f32 %v11317_v44, %v11374_v13  ;;  %12732 = vst [vmem:[#allocation70_spill] sm:$0xff] %v11409_v26 }
 0x3b8   : > { %12733 = vst [vmem:[#allocation72_spill] sm:$0xff] %v11412_v1 }
 0x3ba   : > { %v11405_v25 = vpop.permute.xlu0 %4573 }
 0x3bb   : > { %12731 = vst [vmem:[#allocation68_spill] sm:$0xff] %v11405_v25 }
 0x3be   : > { %8623 = vmatmul.mubr.msk.bf16.vlgmr.msra.gmra.mrb[16].mxu1 %vm3608_vm2, %v4684_v45  ;;  %v4659_v45 = vmul.f32 %v11332_v11, %v11395_v10  ;;  %v4662_v10 = vmul.f32 %v11343_v39, %v11409_v26  ;;  %v11434_v39 = vld [vmem:[#allocation3 + $0x91] sm:$0xff]  ;;  %v11453_v26 = vld [vmem:[#allocation3 + $0xa1] sm:$0xff] }
 0x3bf   : > { %8655 = vmatpush3.bf16.msra.mxu1 %v5076_v23  ;;  %8626 = vmatprep.mubr.msk.bf16.mxu1 %vm3608_vm2, %v4685_v4  ;;  %v11403_v23 = vpop.permute.xlu1 %4578  ;;  %v4686_v4 = vpack.c.bf16 %v4658_v43, %v4657_v56  ;;  %v11419_v56 = vld [vmem:[#allocation3 + $0x69] sm:$0xff]  ;;  %v4664_v43 = vmul.f32 %v11358_v28, %v11412_v1  ;;  %12738 = vst [vmem:[#allocation81_spill] sm:$0xff] %v11434_v39 }
 0x3c0   : > { %9516 = vmatprep.subr.msk.bf16.mxu1 %vm4050_vm3, %v11381_v27  ;;  %12730 = vst [vmem:[#allocation66_spill] sm:$0xff] %v11403_v23  ;;  %v4687_v44 = vpack.c.bf16 %v4660_v48, %v4659_v45  ;;  %12734 = vst [vmem:[#allocation74_spill] sm:$0xff] %v11419_v56  ;;  %v11425_v45 = vpop.permute.xlu0 %4583  ;;  %v4688_v11 = vpack.c.bf16 %v4662_v10, %v4661_v24  ;;  %v4665_v1 = vmul.f32 %v11388_v14, %v11429_v32  ;;  %v11443_v24 = vld [vmem:[#allocation3 + $0x89] sm:$0xff] }
 0x3c1   : > { %12736 = vst [vmem:[#allocation78_spill] sm:$0xff] %v11425_v45  ;;  %12740 = vst [vmem:[#allocation84_spill] sm:$0xff] %v11443_v24 }
 0x3c3   : > { %v11423_v48 = vpop.permute.xlu1 %4588 }
 0x3c4   : > { %12735 = vst [vmem:[#allocation76_spill] sm:$0xff] %v11423_v48  ;;  %v11445_v10 = vpop.permute.xlu0 %4593 }
 0x3c5   : > { %12741 = vst [vmem:[#allocation85_spill] sm:$0xff] %v11445_v10 }
 0x3c6   : > { %8627 = vmatmul.mubr.msk.bf16.gmra.mrb[20].mxu1 %vm3608_vm2, %v4686_v4  ;;  %v4663_v4 = vmul.f32 %v11366_v5, %v11419_v56  ;;  %v4666_v56 = vmul.f32 %v11383_v37, %v11431_v18  ;;  %v11451_v5 = vld [vmem:[#allocation3 + $0x99] sm:$0xff]  ;;  %v11458_v37 = vld [vmem:[#allocation3 + $0xb1] sm:$0xff] }
 0x3c7   : > { %8630 = vmatprep.mubr.msk.bf16.mxu1 %vm3608_vm2, %v4687_v44  ;;  %v11437_v28 = vpop.permute.xlu1 %4598  ;;  %12743 = vst [vmem:[#allocation87_spill] sm:$0xff] %v11458_v37 }
 0x3c8   : > { %v4689_v44 = vpack.c.bf16 %v4664_v43, %v4663_v4  ;;  %12739 = vst [vmem:[#allocation83_spill] sm:$0xff] %v11437_v28  ;;  %v4668_v43 = vmul.f32 %v11403_v23, %v11434_v39  ;;  %v4690_v4 = vpack.c.bf16 %v4666_v56, %v4665_v1  ;;  %v11460_v18 = vpop.permute.xlu0 %4603  ;;  %v4669_v23 = vmul.f32 %v11425_v45, %v11451_v5  ;;  %v11467_v56 = vld [vmem:[#allocation3 + $0xa9] sm:$0xff]  ;;  %v11477_v39 = vld [vmem:[#allocation3 + $0xb9] sm:$0xff]  ;;  %v11479_v45 = vld [vmem:[#allocation3 + $0xc1] sm:$0xff] }
 0x3c9   : > { %12744 = vst [vmem:[#allocation88_spill] sm:$0xff] %v11460_v18  ;;  %v4670_v1 = vmul.f32 %v11423_v48, %v11453_v26  ;;  %12745 = vst [vmem:[#allocation89_spill] sm:$0xff] %v11467_v56  ;;  %v11482_v48 = vld [vmem:[#allocation3 + $0xd1] sm:$0xff] }
 0x3ca   : > { %12748 = vst [vmem:[#allocation92_spill] sm:$0xff] %v11479_v45  ;;  %12749 = vst [vmem:[#allocation93_spill] sm:$0xff] %v11482_v48 }
 0x3cb   : > { %v11455_v14 = vpop.permute.xlu1 %4608 }
 0x3cc   : > { %12742 = vst [vmem:[#allocation86_spill] sm:$0xff] %v11455_v14 }
 0x3ce   : > { %8631 = vmatmul.mubr.msk.bf16.gmra.mrb[24].mxu1 %vm3608_vm2, %v4688_v11  ;;  %v4667_v11 = vmul.f32 %v11405_v25, %v11443_v24  ;;  %v4692_v24 = vpack.c.bf16 %v4670_v1, %v4669_v23  ;;  %v11475_v25 = vpop.permute.xlu0 %4613  ;;  %v11489_v23 = vld [vmem:[#allocation3 + $0xc9] sm:$0xff] }
 0x3cf   : > { %8634 = vmatprep.mubr.msk.bf16.mxu1 %vm3608_vm2, %v4689_v44  ;;  %12747 = vst [vmem:[#allocation91_spill] sm:$0xff] %v11475_v25  ;;  %12750 = vst [vmem:[#allocation94_spill] sm:$0xff] %v11489_v23 }
 0x3d0   : > { %v4691_v44 = vpack.c.bf16 %v4668_v43, %v4667_v11  ;;  %v4672_v43 = vmul.f32 %v11437_v28, %v11458_v37  ;;  %v4671_v11 = vmul.f32 %v11445_v10, %v11467_v56  ;;  %v4673_v28 = vmul.f32 %v11460_v18, %v11477_v39  ;;  %v11499_v37 = vld [vmem:[#allocation3 + $0xd9] sm:$0xff]  ;;  %v11501_v18 = vld [vmem:[#allocation3 + $0xe1] sm:$0xff] }
 0x3d1   : > { %v4674_v56 = vmul.f32 %v11455_v14, %v11479_v45  ;;  %v11504_v14 = vld [vmem:[#allocation3 + $0xf1] sm:$0xff]  ;;  %v11523_v45 = vld [vmem:[#allocation3 + $0x101] sm:$0xff] }
 0x3d3   : > { %v4694_v10 = vpack.c.bf16 %v4674_v56, %v4673_v28  ;;  %v11513_v28 = vld [vmem:[#allocation3 + $0xe9] sm:$0xff] }
 0x3d4   : > { %12754 = vst [vmem:[#allocation98_spill] sm:$0xff] %v11513_v28 }
 0x3d6   : > { %8635 = vmatmul.mubr.msk.bf16.gmra.mrb[28].mxu1 %vm3608_vm2, %v4690_v4  ;;  %v11473_v4 = vpop.permute.xlu1 %4618 }
 0x3d7   : > { %8638 = vmatprep.mubr.msk.bf16.mxu1 %vm3608_vm2, %v4691_v44  ;;  %12746 = vst [vmem:[#allocation90_spill] sm:$0xff] %v11473_v4  ;;  %v4693_v44 = vpack.c.bf16 %v4672_v43, %v4671_v11  ;;  %v4676_v1 = vmul.f32 %v11473_v4, %v11482_v48  ;;  %v11495_v11 = vpop.permute.xlu0 %4623 }
 0x3d8   : > { %12752 = vst [vmem:[#allocation96_spill] sm:$0xff] %v11495_v11  ;;  %v4677_v48 = vmul.f32 %v11495_v11, %v11499_v37 }
 0x3da   : > { %v11493_v43 = vpop.permute.xlu1 %4628 }
 0x3db   : > { %12751 = vst [vmem:[#allocation95_spill] sm:$0xff] %v11493_v43  ;;  %v11515_v56 = vpop.permute.xlu0 %4633 }
 0x3de   : > { %8639 = vmatmul.mubr.msk.bf16.gmra.mrb[0].mxu1 %vm3608_vm2, %v4692_v24  ;;  %v4675_v24 = vmul.f32 %v11475_v25, %v11489_v23  ;;  %v11507_v4 = vpop.permute.xlu1 %4638  ;;  %v4678_v23 = vmul.f32 %v11493_v43, %v11501_v18  ;;  %v11521_v25 = vld [vmem:[#allocation3 + $0xf9] sm:$0xff] }
 0x3df   : > { %8642 = vmatprep.mubr.msk.bf16.mxu1 %vm3608_vm2, %v4693_v44  ;;  %12753 = vst [vmem:[#allocation97_spill] sm:$0xff] %v11507_v4  ;;  %v11528_v43 = vpop.permute.xlu0 %4643 }
 0x3e0   : > { %v4695_v44 = vpack.c.bf16 %v4676_v1, %v4675_v24  ;;  %v4680_v1 = vmul.f32 %v11507_v4, %v11504_v14  ;;  %v4696_v24 = vpack.c.bf16 %v4678_v23, %v4677_v48  ;;  %v4681_v4 = vmul.f32 %v11528_v43, %v11521_v25 }
 0x3e1   : > { %v4978_v48 = vmul.f32 %v10988_v7, %v11158_v53  ;;  %v4977_v23 = vmul.f32 %v10991_v49, %v11171_v57  ;;  %v4981_v53 = vmul.f32 %v11019_v17, %v11200_v40  ;;  %v5370_v57 = vsel %vm4050_vm3, %v11381_v27, 0 }
 0x3e2   : > { %v11526_v11 = vpop.permute.xlu1 %4648  ;;  %v4986_v27 = vmul.f32 %v11044_v0, %v11216_v21 }
 0x3e3   : > { %12755 = vst [vmem:[#allocation99_spill] sm:$0xff] %v11526_v11 }
 0x3e6   : > { %8643 = vmatmul.mubr.msk.bf16.gmra.mrb[4].mxu1 %vm3608_vm2, %v4694_v10  ;;  %v4679_v10 = vmul.f32 %v11515_v56, %v11513_v28  ;;  %v4682_v28 = vmul.f32 %v11526_v11, %v11523_v45  ;;  %v4982_v11 = vmul.f32 %v11016_v29, %v11187_v55 }
 0x3e7   : > { %8646 = vmatprep.mubr.msk.bf16.mxu1 %vm3608_vm2, %v4695_v44 }
 0x3e8   : > { %v4697_v44 = vpack.c.bf16 %v4680_v1, %v4679_v10  ;;  %v4698_v1 = vpack.c.bf16 %v4682_v28, %v4681_v4  ;;  %v5009_v10 = vpack.c.bf16 %v4978_v48, %v4977_v23  ;;  %v5011_v4 = vpack.c.bf16 %v4982_v11, %v4981_v53  ;;  %v11554_v28 = vld [vmem:[%s12200_s3 + $0x14] sm:$0xf] }
 0x3e9   : > { %v4983_v48 = vmul.f32 %v11035_v59, %v11195_v19  ;;  %v4984_v23 = vmul.f32 %v11030_v51, %v11197_v34  ;;  %v4985_v11 = vmul.f32 %v11049_v58, %v11224_v31  ;;  %v4989_v53 = vmul.f32 %v11083_v16, %v11250_v50  ;;  %v12768_v50 = vld [vmem:[#allocation4_spill] sm:$0xff] }
 0x3ee   : > { %8647 = vmatmul.mubr.msk.bf16.gmra.mrb[8].mxu1 %vm3608_vm2, %v4696_v24  ;;  %v4979_v24 = vmul.f32 %v11001_v3, %v11164_v22 }
 0x3ef   : > { %8650 = vmatprep.mubr.msk.bf16.mxu1 %vm3608_vm2, %v4697_v44  ;;  %v4980_v44 = vmul.f32 %v10998_v54, %v11166_v35 }
 0x3f1   : > { %v5010_v7 = vpack.c.bf16 %v4980_v44, %v4979_v24  ;;  %v4988_v24 = vmul.f32 %v11062_v41, %v11221_v60  ;;  %v4990_v44 = vmul.f32 %v11080_v8, %v11238_v46 }
 0x3f6   : > { %8651 = vmatmul.mubr.msk.bf16.gmra.mrb[12].mxu1 %vm3608_vm2, %v4698_v1  ;;  %v5012_v1 = vpack.c.bf16 %v4984_v23, %v4983_v48  ;;  %v4991_v48 = vmul.f32 %v11106_v9, %v11243_v30  ;;  %v4992_v23 = vmul.f32 %v11101_v6, %v11245_v42  ;;  %v12762_v9 = vld [vmem:[#allocation24_spill] sm:$0xff] }
 0x3f7   : > { %8656 = vmatprep.mubr.msk.bf16.mxu1 %vm3608_vm2, %v5009_v10  ;;  %v4987_v10 = vmul.f32 %v11065_v62, %v11219_v61  ;;  %v12764_v62 = vld [vmem:[#allocation25_spill] sm:$0xff] }
 0x3fe   : > { %8657 = vmatmul.mubr.msk.bf16.vlgmr.msra.gmra.mrb[16].mxu1 %vm3608_vm2, %v5010_v7  ;;  %v5013_v7 = vpack.c.bf16 %v4986_v27, %v4985_v11  ;;  %v4994_v11 = vmul.f32 %v11117_v2, %v11264_v15  ;;  %v12765_v2 = vld [vmem:[#allocation82_spill] sm:$0xff] }
 0x3ff   : > { %8689 = vmatpush3.bf16.msra.mxu1 %v5370_v57  ;;  %8660 = vmatprep.mubr.msk.bf16.mxu1 %vm3608_vm2, %v5011_v4  ;;  %v5014_v57 = vpack.c.bf16 %v4988_v24, %v4987_v10  ;;  %v5015_v4 = vpack.c.bf16 %v4990_v44, %v4989_v53  ;;  %v12759_v10 = vld [vmem:[#allocation26_spill] sm:$0xff]  ;;  %v12760_v24 = vld [vmem:[#allocation77_spill] sm:$0xff]  ;;  %v4996_v15 = vmul.f32 %v12765_v2, %v12764_v62 }
 0x400   : > { %9517 = vmatprep.subr.msk.bf16.mxu1 %vm4050_vm3, %v11554_v28  ;;  %v4993_v44 = vmul.f32 %v12760_v24, %v12759_v10 }
 0x406   : > { %8661 = vmatmul.mubr.msk.bf16.gmra.mrb[20].mxu1 %vm3608_vm2, %v5012_v1 }
 0x407   : > { %8664 = vmatprep.mubr.msk.bf16.mxu1 %vm3608_vm2, %v5013_v7 }
 0x40e   : > { %8665 = vmatmul.mubr.msk.bf16.gmra.mrb[24].mxu1 %vm3608_vm2, %v5014_v57  ;;  %v5016_v57 = vpack.c.bf16 %v4992_v23, %v4991_v48  ;;  %v12771_v48 = vld [vmem:[#allocation8_spill] sm:$0xff] }
 0x40f   : > { %8668 = vmatprep.mubr.msk.bf16.mxu1 %vm3608_vm2, %v5015_v4  ;;  %v5017_v4 = vpack.c.bf16 %v4994_v11, %v4993_v44  ;;  %v4997_v23 = vmul.f32 %v12771_v48, %v11294_v63 }
 0x411   : > { %v11584_v27 = vpop.f32.mrb[32].mxu0 }
 0x412   : > { %12756 = vst [vmem:[#allocation100_spill] sm:$0xff] %v11584_v27  ;;  %v11588_v1 = vpop.f32.mrb[33].mxu0  ;;  %v12763_v27 = vld [vmem:[#allocation7_spill] sm:$0xff] }
 0x413   : > { %12757 = vst [vmem:[#allocation101_spill] sm:$0xff] %v11588_v1  ;;  %v11590_v7 = vpop.f32.mrb[34].mxu0  ;;  %v4995_v6 = vmul.f32 %v12763_v27, %v12762_v9  ;;  %v12774_v27 = vld [vmem:[#allocation30_spill] sm:$0xff] }
 0x414   : > { %12758 = vst [vmem:[#allocation102_spill] sm:$0xff] %v11590_v7  ;;  %v11594_v53 = vpop.f32.mrb[35].mxu0  ;;  %v12767_v7 = vld [vmem:[#allocation29_spill] sm:$0xff] }
 0x415   : > { %12761 = vst [vmem:[#allocation77_spill] sm:$0xff] %v11594_v53  ;;  %v4998_v8 = vmul.f32 %v12768_v50, %v12767_v7  ;;  %v5018_v44 = vpack.c.bf16 %v4996_v15, %v4995_v6  ;;  %v12775_v50 = vld [vmem:[#allocation10_spill] sm:$0xff]  ;;  %v12780_v15 = vld [vmem:[#allocation39_spill] sm:$0xff] }
 0x416   : > { %8669 = vmatmul.mubr.msk.bf16.gmra.mrb[28].mxu1 %vm3608_vm2, %v5016_v57  ;;  %v5000_v2 = vmul.f32 %v12775_v50, %v12774_v27  ;;  %v12785_v27 = vld [vmem:[#allocation37_spill] sm:$0xff] }
 0x417   : > { %8672 = vmatprep.mubr.msk.bf16.mxu1 %vm3608_vm2, %v5017_v4  ;;  %v5019_v57 = vpack.c.bf16 %v4998_v8, %v4997_v23  ;;  %v12773_v4 = vld [vmem:[#allocation11_spill] sm:$0xff]  ;;  %v12781_v8 = vld [vmem:[#allocation13_spill] sm:$0xff] }
 0x418   : > { %v5001_v6 = vmul.f32 %v12781_v8, %v12780_v15 }
 0x419   : > { %v11602_v1 = vpop.f32.mrb[36].mxu0 }
 0x41a   : > { %12766 = vst [vmem:[#allocation24_spill] sm:$0xff] %v11602_v1  ;;  %v11606_v10 = vpop.f32.mrb[37].mxu0  ;;  %v4999_v1 = vmul.f32 %v12773_v4, %v11289_v33  ;;  %v12783_v4 = vld [vmem:[#allocation36_spill] sm:$0xff] }
 0x41b   : > { %12769 = vst [vmem:[#allocation25_spill] sm:$0xff] %v11606_v10  ;;  %v11608_v53 = vpop.f32.mrb[38].mxu0 }
 0x41c   : > { %12770 = vst [vmem:[#allocation103_spill] sm:$0xff] %v11608_v53  ;;  %v11612_v11 = vpop.f32.mrb[39].mxu0  ;;  %v12777_v53 = vld [vmem:[#allocation12_spill] sm:$0xff] }
 0x41d   : > { %12772 = vst [vmem:[#allocation104_spill] sm:$0xff] %v11612_v11  ;;  %v5002_v7 = vmul.f32 %v12777_v53, %v11308_v12  ;;  %v12786_v53 = vld [vmem:[#allocation14_spill] sm:$0xff] }
 0x41e   : > { %8673 = vmatmul.mubr.msk.bf16.gmra.mrb[0].mxu1 %vm3608_vm2, %v5018_v44  ;;  %v5020_v44 = vpack.c.bf16 %v5000_v2, %v4999_v1  ;;  %v5004_v12 = vmul.f32 %v12786_v53, %v12785_v27  ;;  %v12791_v2 = vld [vmem:[#allocation17_spill] sm:$0xff] }
 0x41f   : > { %8676 = vmatprep.mubr.msk.bf16.mxu1 %vm3608_vm2, %v5019_v57  ;;  %v5021_v57 = vpack.c.bf16 %v5002_v7, %v5001_v6  ;;  %v5005_v1 = vmul.f32 %v12791_v2, %v11338_v38 }
 0x421   : > { %v11620_v10 = vpop.f32.mrb[40].mxu0 }
 0x422   : > { %12776 = vst [vmem:[#allocation105_spill] sm:$0xff] %v11620_v10  ;;  %v11624_v63 = vpop.f32.mrb[41].mxu0  ;;  %v12784_v10 = vld [vmem:[#allocation15_spill] sm:$0xff] }
 0x423   : > { %12778 = vst [vmem:[#allocation106_spill] sm:$0xff] %v11624_v63  ;;  %v11626_v11 = vpop.f32.mrb[42].mxu0  ;;  %v5003_v50 = vmul.f32 %v12784_v10, %v12783_v4  ;;  %v11652_v10 = vld [vmem:[#allocation3 + $0x10f] sm:$0xff] }
 0x424   : > { %12779 = vst [vmem:[#allocation107_spill] sm:$0xff] %v11626_v11  ;;  %v11630_v23 = vpop.f32.mrb[43].mxu0  ;;  %v12788_v11 = vld [vmem:[#allocation16_spill] sm:$0xff]  ;;  %12794 = vst [vmem:[#allocation111_spill] sm:$0xff] %v11652_v10 }
 0x425   : > { %12782 = vst [vmem:[#allocation13_spill] sm:$0xff] %v11630_v23  ;;  %v5006_v48 = vmul.f32 %v12788_v11, %v11334_v20  ;;  %v5022_v6 = vpack.c.bf16 %v5004_v12, %v5003_v50  ;;  %v12796_v11 = vld [vmem:[#allocation18_spill] sm:$0xff]  ;;  %v5696_v50 = vsel %vm4050_vm3, %v11554_v28, 0  ;;  %v7850_v12 = vld [vmem:[%s12200_s3 + $0x18] sm:$0xf] }
 0x426   : > { %8677 = vmatmul.mubr.msk.bf16.gmra.mrb[4].mxu1 %vm3608_vm2, %v5020_v44  ;;  %v12802_v28 = vld [vmem:[#allocation55_spill] sm:$0xff] }
 0x427   : > { %8680 = vmatprep.mubr.msk.bf16.mxu1 %vm3608_vm2, %v5021_v57  ;;  %v5023_v44 = vpack.c.bf16 %v5006_v48, %v5005_v1  ;;  %v11650_v57 = vld [vmem:[#allocation3 + $0x107] sm:$0xff]  ;;  %v12799_v1 = vld [vmem:[#allocation49_spill] sm:$0xff] }
 0x428   : > { %12793 = vst [vmem:[#allocation110_spill] sm:$0xff] %v11650_v57  ;;  %v12798_v48 = vld [vmem:[#allocation47_spill] sm:$0xff] }
 0x429   : > { %v11638_v63 = vpop.f32.mrb[44].mxu0 }
 0x42a   : > { %12787 = vst [vmem:[#allocation36_spill] sm:$0xff] %v11638_v63  ;;  %v11642_v15 = vpop.f32.mrb[45].mxu0  ;;  %v12795_v63 = vld [vmem:[#allocation19_spill] sm:$0xff] }
 0x42b   : > { %12789 = vst [vmem:[#allocation37_spill] sm:$0xff] %v11642_v15  ;;  %v11644_v23 = vpop.f32.mrb[46].mxu0  ;;  %v5007_v15 = vmul.f32 %v11650_v57, %v12795_v63  ;;  %v12820_v57 = vld [vmem:[#allocation52_spill] sm:$0xff] }
 0x42c   : > { %12790 = vst [vmem:[#allocation108_spill] sm:$0xff] %v11644_v23  ;;  %v11648_v7 = vpop.f32.mrb[47].mxu0  ;;  %v5008_v23 = vmul.f32 %v11652_v10, %v12796_v11  ;;  %v12818_v10 = vld [vmem:[#allocation56_spill] sm:$0xff] }
 0x42d   : > { %12792 = vst [vmem:[#allocation109_spill] sm:$0xff] %v11648_v7  ;;  %v12797_v7 = vld [vmem:[#allocation45_spill] sm:$0xff] }
 0x42e   : > { %8681 = vmatmul.mubr.msk.bf16.gmra.mrb[8].mxu1 %vm3608_vm2, %v5022_v6  ;;  %v5024_v53 = vpack.c.bf16 %v5008_v23, %v5007_v15  ;;  %v12801_v15 = vld [vmem:[#allocation53_spill] sm:$0xff] }
 0x42f   : > { %8684 = vmatprep.mubr.msk.bf16.mxu1 %vm3608_vm2, %v5023_v44  ;;  %v12803_v23 = vld [vmem:[#allocation61_spill] sm:$0xff]  ;;  %v12806_v44 = vld [vmem:[#allocation67_spill] sm:$0xff] }
 0x430   : > { %v12805_v6 = vld [vmem:[#allocation65_spill] sm:$0xff] }
 0x436   : > { %8685 = vmatmul.mubr.msk.bf16.gmra.mrb[12].mxu1 %vm3608_vm2, %v5024_v53  ;;  %v12800_v53 = vld [vmem:[#allocation51_spill] sm:$0xff] }
 0x437   : > { %8690 = vmatprep.mubr.msk.bf16.mxu1 %vm3608_vm2, %v12797_v7  ;;  %v12804_v7 = vld [vmem:[#allocation59_spill] sm:$0xff] }
 0x43e   : > { %8691 = vmatmul.mubr.msk.bf16.vlgmr.msra.gmra.mrb[16].mxu1 %vm3608_vm2, %v12798_v48  ;;  %v12808_v48 = vld [vmem:[#allocation79_spill] sm:$0xff] }
 0x43f   : > { %8723 = vmatpush3.bf16.msra.mxu1 %v5696_v50  ;;  %8694 = vmatprep.mubr.msk.bf16.mxu1 %vm3608_vm2, %v12799_v1  ;;  %v12807_v50 = vld [vmem:[#allocation75_spill] sm:$0xff]  ;;  %v12809_v1 = vld [vmem:[#allocation6_spill] sm:$0xff] }
 0x440   : > { %9518 = vmatprep.subr.msk.bf16.mxu1 %vm4050_vm3, %v7850_v12 }
 0x446   : > { %8695 = vmatmul.mubr.msk.bf16.gmra.mrb[20].mxu1 %vm3608_vm2, %v12800_v53  ;;  %v12810_v53 = vld [vmem:[#allocation5_spill] sm:$0xff] }
 0x447   : > { %8698 = vmatprep.mubr.msk.bf16.mxu1 %vm3608_vm2, %v12801_v15  ;;  %v12811_v15 = vld [vmem:[#allocation9_spill] sm:$0xff] }
 0x44e   : > { %8699 = vmatmul.mubr.msk.bf16.gmra.mrb[24].mxu1 %vm3608_vm2, %v12802_v28  ;;  %v5302_v28 = vld [vmem:[#allocation3 + $0x110] sm:$0xff] }
 0x44f   : > { %8702 = vmatprep.mubr.msk.bf16.mxu1 %vm3608_vm2, %v12803_v23  ;;  %v12812_v23 = vld [vmem:[#allocation22_spill] sm:$0xff] }
 0x456   : > { %8703 = vmatmul.mubr.msk.bf16.gmra.mrb[28].mxu1 %vm3608_vm2, %v12804_v7  ;;  %v5597_v7 = vmul.f32 %v12812_v23, %v11350_v36  ;;  %v12819_v36 = vld [vmem:[#allocation32_spill] sm:$0xff] }
 0x457   : > { %8706 = vmatprep.mubr.msk.bf16.mxu1 %vm3608_vm2, %v12805_v6  ;;  %v12813_v6 = vld [vmem:[#allocation48_spill] sm:$0xff]  ;;  %v5602_v23 = vmul.f32 %v12819_v36, %v12818_v10 }
 0x45e   : > { %8707 = vmatmul.mubr.msk.bf16.gmra.mrb[0].mxu1 %vm3608_vm2, %v12806_v44  ;;  %v12814_v44 = vld [vmem:[#allocation21_spill] sm:$0xff] }
 0x45f   : > { %8710 = vmatprep.mubr.msk.bf16.mxu1 %vm3608_vm2, %v12807_v50  ;;  %v5598_v11 = vmul.f32 %v12814_v44, %v12813_v6  ;;  %v5301_v50 = vld [vmem:[#allocation3 + $0x108] sm:$0xff]  ;;  %v12821_v6 = vld [vmem:[#allocation28_spill] sm:$0xff] }
 0x460   : > { %v11701_v63 = vpack.c.bf16 %v5302_v28, %v5301_v50  ;;  %v5599_v44 = vmul.f32 %v12821_v6, %v12820_v57  ;;  %v11718_v50 = vld [vmem:[%s12200_s3 + $0x1c] sm:$0xf]  ;;  %v12824_v57 = vld [vmem:[#allocation41_spill] sm:$0xff]  ;;  %v12832_v6 = vld [vmem:[#allocation80_spill] sm:$0xff] }
 0x462   : > { %12815 = vst [vmem:[#allocation45_spill] sm:$0xff] %v11701_v63 }
 0x466   : > { %8711 = vmatmul.mubr.msk.bf16.gmra.mrb[4].mxu1 %vm3608_vm2, %v12808_v48  ;;  %v5629_v48 = vpack.c.bf16 %v5598_v11, %v5597_v7  ;;  %v6022_v11 = vsel %vm4050_vm3, %v7850_v12, 0  ;;  %v5605_v12 = vmul.f32 %v12824_v57, %v11407_v52  ;;  %v12833_v52 = vld [vmem:[#allocation50_spill] sm:$0xff] }
 0x467   : > { %8714 = vmatprep.mubr.msk.bf16.mxu1 %vm3608_vm2, %v12809_v1  ;;  %v12816_v1 = vld [vmem:[#allocation27_spill] sm:$0xff]  ;;  %v5610_v57 = vmul.f32 %v12833_v52, %v12832_v6  ;;  %v12841_v6 = vld [vmem:[#allocation62_spill] sm:$0xff] }
 0x46e   : > { %8715 = vmatmul.mubr.msk.bf16.gmra.mrb[8].mxu1 %vm3608_vm2, %v12810_v53  ;;  %v5600_v53 = vmul.f32 %v12816_v1, %v11355_v47  ;;  %v12823_v47 = vld [vmem:[#allocation35_spill] sm:$0xff] }
 0x46f   : > { %8718 = vmatprep.mubr.msk.bf16.mxu1 %vm3608_vm2, %v12811_v15  ;;  %v12817_v15 = vld [vmem:[#allocation33_spill] sm:$0xff] }
 0x470   : > { %v5601_v38 = vmul.f32 %v12817_v15, %v11374_v13  ;;  %v5630_v28 = vpack.c.bf16 %v5600_v53, %v5599_v44  ;;  %v12822_v13 = vld [vmem:[#allocation60_spill] sm:$0xff]  ;;  %v12828_v53 = vld [vmem:[#allocation38_spill] sm:$0xff] }
 0x471   : > { %v5604_v10 = vmul.f32 %v12823_v47, %v12822_v13  ;;  %v12831_v47 = vld [vmem:[#allocation54_spill] sm:$0xff] }
 0x472   : > { %v5631_v7 = vpack.c.bf16 %v5602_v23, %v5601_v38  ;;  %v12825_v38 = vld [vmem:[#allocation70_spill] sm:$0xff]  ;;  %v12826_v23 = vld [vmem:[#allocation40_spill] sm:$0xff]  ;;  %v5609_v1 = vmul.f32 %v12831_v47, %v11429_v32 }
 0x473   : > { %v5606_v44 = vmul.f32 %v12826_v23, %v12825_v38  ;;  %v12835_v38 = vld [vmem:[#allocation46_spill] sm:$0xff] }
 0x474   : > { %v12839_v32 = vld [vmem:[#allocation66_spill] sm:$0xff] }
 0x476   : > { %8719 = vmatmul.mubr.msk.bf16.gmra.mrb[12].mxu1 %vm3608_vm2, %v11701_v63  ;;  %v12834_v63 = vld [vmem:[#allocation74_spill] sm:$0xff] }
 0x477   : > { %8724 = vmatprep.mubr.msk.bf16.mxu1 %vm3608_vm2, %v5629_v48  ;;  %v12827_v48 = vld [vmem:[#allocation64_spill] sm:$0xff]  ;;  %v5607_v23 = vmul.f32 %v12835_v38, %v12834_v63 }
 0x478   : > { %v5603_v15 = vmul.f32 %v12828_v53, %v12827_v48  ;;  %v5635_v48 = vpack.c.bf16 %v5610_v57, %v5609_v1  ;;  %v12843_v1 = vld [vmem:[#allocation76_spill] sm:$0xff] }
 0x47a   : > { %v5632_v36 = vpack.c.bf16 %v5604_v10, %v5603_v15  ;;  %v12836_v15 = vld [vmem:[#allocation81_spill] sm:$0xff] }
 0x47e   : > { %8725 = vmatmul.mubr.msk.bf16.vlgmr.msra.gmra.mrb[16].mxu1 %vm3608_vm2, %v5630_v28  ;;  %v5633_v28 = vpack.c.bf16 %v5606_v44, %v5605_v12  ;;  %v12838_v12 = vld [vmem:[#allocation68_spill] sm:$0xff] }
 0x47f   : > { %8757 = vmatpush3.bf16.msra.mxu1 %v6022_v11  ;;  %8728 = vmatprep.mubr.msk.bf16.mxu1 %vm3608_vm2, %v5631_v7  ;;  %v12829_v11 = vld [vmem:[#allocation72_spill] sm:$0xff]  ;;  %v5613_v44 = vmul.f32 %v12838_v12, %v11451_v5  ;;  %v12846_v5 = vld [vmem:[#allocation83_spill] sm:$0xff]  ;;  %v12847_v12 = vld [vmem:[#allocation89_spill] sm:$0xff] }
 0x480   : > { %9519 = vmatprep.subr.msk.bf16.mxu1 %vm4050_vm3, %v11718_v50  ;;  %v12830_v7 = vld [vmem:[#allocation44_spill] sm:$0xff] }
 0x481   : > { %v5608_v13 = vmul.f32 %v12830_v7, %v12829_v11  ;;  %v12840_v11 = vld [vmem:[#allocation84_spill] sm:$0xff] }
 0x482   : > { %v5611_v47 = vmul.f32 %v12841_v6, %v12840_v11 }
 0x483   : > { %v5634_v2 = vpack.c.bf16 %v5608_v13, %v5607_v23  ;;  %v12844_v23 = vld [vmem:[#allocation85_spill] sm:$0xff] }
 0x484   : > { %v5617_v13 = vmul.f32 %v12844_v23, %v11477_v39  ;;  %v12852_v39 = vld [vmem:[#allocation90_spill] sm:$0xff] }
 0x486   : > { %8729 = vmatmul.mubr.msk.bf16.gmra.mrb[20].mxu1 %vm3608_vm2, %v5632_v36  ;;  %v12837_v36 = vld [vmem:[#allocation58_spill] sm:$0xff] }
 0x487   : > { %8732 = vmatprep.mubr.msk.bf16.mxu1 %vm3608_vm2, %v5633_v28  ;;  %v5612_v10 = vmul.f32 %v12837_v36, %v12836_v15  ;;  %v5614_v28 = vmul.f32 %v12839_v32, %v11453_v26  ;;  %v12848_v26 = vld [vmem:[#allocation78_spill] sm:$0xff] }
 0x488   : > { %v5615_v32 = vmul.f32 %v12848_v26, %v12847_v12 }
 0x489   : > { %v5636_v52 = vpack.c.bf16 %v5612_v10, %v5611_v47  ;;  %v5637_v63 = vpack.c.bf16 %v5614_v28, %v5613_v44  ;;  %v12849_v47 = vld [vmem:[#allocation93_spill] sm:$0xff]  ;;  %v12851_v44 = vld [vmem:[#allocation91_spill] sm:$0xff] }
 0x48a   : > { %v5621_v28 = vmul.f32 %v12851_v44, %v11499_v37  ;;  %v12856_v37 = vld [vmem:[#allocation97_spill] sm:$0xff] }
 0x48e   : > { %8733 = vmatmul.mubr.msk.bf16.gmra.mrb[24].mxu1 %vm3608_vm2, %v5634_v2  ;;  %v12842_v2 = vld [vmem:[#allocation87_spill] sm:$0xff] }
 0x48f   : > { %8736 = vmatprep.mubr.msk.bf16.mxu1 %vm3608_vm2, %v5635_v48  ;;  %v5616_v57 = vmul.f32 %v12843_v1, %v12842_v2  ;;  %v12845_v48 = vld [vmem:[#allocation92_spill] sm:$0xff]  ;;  %v12853_v2 = vld [vmem:[#allocation94_spill] sm:$0xff] }
 0x490   : > { %v5618_v15 = vmul.f32 %v12846_v5, %v12845_v48  ;;  %v12854_v48 = vld [vmem:[#allocation88_spill] sm:$0xff] }
 0x491   : > { %v5638_v36 = vpack.c.bf16 %v5616_v57, %v5615_v32  ;;  %v5619_v23 = vmul.f32 %v12854_v48, %v12853_v2  ;;  %v5625_v57 = vmul.f32 %v11515_v56, %v11521_v25  ;;  %v12859_v25 = vld [vmem:[#allocation99_spill] sm:$0xff] }
 0x492   : > { %v5639_v11 = vpack.c.bf16 %v5618_v15, %v5617_v13  ;;  %v5626_v13 = vmul.f32 %v12856_v37, %v11523_v45  ;;  %v12857_v15 = vld [vmem:[#allocation98_spill] sm:$0xff]  ;;  %v5923_v45 = vmul.f32 %v10991_v49, %v11164_v22  ;;  %v5925_v49 = vmul.f32 %v11001_v3, %v11200_v40 }
 0x493   : > { %v5931_v3 = vmul.f32 %v11049_v58, %v11219_v61  ;;  %v12861_v58 = vld [vmem:[#allocation63_spill] sm:$0xff] }
 0x494   : > { %v5643_v2 = vpack.c.bf16 %v5626_v13, %v5625_v57  ;;  %v5926_v57 = vmul.f32 %v10998_v54, %v11187_v55  ;;  %v5927_v13 = vmul.f32 %v11019_v17, %v11195_v19  ;;  %v5930_v54 = vmul.f32 %v11030_v51, %v11216_v21  ;;  %v12862_v21 = vld [vmem:[#allocation20_spill] sm:$0xff] }
 0x495   : > { %v5929_v17 = vmul.f32 %v11035_v59, %v11224_v31  ;;  %v5934_v51 = vmul.f32 %v11062_v41, %v11238_v46  ;;  %v5936_v40 = vmul.f32 %v12861_v58, %v11245_v42  ;;  %v12864_v31 = vld [vmem:[#allocation23_spill] sm:$0xff]  ;;  %v5939_v41 = vmul.f32 %v12760_v24, %v12762_v9  ;;  %v12867_v46 = vld [vmem:[#allocation26_spill] sm:$0xff]  ;;  %v12873_v9 = vld [vmem:[#allocation4_spill] sm:$0xff] }
 0x496   : > { %8737 = vmatmul.mubr.msk.bf16.gmra.mrb[28].mxu1 %vm3608_vm2, %v5636_v52  ;;  %v12850_v52 = vld [vmem:[#allocation86_spill] sm:$0xff]  ;;  %v5956_v22 = vpack.c.bf16 %v5926_v57, %v5925_v49  ;;  %v12868_v42 = vld [vmem:[#allocation71_spill] sm:$0xff] }
 0x497   : > { %8740 = vmatprep.mubr.msk.bf16.mxu1 %vm3608_vm2, %v5637_v63  ;;  %v5620_v10 = vmul.f32 %v12850_v52, %v12849_v47  ;;  %v5622_v63 = vmul.f32 %v12852_v39, %v11501_v18  ;;  %v12858_v18 = vld [vmem:[#allocation96_spill] sm:$0xff]  ;;  %v5958_v55 = vpack.c.bf16 %v5930_v54, %v5929_v17  ;;  %v12877_v54 = vld [vmem:[#allocation10_spill] sm:$0xff] }
 0x499   : > { %v5640_v5 = vpack.c.bf16 %v5620_v10, %v5619_v23  ;;  %v5641_v12 = vpack.c.bf16 %v5622_v63, %v5621_v28  ;;  %v11782_v23 = vld [vmem:[#allocation3 + $0x109] sm:$0xff]  ;;  %v11784_v10 = vld [vmem:[#allocation3 + $0x111] sm:$0xff] }
 0x49a   : > { %v12860_v28 = vld [vmem:[#allocation43_spill] sm:$0xff] }
 0x49b   : > { %v5924_v63 = vmul.f32 %v12860_v28, %v11166_v35  ;;  %v6316_v35 = vsel %vm4050_vm3, %v11718_v50, 0  ;;  %v12865_v50 = vld [vmem:[#allocation69_spill] sm:$0xff] }
 0x49c   : > { %v12869_v28 = vld [vmem:[#allocation29_spill] sm:$0xff] }
 0x49e   : > { %8741 = vmatmul.mubr.msk.bf16.gmra.mrb[0].mxu1 %vm3608_vm2, %v5638_v36  ;;  %v12855_v36 = vld [vmem:[#allocation95_spill] sm:$0xff] }
 0x49f   : > { %8744 = vmatprep.mubr.msk.bf16.mxu1 %vm3608_vm2, %v5639_v11  ;;  %v5624_v32 = vmul.f32 %v12855_v36, %v11504_v14  ;;  %v5623_v11 = vmul.f32 %v12858_v18, %v12857_v15  ;;  %v5627_v14 = vmul.f32 %v11782_v23, %v11528_v43  ;;  %v5928_v15 = vmul.f32 %v11016_v29, %v11197_v34 }
 0x4a0   : > { %v5932_v29 = vmul.f32 %v11044_v0, %v11221_v60  ;;  %v5935_v34 = vmul.f32 %v11083_v16, %v11243_v30  ;;  %v12863_v0 = vld [vmem:[#allocation57_spill] sm:$0xff] }
 0x4a1   : > { %v5642_v47 = vpack.c.bf16 %v5624_v32, %v5623_v11  ;;  %v5955_v32 = vpack.c.bf16 %v5924_v63, %v5923_v45  ;;  %v5957_v11 = vpack.c.bf16 %v5928_v15, %v5927_v13  ;;  %v5933_v61 = vmul.f32 %v12863_v0, %v12862_v21  ;;  %v12866_v16 = vld [vmem:[#allocation73_spill] sm:$0xff]  ;;  %v12870_v63 = vld [vmem:[#allocation82_spill] sm:$0xff]  ;;  %v12874_v15 = vld [vmem:[#allocation31_spill] sm:$0xff] }
 0x4a2   : > { %v5959_v19 = vpack.c.bf16 %v5932_v29, %v5931_v3  ;;  %v5961_v59 = vpack.c.bf16 %v5936_v40, %v5935_v34  ;;  %v5940_v30 = vmul.f32 %v12866_v16, %v12764_v62  ;;  %v12872_v13 = vld [vmem:[#allocation30_spill] sm:$0xff]  ;;  %v12875_v62 = vld [vmem:[#allocation7_spill] sm:$0xff]  ;;  %v5947_v29 = vmul.f32 %v12781_v8, %v12783_v4  ;;  %v12882_v0 = vld [vmem:[#allocation17_spill] sm:$0xff] }
 0x4a3   : > { %v5960_v60 = vpack.c.bf16 %v5934_v51, %v5933_v61  ;;  %v5944_v24 = vmul.f32 %v12873_v9, %v12872_v13  ;;  %v5941_v49 = vmul.f32 %v12875_v62, %v12874_v15  ;;  %v12881_v40 = vld [vmem:[#allocation14_spill] sm:$0xff]  ;;  %v12885_v4 = vld [vmem:[#allocation111_spill] sm:$0xff]  ;;  %v5921_v16 = vld [vmem:[#allocation3 + $0x117] sm:$0xff] }
 0x4a4   : > { %v5963_v45 = vpack.c.bf16 %v5940_v30, %v5939_v41  ;;  %v5950_v21 = vmul.f32 %v12881_v40, %v11334_v20  ;;  %v12883_v61 = vld [vmem:[#allocation110_spill] sm:$0xff]  ;;  %v11886_v62 = vld [vmem:[%s12202_s5] sm:$0x3] }
 0x4a5   : > { %v5922_v30 = vld [vmem:[#allocation3 + $0x11f] sm:$0xff] }
 0x4a6   : > { %8745 = vmatmul.mubr.msk.bf16.gmra.mrb[4].mxu1 %vm3608_vm2, %v5640_v5  ;;  %v5628_v5 = vmul.f32 %v11784_v10, %v12859_v25  ;;  %v12889_v20 = vld [vmem:[#allocation18_spill] sm:$0xff] }
 0x4a7   : > { %8748 = vmatprep.mubr.msk.bf16.mxu1 %vm3608_vm2, %v5641_v12 }
 0x4a8   : > { %v5644_v12 = vpack.c.bf16 %v5628_v5, %v5627_v14  ;;  %v5937_v14 = vmul.f32 %v12868_v42, %v12867_v46  ;;  %v12888_v46 = vld [vmem:[#allocation19_spill] sm:$0xff] }
 0x4a9   : > { %v5953_v42 = vmul.f32 %v5921_v16, %v12888_v46  ;;  %v6241_v16 = vld [vmem:[#allocation3 + $0xe8] sm:$0xff]  ;;  %v6244_v46 = vld [vmem:[#allocation3 + $0x100] sm:$0xff] }
 0x4ae   : > { %8749 = vmatmul.mubr.msk.bf16.gmra.mrb[8].mxu1 %vm3608_vm2, %v5642_v47  ;;  %v11811_v47 = vld [vmem:[%s12200_s3 + $0x20] sm:$0xf] }
 0x4af   : > { %8752 = vmatprep.mubr.msk.bf16.mxu1 %vm3608_vm2, %v5643_v2  ;;  %v5938_v2 = vmul.f32 %v12865_v50, %v12864_v31  ;;  %v12886_v31 = vld [vmem:[#allocation42_spill] sm:$0xff]  ;;  %v6642_v9 = vsel %vm4050_vm3, %v11811_v47, 0 }
 0x4b1   : > { %v5962_v5 = vpack.c.bf16 %v5938_v2, %v5937_v14  ;;  %v5954_v14 = vmul.f32 %v5922_v30, %v12889_v20 }
 0x4b6   : > { %8753 = vmatmul.mubr.msk.bf16.gmra.mrb[12].mxu1 %vm3608_vm2, %v5644_v12  ;;  %v5942_v12 = vmul.f32 %v12870_v63, %v12869_v28  ;;  %v6217_v28 = vld [vmem:[#allocation3 + $0x28] sm:$0xff] }
 0x4b7   : > { %8758 = vmatprep.mubr.msk.bf16.mxu1 %vm3608_vm2, %v5955_v32  ;;  %v12871_v32 = vld [vmem:[#allocation8_spill] sm:$0xff] }
 0x4b8   : > { %v5943_v57 = vmul.f32 %v12871_v32, %v11289_v33  ;;  %v12878_v33 = vld [vmem:[#allocation12_spill] sm:$0xff] }
 0x4b9   : > { %v5948_v17 = vmul.f32 %v12878_v33, %v12785_v27  ;;  %v12887_v27 = vld [vmem:[#allocation15_spill] sm:$0xff]  ;;  %v6222_v32 = vld [vmem:[#allocation3 + $0x50] sm:$0xff]  ;;  %v6227_v33 = vld [vmem:[#allocation3 + $0x78] sm:$0xff] }
 0x4ba   : > { %v5949_v50 = vmul.f32 %v12887_v27, %v12886_v31  ;;  %v6240_v27 = vld [vmem:[#allocation3 + $0xe0] sm:$0xff] }
 0x4bb   : > { %v5967_v58 = vpack.c.bf16 %v5948_v17, %v5947_v29  ;;  %v6230_v29 = vld [vmem:[#allocation3 + $0x90] sm:$0xff] }
 0x4bc   : > { %v5968_v2 = vpack.c.bf16 %v5950_v21, %v5949_v50  ;;  %v6233_v21 = vld [vmem:[#allocation3 + $0xa8] sm:$0xff]  ;;  %v6242_v50 = vld [vmem:[#allocation3 + $0xf0] sm:$0xff] }
 0x4bd   : > { %v6261_v30 = vpack.c.bf16 %v6242_v50, %v6241_v16  ;;  %v6524_v16 = vld [vmem:[#allocation3 + $0x91] sm:$0xff] }
 0x4be   : > { %8759 = vmatmul.mubr.msk.bf16.vlgmr.msra.gmra.mrb[16].mxu1 %vm3608_vm2, %v5956_v22  ;;  %v5964_v22 = vpack.c.bf16 %v5942_v12, %v5941_v49  ;;  %v6220_v12 = vld [vmem:[#allocation3 + $0x40] sm:$0xff] }
 0x4bf   : > { %8791 = vmatpush3.bf16.msra.mxu1 %v6316_v35  ;;  %8762 = vmatprep.mubr.msk.bf16.mxu1 %vm3608_vm2, %v5957_v11  ;;  %v5965_v35 = vpack.c.bf16 %v5944_v24, %v5943_v57  ;;  %v12876_v11 = vld [vmem:[#allocation34_spill] sm:$0xff]  ;;  %v6219_v57 = vld [vmem:[#allocation3 + $0x38] sm:$0xff]  ;;  %v6221_v24 = vld [vmem:[#allocation3 + $0x48] sm:$0xff] }
 0x4c0   : > { %9520 = vmatprep.subr.msk.bf16.mxu1 %vm4050_vm3, %v11811_v47  ;;  %v5946_v3 = vmul.f32 %v12877_v54, %v12876_v11  ;;  %v6250_v13 = vpack.c.bf16 %v6220_v12, %v6219_v57  ;;  %v6251_v15 = vpack.c.bf16 %v6222_v32, %v6221_v24  ;;  %v6224_v49 = vld [vmem:[#allocation3 + $0x60] sm:$0xff]  ;;  %v6225_v47 = vld [vmem:[#allocation3 + $0x68] sm:$0xff]  ;;  %v12891_v12 = vld [vmem:[#allocation21_spill] sm:$0xff] }
 0x4c6   : > { %8763 = vmatmul.mubr.msk.bf16.gmra.mrb[20].mxu1 %vm3608_vm2, %v5958_v55  ;;  %v12879_v55 = vld [vmem:[#allocation39_spill] sm:$0xff] }
 0x4c7   : > { %8766 = vmatprep.mubr.msk.bf16.mxu1 %vm3608_vm2, %v5959_v19  ;;  %v12880_v19 = vld [vmem:[#allocation11_spill] sm:$0xff] }
 0x4c8   : > { %v5945_v51 = vmul.f32 %v12880_v19, %v12879_v55  ;;  %v6229_v55 = vld [vmem:[#allocation3 + $0x88] sm:$0xff] }
 0x4c9   : > { %v6255_v19 = vpack.c.bf16 %v6230_v29, %v6229_v55  ;;  %v12895_v29 = vld [vmem:[#allocation32_spill] sm:$0xff] }
 0x4ca   : > { %v5966_v34 = vpack.c.bf16 %v5946_v3, %v5945_v51  ;;  %v6228_v3 = vld [vmem:[#allocation3 + $0x80] sm:$0xff] }
 0x4cb   : > { %v6254_v17 = vpack.c.bf16 %v6228_v3, %v6227_v33  ;;  %v6232_v51 = vld [vmem:[#allocation3 + $0xa0] sm:$0xff]  ;;  %v6515_v3 = vld [vmem:[#allocation3 + $0x49] sm:$0xff] }
 0x4ce   : > { %8767 = vmatmul.mubr.msk.bf16.gmra.mrb[24].mxu1 %vm3608_vm2, %v5960_v60  ;;  %v5951_v60 = vmul.f32 %v12883_v61, %v12882_v0  ;;  %v6236_v61 = vld [vmem:[#allocation3 + $0xc0] sm:$0xff] }
 0x4cf   : > { %8770 = vmatprep.mubr.msk.bf16.mxu1 %vm3608_vm2, %v5961_v59  ;;  %v12884_v59 = vld [vmem:[#allocation16_spill] sm:$0xff] }
 0x4d0   : > { %v5952_v8 = vmul.f32 %v12885_v4, %v12884_v59  ;;  %v6235_v59 = vld [vmem:[#allocation3 + $0xb8] sm:$0xff] }
 0x4d1   : > { %v6258_v4 = vpack.c.bf16 %v6236_v61, %v6235_v59  ;;  %v12897_v61 = vld [vmem:[#allocation35_spill] sm:$0xff] }
 0x4d2   : > { %v5969_v41 = vpack.c.bf16 %v5952_v8, %v5951_v60  ;;  %v6238_v60 = vld [vmem:[#allocation3 + $0xd0] sm:$0xff]  ;;  %v6237_v8 = vld [vmem:[#allocation3 + $0xc8] sm:$0xff] }
 0x4d3   : > { %v6259_v31 = vpack.c.bf16 %v6238_v60, %v6237_v8  ;;  %v6519_v59 = vld [vmem:[#allocation3 + $0x69] sm:$0xff] }
 0x4d6   : > { %8771 = vmatmul.mubr.msk.bf16.gmra.mrb[28].mxu1 %vm3608_vm2, %v5962_v5  ;;  %v6218_v5 = vld [vmem:[#allocation3 + $0x30] sm:$0xff] }
 0x4d7   : > { %8774 = vmatprep.mubr.msk.bf16.mxu1 %vm3608_vm2, %v5963_v45  ;;  %v5970_v45 = vpack.c.bf16 %v5954_v14, %v5953_v42  ;;  %v6249_v63 = vpack.c.bf16 %v6218_v5, %v6217_v28  ;;  %v6243_v42 = vld [vmem:[#allocation3 + $0xf8] sm:$0xff]  ;;  %v6248_v28 = vld [vmem:[#allocation3 + $0x120] sm:$0xff] }
 0x4d8   : > { %v6262_v20 = vpack.c.bf16 %v6244_v46, %v6243_v42  ;;  %v6512_v14 = vld [vmem:[#allocation3 + $0x31] sm:$0xff]  ;;  %v6523_v46 = vld [vmem:[#allocation3 + $0x89] sm:$0xff]  ;;  %v12900_v42 = vld [vmem:[#allocation50_spill] sm:$0xff] }
 0x4d9   : > { %v12890_v5 = vld [vmem:[#allocation45_spill] sm:$0xff]  ;;  %v6544_v32 = vmul.f32 %v6512_v14, %v12891_v12  ;;  %v12901_v14 = vld [vmem:[#allocation54_spill] sm:$0xff] }
 0x4da   : > { %v6526_v12 = vld [vmem:[#allocation3 + $0xa1] sm:$0xff] }
 0x4de   : > { %8775 = vmatmul.mubr.msk.bf16.gmra.mrb[0].mxu1 %vm3608_vm2, %v5964_v22  ;;  %v6226_v22 = vld [vmem:[#allocation3 + $0x70] sm:$0xff] }
 0x4df   : > { %8778 = vmatprep.mubr.msk.bf16.mxu1 %vm3608_vm2, %v5965_v35  ;;  %v6223_v35 = vld [vmem:[#allocation3 + $0x58] sm:$0xff]  ;;  %v6253_v54 = vpack.c.bf16 %v6226_v22, %v6225_v47  ;;  %v12894_v47 = vld [vmem:[#allocation27_spill] sm:$0xff] }
 0x4e0   : > { %v6252_v11 = vpack.c.bf16 %v6224_v49, %v6223_v35  ;;  %v6514_v49 = vld [vmem:[#allocation3 + $0x41] sm:$0xff]  ;;  %v6516_v22 = vld [vmem:[#allocation3 + $0x51] sm:$0xff] }
 0x4e1   : > { %v12893_v35 = vld [vmem:[#allocation28_spill] sm:$0xff]  ;;  %v6548_v33 = vmul.f32 %v6516_v22, %v12895_v29 }
 0x4e2   : > { %v6531_v29 = vld [vmem:[#allocation3 + $0xc9] sm:$0xff] }
 0x4e6   : > { %8779 = vmatmul.mubr.msk.bf16.gmra.mrb[4].mxu1 %vm3608_vm2, %v5966_v34  ;;  %v6234_v34 = vld [vmem:[#allocation3 + $0xb0] sm:$0xff] }
 0x4e7   : > { %8782 = vmatprep.mubr.msk.bf16.mxu1 %vm3608_vm2, %v5967_v58  ;;  %v6231_v58 = vld [vmem:[#allocation3 + $0x98] sm:$0xff]  ;;  %v6257_v0 = vpack.c.bf16 %v6234_v34, %v6233_v21 }
 0x4e8   : > { %v6256_v40 = vpack.c.bf16 %v6232_v51, %v6231_v58  ;;  %v6949_v51 = vsel %vm781_vm1, %v11886_v62, 0  ;;  %v6517_v58 = vld [vmem:[#allocation3 + $0x59] sm:$0xff]  ;;  %v6520_v21 = vld [vmem:[#allocation3 + $0x71] sm:$0xff] }
 0x4ee   : > { %8783 = vmatmul.mubr.msk.bf16.gmra.mrb[8].mxu1 %vm3608_vm2, %v5968_v2  ;;  %v6239_v2 = vld [vmem:[#allocation3 + $0xd8] sm:$0xff] }
 0x4ef   : > { %8786 = vmatprep.mubr.msk.bf16.mxu1 %vm3608_vm2, %v5969_v41  ;;  %v6260_v41 = vpack.c.bf16 %v6240_v27, %v6239_v2  ;;  %v6521_v2 = vld [vmem:[#allocation3 + $0x79] sm:$0xff] }
 0x4f6   : > { %8787 = vmatmul.mubr.msk.bf16.gmra.mrb[12].mxu1 %vm3608_vm2, %v5970_v45  ;;  %v6247_v45 = vld [vmem:[#allocation3 + $0x118] sm:$0xff] }
 0x4f7   : > { %8792 = vmatprep.mubr.msk.bf16.mxu1 %vm3608_vm2, %v6249_v63  ;;  %v6511_v63 = vld [vmem:[#allocation3 + $0x29] sm:$0xff]  ;;  %v6264_v57 = vpack.c.bf16 %v6248_v28, %v6247_v45 }
 0x4fe   : > { %8793 = vmatmul.mubr.msk.bf16.vlgmr.msra.gmra.mrb[16].mxu1 %vm3608_vm2, %v6250_v13  ;;  %v12892_v13 = vld [vmem:[#allocation22_spill] sm:$0xff] }
 0x4ff   : > { %8825 = vmatpush3.bf16.msra.mxu1 %v6642_v9  ;;  %8796 = vmatprep.mubr.msk.bf16.mxu1 %vm3608_vm2, %v6251_v15  ;;  %v6543_v9 = vmul.f32 %v6511_v63, %v12892_v13  ;;  %v6513_v15 = vld [vmem:[#allocation3 + $0x39] sm:$0xff] }
 0x500   : > { %9521 = vmatprep.subr.msk.bf16.mxu1 %vm781_vm1, %v11886_v62  ;;  %v6525_v63 = vld [vmem:[#allocation3 + $0x99] sm:$0xff] }
 0x501   : > { %v6575_v24 = vpack.c.bf16 %v6544_v32, %v6543_v9  ;;  %v6528_v32 = vld [vmem:[#allocation3 + $0xb1] sm:$0xff]  ;;  %v12902_v13 = vld [vmem:[#allocation58_spill] sm:$0xff]  ;;  %v6527_v9 = vld [vmem:[#allocation3 + $0xa9] sm:$0xff] }
 0x506   : > { %8797 = vmatmul.mubr.msk.bf16.gmra.mrb[20].mxu1 %vm3608_vm2, %v6252_v11  ;;  %v6545_v11 = vmul.f32 %v6513_v15, %v12893_v35  ;;  %v12904_v15 = vld [vmem:[#allocation68_spill] sm:$0xff] }
 0x507   : > { %8800 = vmatprep.mubr.msk.bf16.mxu1 %vm3608_vm2, %v6253_v54  ;;  %v6546_v54 = vmul.f32 %v6514_v49, %v12894_v47  ;;  %v6559_v49 = vmul.f32 %v6527_v9, %v12904_v15  ;;  %v6530_v47 = vld [vmem:[#allocation3 + $0xc1] sm:$0xff]  ;;  %v9551_v15 = vld [vmem:[%s9696_s30 + $0x88] sm:$0xff] }
 0x508   : > { %v9549_v9 = vld [vmem:[%s9696_s30 + $0x78] sm:$0xff] }
 0x50e   : > { %8801 = vmatmul.mubr.msk.bf16.gmra.mrb[24].mxu1 %vm3608_vm2, %v6254_v17  ;;  %v12896_v17 = vld [vmem:[#allocation33_spill] sm:$0xff] }
 0x50f   : > { %8804 = vmatprep.mubr.msk.bf16.mxu1 %vm3608_vm2, %v6255_v19  ;;  %v6547_v55 = vmul.f32 %v6515_v3, %v12896_v17  ;;  %v6576_v19 = vpack.c.bf16 %v6546_v54, %v6545_v11  ;;  %v6529_v11 = vld [vmem:[#allocation3 + $0xb9] sm:$0xff]  ;;  %v6532_v54 = vld [vmem:[#allocation3 + $0xd1] sm:$0xff] }
 0x510   : > { %v6561_v3 = vmul.f32 %v6529_v11, %v12848_v26 }
 0x511   : > { %v6577_v34 = vpack.c.bf16 %v6548_v33, %v6547_v55  ;;  %v12905_v33 = vld [vmem:[#allocation83_spill] sm:$0xff]  ;;  %v12906_v55 = vld [vmem:[#allocation85_spill] sm:$0xff] }
 0x512   : > { %v6564_v17 = vmul.f32 %v6532_v54, %v12905_v33  ;;  %v9555_v54 = vld [vmem:[%s9696_s30 + $0xa8] sm:$0xff] }
 0x516   : > { %8805 = vmatmul.mubr.msk.bf16.gmra.mrb[28].mxu1 %vm3608_vm2, %v6256_v40  ;;  %v6518_v40 = vld [vmem:[#allocation3 + $0x61] sm:$0xff] }
 0x517   : > { %8808 = vmatprep.mubr.msk.bf16.mxu1 %vm3608_vm2, %v6257_v0  ;;  %v6549_v0 = vmul.f32 %v6517_v58, %v12828_v53  ;;  %v6550_v60 = vmul.f32 %v6518_v40, %v12897_v61  ;;  %v6533_v58 = vld [vmem:[#allocation3 + $0xd9] sm:$0xff]  ;;  %v6534_v40 = vld [vmem:[#allocation3 + $0xe1] sm:$0xff]  ;;  %v6535_v61 = vld [vmem:[#allocation3 + $0xe9] sm:$0xff] }
 0x518   : > { %v6566_v26 = vmul.f32 %v6534_v40, %v12850_v52  ;;  %v6571_v52 = vmul.f32 %v11782_v23, %v11515_v56  ;;  %v9562_v40 = vld [vmem:[%s9696_s30 + $0xe0] sm:$0xff] }
 0x519   : > { %v6578_v50 = vpack.c.bf16 %v6550_v60, %v6549_v0  ;;  %v6565_v0 = vmul.f32 %v6533_v58, %v12854_v48  ;;  %v6567_v60 = vmul.f32 %v6535_v61, %v12851_v44  ;;  %v6572_v44 = vmul.f32 %v11784_v10, %v12856_v37  ;;  %v9534_v37 = vld [vmem:[%s9696_s30] sm:$0xff]  ;;  %v9565_v61 = vld [vmem:[%s9696_s30 + $0xf8] sm:$0xff] }
 0x51e   : > { %8809 = vmatmul.mubr.msk.bf16.gmra.mrb[0].mxu1 %vm3608_vm2, %v6258_v4  ;;  %v12898_v4 = vld [vmem:[#allocation40_spill] sm:$0xff] }
 0x51f   : > { %8812 = vmatprep.mubr.msk.bf16.mxu1 %vm3608_vm2, %v6259_v31  ;;  %v6552_v8 = vmul.f32 %v6520_v21, %v12898_v4  ;;  %v12899_v31 = vld [vmem:[#allocation41_spill] sm:$0xff] }
 0x520   : > { %v6551_v27 = vmul.f32 %v6519_v59, %v12899_v31  ;;  %v6536_v21 = vld [vmem:[#allocation3 + $0xf1] sm:$0xff]  ;;  %v6586_v59 = vpack.c.bf16 %v6566_v26, %v6565_v0  ;;  %v6538_v31 = vld [vmem:[#allocation3 + $0x101] sm:$0xff] }
 0x521   : > { %v6570_v48 = vmul.f32 %v6538_v31, %v12855_v36  ;;  %v9564_v26 = vld [vmem:[%s9696_s30 + $0xf0] sm:$0xff] }
 0x522   : > { %v6579_v62 = vpack.c.bf16 %v6552_v8, %v6551_v27  ;;  %v6537_v8 = vld [vmem:[#allocation3 + $0xf9] sm:$0xff] }
 0x523   : > { %v6569_v27 = vmul.f32 %v6537_v8, %v12858_v18  ;;  %v9535_v18 = vld [vmem:[%s9696_s30 + $0x8] sm:$0xff] }
 0x524   : > { %v6876_v23 = vpack.c.bf16 %v9535_v18, %v9534_v37  ;;  %v12908_v8 = vld [vmem:[#allocation77_spill] sm:$0xff] }
 0x526   : > { %8813 = vmatmul.mubr.msk.bf16.gmra.mrb[4].mxu1 %vm3608_vm2, %v6260_v41  ;;  %v6522_v41 = vld [vmem:[#allocation3 + $0x81] sm:$0xff] }
 0x527   : > { %8816 = vmatprep.mubr.msk.bf16.mxu1 %vm3608_vm2, %v6261_v30  ;;  %v6553_v30 = vmul.f32 %v6521_v2, %v12835_v38  ;;  %v6554_v53 = vmul.f32 %v6522_v41, %v12830_v7  ;;  %v6558_v38 = vmul.f32 %v6526_v12, %v12902_v13  ;;  %v12903_v7 = vld [vmem:[#allocation66_spill] sm:$0xff]  ;;  %v6589_v2 = vpack.c.bf16 %v6572_v44, %v6571_v52  ;;  %v12910_v44 = vld [vmem:[#allocation101_spill] sm:$0xff] }
 0x528   : > { %v9536_v41 = vld [vmem:[%s9696_s30 + $0x10] sm:$0xff] }
 0x529   : > { %v6580_v45 = vpack.c.bf16 %v6554_v53, %v6553_v30  ;;  %v9538_v30 = vld [vmem:[%s9696_s30 + $0x20] sm:$0xff]  ;;  %v9539_v53 = vld [vmem:[%s9696_s30 + $0x28] sm:$0xff] }
 0x52e   : > { %8817 = vmatmul.mubr.msk.bf16.gmra.mrb[8].mxu1 %vm3608_vm2, %v6262_v20  ;;  %v6556_v20 = vmul.f32 %v6524_v16, %v12900_v42  ;;  %v9537_v16 = vld [vmem:[%s9696_s30 + $0x18] sm:$0xff] }
 0x52f   : > { %8820 = vmatprep.mubr.msk.bf16.mxu1 %vm3608_vm2, %v12890_v5  ;;  %v6555_v5 = vmul.f32 %v6523_v46, %v12901_v14  ;;  %v9540_v46 = vld [vmem:[%s9696_s30 + $0x30] sm:$0xff]  ;;  %v9541_v42 = vld [vmem:[%s9696_s30 + $0x38] sm:$0xff]  ;;  %v9542_v14 = vld [vmem:[%s9696_s30 + $0x40] sm:$0xff] }
 0x531   : > { %v6581_v28 = vpack.c.bf16 %v6556_v20, %v6555_v5  ;;  %v6879_v20 = vpack.c.bf16 %v9541_v42, %v9540_v46  ;;  %v9543_v5 = vld [vmem:[%s9696_s30 + $0x48] sm:$0xff] }
 0x536   : > { %8821 = vmatmul.mubr.msk.bf16.gmra.mrb[12].mxu1 %vm3608_vm2, %v6264_v57  ;;  %v6557_v57 = vmul.f32 %v6525_v63, %v12841_v6  ;;  %v6562_v6 = vmul.f32 %v6530_v47, %v12843_v1  ;;  %v6568_v1 = vmul.f32 %v6536_v21, %v12852_v39  ;;  %v6588_v39 = vpack.c.bf16 %v6570_v48, %v6569_v27  ;;  %v9545_v63 = vld [vmem:[%s9696_s30 + $0x58] sm:$0xff]  ;;  %v9554_v47 = vld [vmem:[%s9696_s30 + $0xa0] sm:$0xff]  ;;  %v9563_v21 = vld [vmem:[%s9696_s30 + $0xe8] sm:$0xff] }
 0x537   : > { %8826 = vmatprep.mubr.msk.bf16.mxu1 %vm3608_vm2, %v6575_v24  ;;  %v6560_v24 = vmul.f32 %v6528_v32, %v12903_v7  ;;  %v9546_v32 = vld [vmem:[%s9696_s30 + $0x60] sm:$0xff]  ;;  %v6890_v0 = vpack.c.bf16 %v9563_v21, %v9562_v40 }
 0x538   : > { %v6582_v22 = vpack.c.bf16 %v6558_v38, %v6557_v57  ;;  %v6587_v4 = vpack.c.bf16 %v6568_v1, %v6567_v60  ;;  %v9547_v57 = vld [vmem:[%s9696_s30 + $0x68] sm:$0xff]  ;;  %v9548_v38 = vld [vmem:[%s9696_s30 + $0x70] sm:$0xff]  ;;  %v6891_v1 = vpack.c.bf16 %v9565_v61, %v9564_v26  ;;  %v12015_v60 = vld [vmem:[%s12201_s4] ss:$0 sm:$0xff] }
 0x539   : > { %v6583_v35 = vpack.c.bf16 %v6560_v24, %v6559_v49  ;;  %v6882_v13 = vpack.c.bf16 %v9547_v57, %v9546_v32  ;;  %v6883_v7 = vpack.c.bf16 %v9549_v9, %v9548_v38  ;;  %v9550_v24 = vld [vmem:[%s9696_s30 + $0x80] sm:$0xff]  ;;  %v8903_v31 = vadd.f32 %v12015_v60, %v12908_v8 }
 0x53a   : > { %v6884_v49 = vpack.c.bf16 %v9551_v15, %v9550_v24  ;;  %v12024_v27 = vld [vmem:[%s12203_s6] ss:$0 sm:$0xff]  ;;  %v12915_v15 = vld [vmem:[#allocation105_spill] sm:$0xff] }
 0x53b   : > { %v12909_v48 = vld [vmem:[#allocation100_spill] sm:$0xff] }
 0x53c   : > { %v8894_v52 = vadd.f32 %v12909_v48, %v12015_v60 }
 0x53e   : > { %8827 = vmatmul.mubr.msk.bf16.vlgmr.msra.gmra.mrb[16].mxu1 %vm3608_vm2, %v6576_v19  ;;  %v6563_v19 = vmul.f32 %v6531_v29, %v12906_v55  ;;  %v9557_v29 = vld [vmem:[%s9696_s30 + $0xb8] sm:$0xff]  ;;  %v9559_v55 = vld [vmem:[%s9696_s30 + $0xc8] sm:$0xff] }
 0x53f   : > { %8859 = vmatpush3.bf16.msra.mxu1 %v6949_v51  ;;  %8830 = vmatprep.mubr.msk.bf16.mxu1 %vm3608_vm2, %v6577_v34  ;;  %v6584_v51 = vpack.c.bf16 %v6562_v6, %v6561_v3  ;;  %v6886_v3 = vpack.c.bf16 %v9555_v54, %v9554_v47  ;;  %v9556_v6 = vld [vmem:[%s9696_s30 + $0xb0] sm:$0xff] }
 0x540   : > { %v6585_v34 = vpack.c.bf16 %v6564_v17, %v6563_v19  ;;  %v6887_v33 = vpack.c.bf16 %v9557_v29, %v9556_v6  ;;  %v9558_v17 = vld [vmem:[%s9696_s30 + $0xc0] sm:$0xff] }
 0x541   : > { %v6888_v19 = vpack.c.bf16 %v9559_v55, %v9558_v17 }
 0x546   : > { %8831 = vmatmul.mubr.msk.bf16.gmra.mrb[20].mxu1 %vm3608_vm2, %v6578_v50  ;;  %v11953_v50 = vld [vmem:[#allocation3 + $0x119] sm:$0xff] }
 0x547   : > { %8834 = vmatprep.mubr.msk.bf16.mxu1 %vm3608_vm2, %v6579_v62  ;;  %v11955_v62 = vld [vmem:[#allocation3 + $0x121] sm:$0xff]  ;;  %v6573_v36 = vmul.f32 %v11953_v50, %v11528_v43  ;;  %v6878_v43 = vpack.c.bf16 %v9539_v53, %v9538_v30 }
 0x548   : > { %v6574_v56 = vmul.f32 %v11955_v62, %v12859_v25  ;;  %v6877_v25 = vpack.c.bf16 %v9537_v16, %v9536_v41  ;;  %v12911_v41 = vld [vmem:[#allocation24_spill] sm:$0xff] }
 0x549   : > { %v8906_v16 = vadd.f32 %v12911_v41, %v12015_v60 }
 0x54a   : > { %v6590_v10 = vpack.c.bf16 %v6574_v56, %v6573_v36 }
 0x54e   : > { %8835 = vmatmul.mubr.msk.bf16.gmra.mrb[24].mxu1 %vm3608_vm2, %v6580_v45  ;;  %v6880_v45 = vpack.c.bf16 %v9543_v5, %v9542_v14  ;;  %v12913_v14 = vld [vmem:[#allocation103_spill] sm:$0xff] }
 0x54f   : > { %8838 = vmatprep.mubr.msk.bf16.mxu1 %vm3608_vm2, %v6581_v28  ;;  %v9544_v28 = vld [vmem:[%s9696_s30 + $0x50] sm:$0xff]  ;;  %v8912_v5 = vadd.f32 %v12913_v14, %v12015_v60 }
 0x550   : > { %v6881_v12 = vpack.c.bf16 %v9545_v63, %v9544_v28  ;;  %v8907_v63 = vadd.f32 %v8906_v16, %v12024_v27 }
 0x551   : > { %v8913_v38 = vadd.f32 %v8912_v5, %v12024_v27 }
 0x556   : > { %8839 = vmatmul.mubr.msk.bf16.gmra.mrb[28].mxu1 %vm3608_vm2, %v6582_v22  ;;  %v9552_v22 = vld [vmem:[%s9696_s30 + $0x90] sm:$0xff] }
 0x557   : > { %8842 = vmatprep.mubr.msk.bf16.mxu1 %vm3608_vm2, %v6583_v35  ;;  %v9553_v35 = vld [vmem:[%s9696_s30 + $0x98] sm:$0xff] }
 0x558   : > { %v6885_v11 = vpack.c.bf16 %v9553_v35, %v9552_v22 }
 0x55e   : > { %8843 = vmatmul.mubr.msk.bf16.gmra.mrb[0].mxu1 %vm3608_vm2, %v6584_v51  ;;  %v9560_v51 = vld [vmem:[%s9696_s30 + $0xd0] sm:$0xff] }
 0x55f   : > { %8846 = vmatprep.mubr.msk.bf16.mxu1 %vm3608_vm2, %v6585_v34  ;;  %v9561_v34 = vld [vmem:[%s9696_s30 + $0xd8] sm:$0xff]  ;;  %s7922_s30 = sshll.u32 %s12924_s28, 6 }
 0x560   : > { %v6889_v58 = vpack.c.bf16 %v9561_v34, %v9560_v51  ;;  %v12918_v51 = vld [vmem:[#allocation13_spill] sm:$0xff]  ;;  %s12109_s16 = scalar_lea.vmem %s12205_s8, %s7922_s30 }
 0x561   : > { %v8927_v34 = vadd.f32 %v12015_v60, %v12918_v51 }
 0x566   : > { %8847 = vmatmul.mubr.msk.bf16.gmra.mrb[4].mxu1 %vm3608_vm2, %v6586_v59  ;;  %v12907_v59 = vld [vmem:[#allocation102_spill] sm:$0xff] }
 0x567   : > { %8850 = vmatprep.mubr.msk.bf16.mxu1 %vm3608_vm2, %v6587_v4  ;;  %v8900_v4 = vadd.f32 %v12907_v59, %v12015_v60 }
 0x569   : > { %v8901_v37 = vadd.f32 %v8900_v4, %v12024_v27 }
 0x56e   : > { %8851 = vmatmul.mubr.msk.bf16.gmra.mrb[8].mxu1 %vm3608_vm2, %v6588_v39  ;;  %v8897_v39 = vadd.f32 %v12015_v60, %v12910_v44 }
 0x56f   : > { %8854 = vmatprep.mubr.msk.bf16.mxu1 %vm3608_vm2, %v6589_v2 }
 0x576   : > { %8855 = vmatmul.mubr.msk.bf16.gmra.mrb[12].mxu1 %vm3608_vm2, %v6590_v10  ;;  %v8904_v10 = vadd.f32 %v8903_v31, %v12024_v27 }
 0x577   : > { %8860 = vmatprep.mubr.msk.bf16.mxu1 %vm339_vm0, %v6876_v23 }
 0x57e   : > { %8861 = vmatmul.mubr.msk.bf16.vlgmr.msra.gmra.mrb[16].mxu1 %vm339_vm0, %v6877_v25 }
 0x57f   : > { %8864 = vmatprep.mubr.msk.bf16.mxu1 %vm339_vm0, %v6878_v43  ;;  %v12912_v43 = vld [vmem:[#allocation25_spill] sm:$0xff] }
 0x580   : > { %v8909_v46 = vadd.f32 %v12015_v60, %v12912_v43 }
 0x582   : > { %v8910_v32 = vadd.f32 %v8909_v46, %v12024_v27 }
 0x586   : > { %8865 = vmatmul.mubr.msk.bf16.gmra.mrb[20].mxu1 %vm339_vm0, %v6879_v20 }
 0x587   : > { %8868 = vmatprep.mubr.msk.bf16.mxu1 %vm339_vm0, %v6880_v45  ;;  %v12914_v45 = vld [vmem:[#allocation104_spill] sm:$0xff] }
 0x588   : > { %v8915_v28 = vadd.f32 %v12015_v60, %v12914_v45 }
 0x58a   : > { %v8916_v24 = vadd.f32 %v8915_v28, %v12024_v27 }
 0x58e   : > { %8869 = vmatmul.mubr.msk.bf16.gmra.mrb[24].mxu1 %vm339_vm0, %v6881_v12 }
 0x58f   : > { %8872 = vmatprep.mubr.msk.bf16.mxu1 %vm339_vm0, %v6882_v13 }
 0x596   : > { %8873 = vmatmul.mubr.msk.bf16.gmra.mrb[28].mxu1 %vm339_vm0, %v6883_v7 }
 0x597   : > { %8876 = vmatprep.mubr.msk.bf16.mxu1 %vm339_vm0, %v6884_v49  ;;  %v8918_v49 = vadd.f32 %v12915_v15, %v12015_v60 }
 0x59e   : > { %8877 = vmatmul.mubr.msk.bf16.gmra.mrb[0].mxu1 %vm339_vm0, %v6885_v11  ;;  %v12916_v11 = vld [vmem:[#allocation106_spill] sm:$0xff] }
 0x59f   : > { %8880 = vmatprep.mubr.msk.bf16.mxu1 %vm339_vm0, %v6886_v3  ;;  %v8921_v47 = vadd.f32 %v12015_v60, %v12916_v11  ;;  %v12917_v3 = vld [vmem:[#allocation107_spill] sm:$0xff] }
 0x5a0   : > { %v8924_v6 = vadd.f32 %v12917_v3, %v12015_v60 }
 0x5a2   : > { %v8925_v31 = vadd.f32 %v8924_v6, %v12024_v27 }
 0x5a6   : > { %8881 = vmatmul.mubr.msk.bf16.gmra.mrb[4].mxu1 %vm339_vm0, %v6887_v33 }
 0x5a7   : > { %8884 = vmatprep.mubr.msk.bf16.mxu1 %vm339_vm0, %v6888_v19 }
 0x5ae   : > { %8885 = vmatmul.mubr.msk.bf16.gmra.mrb[8].mxu1 %vm339_vm0, %v6889_v58 }
 0x5af   : > { %8888 = vmatprep.mubr.msk.bf16.mxu1 %vm339_vm0, %v6890_v0  ;;  %v8919_v0 = vadd.f32 %v8918_v49, %v12024_v27 }
 0x5b6   : > { %8889 = vmatmul.mubr.msk.bf16.gmra.mrb[12].mxu1 %vm339_vm0, %v6891_v1  ;;  %v8922_v1 = vadd.f32 %v8921_v47, %v12024_v27 }
 0x651   : > { %v8862_v2 = vpop.f32.mrb[16].mxu1 }
 0x652   : > { %v8895_v56 = vadd.f32 %v8894_v52, %v8862_v2  ;;  %v6985_v36 = vpop.f32.mrb[17].mxu1 }
 0x653   : > { %v8898_v18 = vadd.f32 %v8897_v39, %v6985_v36  ;;  %v8863_v23 = vpop.f32.mrb[18].mxu1 }
 0x654   : > { %v8896_v25 = vadd.f32 %v8895_v56, %v12024_v27  ;;  %v8902_v30 = vadd.f32 %v8901_v37, %v8863_v23  ;;  %v6988_v53 = vpop.f32.mrb[19].mxu1  ;;  %v12919_v56 = vld [vmem:[#allocation36_spill] sm:$0xff]  ;;  %v12920_v37 = vld [vmem:[#allocation37_spill] sm:$0xff] }
 0x655   : > { %v8899_v42 = vadd.f32 %v8898_v18, %v12024_v27  ;;  %v8905_v20 = vadd.f32 %v8904_v10, %v6988_v53  ;;  %v8930_v36 = vadd.f32 %v12919_v56, %v12015_v60  ;;  %v8933_v18 = vadd.f32 %v12015_v60, %v12920_v37 }
 0x656   : > { %7146 = vst.msk [vmem:[#allocation3 + $0x28] sm:$0xff] %vm3608_vm2, %v8896_v25  ;;  %7147 = vst.msk [vmem:[#allocation3 + $0x30] sm:$0xff] %vm3608_vm2, %v8902_v30  ;;  %v8928_v25 = vadd.f32 %v8927_v34, %v12024_v27 }
 0x657   : > { %7144 = vst.msk [vmem:[#allocation3 + $0x18] sm:$0xff] %vm3608_vm2, %v8899_v42  ;;  %7145 = vst.msk [vmem:[#allocation3 + $0x20] sm:$0xff] %vm3608_vm2, %v8905_v20  ;;  %v12921_v42 = vld [vmem:[#allocation108_spill] sm:$0xff]  ;;  %v8931_v15 = vadd.f32 %v8930_v36, %v12024_v27  ;;  %v8934_v11 = vadd.f32 %v8933_v18, %v12024_v27 }
 0x658   : > { %v8936_v20 = vadd.f32 %v12921_v42, %v12015_v60 }
 0x659   : > { %v8866_v12 = vpop.f32.mrb[20].mxu1 }
 0x65a   : > { %v8908_v57 = vadd.f32 %v8907_v63, %v8866_v12  ;;  %v7001_v13 = vpop.f32.mrb[21].mxu1 }
 0x65b   : > { %v8911_v9 = vadd.f32 %v8910_v32, %v7001_v13  ;;  %v8867_v7 = vpop.f32.mrb[22].mxu1 }
 0x65c   : > { %7150 = vst.msk [vmem:[#allocation3 + $0x48] sm:$0xff] %vm3608_vm2, %v8908_v57  ;;  %v8914_v22 = vadd.f32 %v8913_v38, %v8867_v7  ;;  %v7004_v35 = vpop.f32.mrb[23].mxu1  ;;  %v12922_v38 = vld [vmem:[#allocation109_spill] sm:$0xff] }
 0x65d   : > { %7148 = vst.msk [vmem:[#allocation3 + $0x38] sm:$0xff] %vm3608_vm2, %v8911_v9  ;;  %v8917_v54 = vadd.f32 %v8916_v24, %v7004_v35  ;;  %v7178_v58 = vld [vmem:[#allocation3 + $0x28] sm:$0xff]  ;;  %v7179_v59 = vld [vmem:[#allocation3 + $0x30] sm:$0xff]  ;;  %v8939_v9 = vadd.f32 %v12015_v60, %v12922_v38 }
 0x65e   : > { %v7176_v29 = vld [vmem:[#allocation3 + $0x18] sm:$0xff]  ;;  %v7177_v33 = vld [vmem:[#allocation3 + $0x20] sm:$0xff]  ;;  %7151 = vst.msk [vmem:[#allocation3 + $0x50] sm:$0xff] %vm3608_vm2, %v8914_v22  ;;  %v7210_v40 = vld [vmem:[#allocation3 + $0x29] sm:$0xff] }
 0x65f   : > { %v7208_v17 = vld [vmem:[#allocation3 + $0x19] sm:$0xff]  ;;  %v7209_v55 = vld [vmem:[#allocation3 + $0x21] sm:$0xff]  ;;  %7149 = vst.msk [vmem:[#allocation3 + $0x40] sm:$0xff] %vm3608_vm2, %v8917_v54  ;;  %v7242_v48 = vadd.f32 %v7210_v40, %v7178_v58 }
 0x660   : > { %v7240_v19 = vadd.f32 %v7208_v17, %v7176_v29  ;;  %v7241_v21 = vadd.f32 %v7209_v55, %v7177_v33  ;;  %v8937_v33 = vadd.f32 %v8936_v20, %v12024_v27 }
 0x661   : > { %v8870_v61 = vpop.f32.mrb[24].mxu1 }
 0x662   : > { %v7274_v26 = vadd.f32 %v7240_v19, %v7178_v58  ;;  %v8920_v4 = vadd.f32 %v8919_v0, %v8870_v61  ;;  %v7017_v8 = vpop.f32.mrb[25].mxu1  ;;  %v7275_v52 = vadd.f32 %v7241_v21, %v7179_v59 }
 0x663   : > { %v8923_v39 = vadd.f32 %v8922_v1, %v7017_v8  ;;  %v8871_v2 = vpop.f32.mrb[26].mxu1  ;;  %v7182_v7 = vld [vmem:[#allocation3 + $0x48] sm:$0xff] }
 0x664   : > { %v7308_v44 = vadd.f32 %v7274_v26, %v7210_v40  ;;  %v7180_v23 = vld [vmem:[#allocation3 + $0x38] sm:$0xff]  ;;  %7154 = vst.msk [vmem:[#allocation3 + $0x68] sm:$0xff] %vm3608_vm2, %v8920_v4  ;;  %v8926_v41 = vadd.f32 %v8925_v31, %v8871_v2  ;;  %v7020_v16 = vpop.f32.mrb[27].mxu1  ;;  %v8940_v26 = vadd.f32 %v8939_v9, %v12024_v27 }
 0x665   : > { %v7211_v10 = vld [vmem:[#allocation3 + $0x31] sm:$0xff]  ;;  %v7276_v53 = vadd.f32 %v7242_v48, %v7180_v23  ;;  %7152 = vst.msk [vmem:[#allocation3 + $0x58] sm:$0xff] %vm3608_vm2, %v8923_v39  ;;  %v8929_v28 = vadd.f32 %v8928_v25, %v7020_v16  ;;  %v7214_v12 = vld [vmem:[#allocation3 + $0x49] sm:$0xff]  ;;  %v12092_v39 = vadd.f32 %v12024_v27, %v12015_v60 }
 0x666   : > { %v7340_v30 = vmul.f32 0.25, %v7308_v44  ;;  %v7309_v43 = vadd.f32 %v7275_v52, %v7211_v10  ;;  %v7243_v46 = vadd.f32 %v7211_v10, %v7179_v59  ;;  %v7181_v14 = vld [vmem:[#allocation3 + $0x40] sm:$0xff]  ;;  %7155 = vst.msk [vmem:[#allocation3 + $0x70] sm:$0xff] %vm3608_vm2, %v8926_v41  ;;  %v7183_v47 = vld [vmem:[#allocation3 + $0x50] sm:$0xff]  ;;  %v7246_v3 = vadd.f32 %v7214_v12, %v7182_v7 }
 0x667   : > { %v7212_v5 = vld [vmem:[#allocation3 + $0x39] sm:$0xff]  ;;  %v7213_v45 = vld [vmem:[#allocation3 + $0x41] sm:$0xff]  ;;  %7153 = vst.msk [vmem:[#allocation3 + $0x60] sm:$0xff] %vm3608_vm2, %v8929_v28 }
 0x668   : > { %7372 = vst.msk [vmem:[#allocation3 + $0x18] sm:$0xff] %vm3608_vm2, %v7340_v30  ;;  %v7341_v63 = vmul.f32 0.25, %v7309_v43  ;;  %v7244_v32 = vadd.f32 %v7212_v5, %v7180_v23  ;;  %v7245_v57 = vadd.f32 %v7213_v45, %v7181_v14  ;;  %v7277_v13 = vadd.f32 %v7243_v46, %v7181_v14 }
 0x669   : > { %v7310_v24 = vadd.f32 %v7276_v53, %v7212_v5  ;;  %v8874_v35 = vpop.f32.mrb[28].mxu1 }
 0x66a   : > { %7373 = vst.msk [vmem:[#allocation3 + $0x20] sm:$0xff] %vm3608_vm2, %v7341_v63  ;;  %v7278_v49 = vadd.f32 %v7244_v32, %v7182_v7  ;;  %v7311_v22 = vadd.f32 %v7277_v13, %v7213_v45  ;;  %v8932_v6 = vadd.f32 %v8931_v15, %v8874_v35  ;;  %v7033_v29 = vpop.f32.mrb[29].mxu1  ;;  %v7279_v17 = vadd.f32 %v7245_v57, %v7183_v47 }
 0x66b   : > { %v7342_v54 = vmul.f32 0.25, %v7310_v24  ;;  %v8935_v51 = vadd.f32 %v8934_v11, %v7033_v29  ;;  %v8875_v34 = vpop.f32.mrb[30].mxu1  ;;  %v7186_v10 = vld [vmem:[#allocation3 + $0x68] sm:$0xff] }
 0x66c   : > { %v7312_v55 = vadd.f32 %v7278_v49, %v7214_v12  ;;  %v7343_v19 = vmul.f32 0.25, %v7311_v22  ;;  %v7184_v58 = vld [vmem:[#allocation3 + $0x58] sm:$0xff]  ;;  %7158 = vst.msk [vmem:[#allocation3 + $0x88] sm:$0xff] %vm3608_vm2, %v8932_v6  ;;  %v8938_v21 = vadd.f32 %v8937_v33, %v8875_v34  ;;  %v7036_v0 = vpop.f32.mrb[31].mxu1 }
 0x66d   : > { %7374 = vst.msk [vmem:[#allocation3 + $0x28] sm:$0xff] %vm3608_vm2, %v7342_v54  ;;  %v7215_v40 = vld [vmem:[#allocation3 + $0x51] sm:$0xff]  ;;  %v7280_v1 = vadd.f32 %v7246_v3, %v7184_v58  ;;  %7156 = vst.msk [vmem:[#allocation3 + $0x78] sm:$0xff] %vm3608_vm2, %v8935_v51  ;;  %v8941_v8 = vadd.f32 %v8940_v26, %v7036_v0  ;;  %v7218_v56 = vld [vmem:[#allocation3 + $0x69] sm:$0xff] }
 0x66e   : > { %v7344_v61 = vmul.f32 0.25, %v7312_v55  ;;  %7375 = vst.msk [vmem:[#allocation3 + $0x30] sm:$0xff] %vm3608_vm2, %v7343_v19  ;;  %v7313_v59 = vadd.f32 %v7279_v17, %v7215_v40  ;;  %v7247_v4 = vadd.f32 %v7215_v40, %v7183_v47  ;;  %7159 = vst.msk [vmem:[#allocation3 + $0x90] sm:$0xff] %vm3608_vm2, %v8938_v21  ;;  %v7185_v48 = vld [vmem:[#allocation3 + $0x60] sm:$0xff]  ;;  %v7187_v16 = vld [vmem:[#allocation3 + $0x70] sm:$0xff]  ;;  %v7250_v43 = vadd.f32 %v7218_v56, %v7186_v10 }
 0x66f   : > { %v7216_v52 = vld [vmem:[#allocation3 + $0x59] sm:$0xff]  ;;  %v7217_v44 = vld [vmem:[#allocation3 + $0x61] sm:$0xff]  ;;  %7157 = vst.msk [vmem:[#allocation3 + $0x80] sm:$0xff] %vm3608_vm2, %v8941_v8 }
 0x670   : > { %7376 = vst.msk [vmem:[#allocation3 + $0x38] sm:$0xff] %vm3608_vm2, %v7344_v61  ;;  %v7345_v31 = vmul.f32 0.25, %v7313_v59  ;;  %v7248_v36 = vadd.f32 %v7216_v52, %v7184_v58  ;;  %v7249_v37 = vadd.f32 %v7217_v44, %v7185_v48  ;;  %v7281_v18 = vadd.f32 %v7247_v4, %v7185_v48 }
 0x671   : > { %v7405_v2 = vld [vmem:[#allocation3 + $0x18] ss:$2 sm:$0xff]  ;;  %v7314_v23 = vadd.f32 %v7280_v1, %v7216_v52  ;;  %v8878_v41 = vpop.f32.mrb[0].mxu1 }
 0x672   : > { %7436 = vst.msk [vmem:[#allocation3 + $0x18] sm:$0xff] %vm3608_vm2, %v7405_v2  ;;  %7377 = vst.msk [vmem:[#allocation3 + $0x40] sm:$0xff] %vm3608_vm2, %v7345_v31  ;;  %v7282_v25 = vadd.f32 %v7248_v36, %v7186_v10  ;;  %v7315_v30 = vadd.f32 %v7281_v18, %v7217_v44  ;;  %v7049_v27 = vpop.f32.mrb[1].mxu1  ;;  %v7283_v53 = vadd.f32 %v7249_v37, %v7187_v16 }
 0x673   : > { %v7346_v60 = vmul.f32 0.25, %v7314_v23  ;;  %v8943_v46 = vadd.f32 %v12092_v39, %v8878_v41  ;;  %v8945_v42 = vadd.f32 %v12092_v39, %v7049_v27  ;;  %v8879_v20 = vpop.f32.mrb[2].mxu1  ;;  %v7190_v33 = vld [vmem:[#allocation3 + $0x88] sm:$0xff] }
 0x674   : > { %v7316_v5 = vadd.f32 %v7282_v25, %v7218_v56  ;;  %v7347_v45 = vmul.f32 0.25, %v7315_v30  ;;  %v7188_v28 = vld [vmem:[#allocation3 + $0x78] sm:$0xff]  ;;  %v8947_v12 = vadd.f32 %v12092_v39, %v8879_v20  ;;  %v7052_v32 = vpop.f32.mrb[3].mxu1 }
 0x675   : > { %v7407_v14 = vld [vmem:[#allocation3 + $0x28] ss:$2 sm:$0xff]  ;;  %7378 = vst.msk [vmem:[#allocation3 + $0x48] sm:$0xff] %vm3608_vm2, %v7346_v60  ;;  %v7284_v57 = vadd.f32 %v7250_v43, %v7188_v28  ;;  %7162 = vst.msk [vmem:[#allocation3 + $0xa8] sm:$0xff] %vm3608_vm2, %v8943_v46  ;;  %v8949_v9 = vadd.f32 %v12092_v39, %v7052_v32 }
 0x676   : > { %v7219_v63 = vld [vmem:[#allocation3 + $0x71] sm:$0xff]  ;;  %7437 = vst.msk [vmem:[#allocation3 + $0x20] sm:$0xff] %vm3608_vm2, %v7407_v14  ;;  %7160 = vst.msk [vmem:[#allocation3 + $0x98] sm:$0xff] %vm3608_vm2, %v8945_v42  ;;  %v7348_v7 = vmul.f32 0.25, %v7316_v5  ;;  %v7189_v15 = vld [vmem:[#allocation3 + $0x80] sm:$0xff] }
 0x677   : > { %v7317_v13 = vadd.f32 %v7283_v53, %v7219_v63  ;;  %v7251_v38 = vadd.f32 %v7219_v63, %v7187_v16  ;;  %7379 = vst.msk [vmem:[#allocation3 + $0x50] sm:$0xff] %vm3608_vm2, %v7347_v45  ;;  %7163 = vst.msk [vmem:[#allocation3 + $0xb0] sm:$0xff] %vm3608_vm2, %v8947_v12  ;;  %v7220_v49 = vld [vmem:[#allocation3 + $0x79] sm:$0xff]  ;;  %v7221_v22 = vld [vmem:[#allocation3 + $0x81] sm:$0xff] }
 0x678   : > { %7161 = vst.msk [vmem:[#allocation3 + $0xa0] sm:$0xff] %vm3608_vm2, %v8949_v9  ;;  %7380 = vst.msk [vmem:[#allocation3 + $0x58] sm:$0xff] %vm3608_vm2, %v7348_v7  ;;  %v7222_v47 = vld [vmem:[#allocation3 + $0x89] sm:$0xff]  ;;  %v7252_v54 = vadd.f32 %v7220_v49, %v7188_v28  ;;  %v7253_v3 = vadd.f32 %v7221_v22, %v7189_v15  ;;  %v7318_v29 = vadd.f32 %v7284_v57, %v7220_v49 }
 0x679   : > { %v7349_v24 = vmul.f32 0.25, %v7317_v13  ;;  %v7452_v35 = vld [vmem:[#allocation3 + $0x18] sm:$0xff]  ;;  %v7285_v6 = vadd.f32 %v7251_v38, %v7189_v15  ;;  %v8882_v17 = vpop.f32.mrb[4].mxu1  ;;  %v7191_v55 = vld [vmem:[#allocation3 + $0x90] sm:$0xff]  ;;  %v7254_v21 = vadd.f32 %v7222_v47, %v7190_v33 }
 0x67a   : > { %v7409_v11 = vld [vmem:[#allocation3 + $0x38] ss:$2 sm:$0xff]  ;;  %7453 = vst.msk [vmem:[%s12109_s16] sm:$0xff] %vm3608_vm2, %v7452_v35  ;;  %v7286_v19 = vadd.f32 %v7252_v54, %v7190_v33  ;;  %v7350_v34 = vmul.f32 0.25, %v7318_v29  ;;  %v7065_v58 = vpop.f32.mrb[5].mxu1  ;;  %v7287_v40 = vadd.f32 %v7253_v3, %v7191_v55  ;;  %v8951_v0 = vadd.f32 %v12092_v39, %v8882_v17 }
 0x67b   : > { %7438 = vst.msk [vmem:[#allocation3 + $0x28] sm:$0xff] %vm3608_vm2, %v7409_v11  ;;  %7381 = vst.msk [vmem:[#allocation3 + $0x60] sm:$0xff] %vm3608_vm2, %v7349_v24  ;;  %v7319_v51 = vadd.f32 %v7285_v6, %v7221_v22  ;;  %v8953_v26 = vadd.f32 %v12092_v39, %v7065_v58  ;;  %v8883_v61 = vpop.f32.mrb[6].mxu1 }
 0x67c   : > { %v7320_v1 = vadd.f32 %v7286_v19, %v7222_v47  ;;  %7382 = vst.msk [vmem:[#allocation3 + $0x68] sm:$0xff] %vm3608_vm2, %v7350_v34  ;;  %v8955_v31 = vadd.f32 %v12092_v39, %v8883_v61  ;;  %v7068_v48 = vpop.f32.mrb[7].mxu1  ;;  %7166 = vst.msk [vmem:[#allocation3 + $0xc8] sm:$0xff] %vm3608_vm2, %v8951_v0  ;;  %v7194_v43 = vld [vmem:[#allocation3 + $0xa8] sm:$0xff] }
 0x67d   : > { %v7351_v59 = vmul.f32 0.25, %v7319_v51  ;;  %v7192_v4 = vld [vmem:[#allocation3 + $0x98] sm:$0xff]  ;;  %7164 = vst.msk [vmem:[#allocation3 + $0xb8] sm:$0xff] %vm3608_vm2, %v8953_v26  ;;  %v8957_v36 = vadd.f32 %v12092_v39, %v7068_v48 }
 0x67e   : > { %v7223_v8 = vld [vmem:[#allocation3 + $0x91] sm:$0xff]  ;;  %v7288_v44 = vadd.f32 %v7254_v21, %v7192_v4  ;;  %v7352_v37 = vmul.f32 0.25, %v7320_v1  ;;  %7167 = vst.msk [vmem:[#allocation3 + $0xd0] sm:$0xff] %vm3608_vm2, %v8955_v31  ;;  %v7226_v16 = vld [vmem:[#allocation3 + $0xa9] sm:$0xff] }
 0x67f   : > { %v7411_v52 = vld [vmem:[#allocation3 + $0x48] ss:$2 sm:$0xff]  ;;  %v7321_v2 = vadd.f32 %v7287_v40, %v7223_v8  ;;  %v7255_v56 = vadd.f32 %v7223_v8, %v7191_v55  ;;  %7383 = vst.msk [vmem:[#allocation3 + $0x70] sm:$0xff] %vm3608_vm2, %v7351_v59  ;;  %v7193_v18 = vld [vmem:[#allocation3 + $0xa0] sm:$0xff]  ;;  %7165 = vst.msk [vmem:[#allocation3 + $0xc0] sm:$0xff] %vm3608_vm2, %v8957_v36  ;;  %v7258_v45 = vadd.f32 %v7226_v16, %v7194_v43 }
 0x680   : > { %7439 = vst.msk [vmem:[#allocation3 + $0x30] sm:$0xff] %vm3608_vm2, %v7411_v52  ;;  %v7224_v23 = vld [vmem:[#allocation3 + $0x99] sm:$0xff]  ;;  %v7225_v10 = vld [vmem:[#allocation3 + $0xa1] sm:$0xff]  ;;  %7384 = vst.msk [vmem:[#allocation3 + $0x78] sm:$0xff] %vm3608_vm2, %v7352_v37 }
 0x681   : > { %v7353_v41 = vmul.f32 0.25, %v7321_v2  ;;  %v7256_v25 = vadd.f32 %v7224_v23, %v7192_v4  ;;  %v7257_v30 = vadd.f32 %v7225_v10, %v7193_v18  ;;  %v7289_v60 = vadd.f32 %v7255_v56, %v7193_v18  ;;  %v8886_v14 = vpop.f32.mrb[8].mxu1  ;;  %v7195_v5 = vld [vmem:[#allocation3 + $0xb0] sm:$0xff] }
 0x682   : > { %v7454_v27 = vld [vmem:[#allocation3 + $0x28] sm:$0xff]  ;;  %v7413_v53 = vld [vmem:[#allocation3 + $0x58] ss:$2 sm:$0xff]  ;;  %v7322_v46 = vadd.f32 %v7288_v44, %v7224_v23  ;;  %v8959_v63 = vadd.f32 %v12092_v39, %v8886_v14  ;;  %v7081_v12 = vpop.f32.mrb[9].mxu1 }
 0x683   : > { %7455 = vst.msk [vmem:[%s12109_s16 + $0x8] sm:$0xff] %vm3608_vm2, %v7454_v27  ;;  %7440 = vst.msk [vmem:[#allocation3 + $0x38] sm:$0xff] %vm3608_vm2, %v7413_v53  ;;  %v7290_v42 = vadd.f32 %v7256_v25, %v7194_v43  ;;  %v7323_v20 = vadd.f32 %v7289_v60, %v7225_v10  ;;  %v7291_v32 = vadd.f32 %v7257_v30, %v7195_v5  ;;  %v8887_v9 = vpop.f32.mrb[10].mxu1  ;;  %v7198_v40 = vld [vmem:[#allocation3 + $0xc8] sm:$0xff] }
 0x684   : > { %7385 = vst.msk [vmem:[#allocation3 + $0x80] sm:$0xff] %vm3608_vm2, %v7353_v41  ;;  %v7354_v28 = vmul.f32 0.25, %v7322_v46  ;;  %v8961_v38 = vadd.f32 %v12092_v39, %v7081_v12  ;;  %v7196_v7 = vld [vmem:[#allocation3 + $0xb8] sm:$0xff]  ;;  %7170 = vst.msk [vmem:[#allocation3 + $0xe8] sm:$0xff] %vm3608_vm2, %v8959_v63  ;;  %v8963_v15 = vadd.f32 %v12092_v39, %v8887_v9  ;;  %v7084_v49 = vpop.f32.mrb[11].mxu1 }
 0x685   : > { %v7324_v57 = vadd.f32 %v7290_v42, %v7226_v16  ;;  %v7355_v13 = vmul.f32 0.25, %v7323_v20  ;;  %v7227_v24 = vld [vmem:[#allocation3 + $0xb1] sm:$0xff]  ;;  %v7292_v47 = vadd.f32 %v7258_v45, %v7196_v7  ;;  %v8965_v33 = vadd.f32 %v12092_v39, %v7084_v49  ;;  %v7230_v0 = vld [vmem:[#allocation3 + $0xc9] sm:$0xff] }
 0x686   : > { %7386 = vst.msk [vmem:[#allocation3 + $0x88] sm:$0xff] %vm3608_vm2, %v7354_v28  ;;  %v7415_v22 = vld [vmem:[#allocation3 + $0x68] ss:$2 sm:$0xff]  ;;  %v7259_v11 = vadd.f32 %v7227_v24, %v7195_v5  ;;  %v7325_v54 = vadd.f32 %v7291_v32, %v7227_v24  ;;  %7168 = vst.msk [vmem:[#allocation3 + $0xd8] sm:$0xff] %vm3608_vm2, %v8961_v38  ;;  %v7197_v3 = vld [vmem:[#allocation3 + $0xc0] sm:$0xff]  ;;  %v7262_v41 = vadd.f32 %v7230_v0, %v7198_v40 }
 0x687   : > { %v7356_v35 = vmul.f32 0.25, %v7324_v57  ;;  %7387 = vst.msk [vmem:[#allocation3 + $0x90] sm:$0xff] %vm3608_vm2, %v7355_v13  ;;  %7441 = vst.msk [vmem:[#allocation3 + $0x40] sm:$0xff] %vm3608_vm2, %v7415_v22  ;;  %v7228_v6 = vld [vmem:[#allocation3 + $0xb9] sm:$0xff]  ;;  %v7229_v29 = vld [vmem:[#allocation3 + $0xc1] sm:$0xff] }
 0x688   : > { %7171 = vst.msk [vmem:[#allocation3 + $0xf0] sm:$0xff] %vm3608_vm2, %v8963_v15  ;;  %v7357_v17 = vmul.f32 0.25, %v7325_v54  ;;  %v7260_v55 = vadd.f32 %v7228_v6, %v7196_v7  ;;  %v7261_v19 = vadd.f32 %v7229_v29, %v7197_v3  ;;  %v7293_v51 = vadd.f32 %v7259_v11, %v7197_v3  ;;  %7169 = vst.msk [vmem:[#allocation3 + $0xe0] sm:$0xff] %vm3608_vm2, %v8965_v33  ;;  %v7199_v59 = vld [vmem:[#allocation3 + $0xd0] sm:$0xff]  ;;  %v7272_v9 = vld [vmem:[#allocation3 + $0x118] sm:$0xff] }
 0x689   : > { %7388 = vst.msk [vmem:[#allocation3 + $0x98] sm:$0xff] %vm3608_vm2, %v7356_v35  ;;  %v7326_v21 = vadd.f32 %v7292_v47, %v7228_v6  ;;  %v8890_v1 = vpop.f32.mrb[12].mxu1  ;;  %v7273_v7 = vld [vmem:[#allocation3 + $0x120] sm:$0xff] }
 0x68a   : > { %v7456_v34 = vld [vmem:[#allocation3 + $0x38] sm:$0xff]  ;;  %7389 = vst.msk [vmem:[#allocation3 + $0xa0] sm:$0xff] %vm3608_vm2, %v7357_v17  ;;  %v7294_v26 = vadd.f32 %v7260_v55, %v7198_v40  ;;  %v7327_v61 = vadd.f32 %v7293_v51, %v7229_v29  ;;  %v8967_v8 = vadd.f32 %v12092_v39, %v8890_v1  ;;  %v7097_v31 = vpop.f32.mrb[13].mxu1  ;;  %v7295_v48 = vadd.f32 %v7261_v19, %v7199_v59 }
 0x68b   : > { %v7417_v58 = vld [vmem:[#allocation3 + $0x78] ss:$2 sm:$0xff]  ;;  %7457 = vst.msk [vmem:[%s12109_s16 + $0x10] sm:$0xff] %vm3608_vm2, %v7456_v34  ;;  %v7358_v4 = vmul.f32 0.25, %v7326_v21  ;;  %v8969_v2 = vadd.f32 %v12092_v39, %v7097_v31  ;;  %v8891_v56 = vpop.f32.mrb[14].mxu1  ;;  %v7202_v12 = vld [vmem:[#allocation3 + $0xe8] sm:$0xff] }
 0x68c   : > { %7442 = vst.msk [vmem:[#allocation3 + $0x48] sm:$0xff] %vm3608_vm2, %v7417_v58  ;;  %v7328_v52 = vadd.f32 %v7294_v26, %v7230_v0  ;;  %v7359_v44 = vmul.f32 0.25, %v7327_v61  ;;  %7174 = vst.msk [vmem:[#allocation3 + $0x108] sm:$0xff] %vm3608_vm2, %v8967_v8  ;;  %v8971_v18 = vadd.f32 %v12092_v39, %v8891_v56  ;;  %v7100_v23 = vpop.f32.mrb[15].mxu1 }
 0x68d   : > { %7390 = vst.msk [vmem:[#allocation3 + $0xa8] sm:$0xff] %vm3608_vm2, %v7358_v4  ;;  %v7231_v37 = vld [vmem:[#allocation3 + $0xd1] sm:$0xff]  ;;  %7172 = vst.msk [vmem:[#allocation3 + $0xf8] sm:$0xff] %vm3608_vm2, %v8969_v2  ;;  %v8973_v30 = vadd.f32 %v12092_v39, %v7100_v23 }
 0x68e   : > { %v7419_v36 = vld [vmem:[#allocation3 + $0x88] ss:$2 sm:$0xff]  ;;  %v7200_v10 = vld [vmem:[#allocation3 + $0xd8] sm:$0xff]  ;;  %v7360_v16 = vmul.f32 0.25, %v7328_v52  ;;  %7391 = vst.msk [vmem:[#allocation3 + $0xb0] sm:$0xff] %vm3608_vm2, %v7359_v44  ;;  %v7329_v25 = vadd.f32 %v7295_v48, %v7231_v37  ;;  %v7263_v60 = vadd.f32 %v7231_v37, %v7199_v59  ;;  %7175 = vst.msk [vmem:[#allocation3 + $0x110] sm:$0xff] %vm3608_vm2, %v8971_v18 }
 0x68f   : > { %7443 = vst.msk [vmem:[#allocation3 + $0x50] sm:$0xff] %vm3608_vm2, %v7419_v36  ;;  %v7296_v27 = vadd.f32 %v7262_v41, %v7200_v10  ;;  %v7232_v43 = vld [vmem:[#allocation3 + $0xd9] sm:$0xff]  ;;  %7173 = vst.msk [vmem:[#allocation3 + $0x100] sm:$0xff] %vm3608_vm2, %v8973_v30  ;;  %v7233_v42 = vld [vmem:[#allocation3 + $0xe1] sm:$0xff] }
 0x690   : > { %7392 = vst.msk [vmem:[#allocation3 + $0xb8] sm:$0xff] %vm3608_vm2, %v7360_v16  ;;  %v7361_v53 = vmul.f32 0.25, %v7329_v25  ;;  %v7201_v46 = vld [vmem:[#allocation3 + $0xe0] sm:$0xff]  ;;  %v7234_v5 = vld [vmem:[#allocation3 + $0xe9] sm:$0xff]  ;;  %v7264_v45 = vadd.f32 %v7232_v43, %v7200_v10 }
 0x691   : > { %v7421_v14 = vld [vmem:[#allocation3 + $0x98] ss:$2 sm:$0xff]  ;;  %v7265_v28 = vadd.f32 %v7233_v42, %v7201_v46  ;;  %v7297_v63 = vadd.f32 %v7263_v60, %v7201_v46  ;;  %v7330_v39 = vadd.f32 %v7296_v27, %v7232_v43  ;;  %v7203_v32 = vld [vmem:[#allocation3 + $0xf0] sm:$0xff]  ;;  %v7266_v15 = vadd.f32 %v7234_v5, %v7202_v12 }
 0x692   : > { %7444 = vst.msk [vmem:[#allocation3 + $0x58] sm:$0xff] %vm3608_vm2, %v7421_v14  ;;  %7393 = vst.msk [vmem:[#allocation3 + $0xc0] sm:$0xff] %vm3608_vm2, %v7361_v53  ;;  %v7298_v57 = vadd.f32 %v7264_v45, %v7202_v12 }
 0x693   : > { %v7458_v20 = vld [vmem:[#allocation3 + $0x48] sm:$0xff]  ;;  %v7331_v13 = vadd.f32 %v7297_v63, %v7233_v42  ;;  %v7362_v38 = vmul.f32 0.25, %v7330_v39  ;;  %v7299_v49 = vadd.f32 %v7265_v28, %v7203_v32 }
 0x694   : > { %7459 = vst.msk [vmem:[%s12109_s16 + $0x18] sm:$0xff] %vm3608_vm2, %v7458_v20  ;;  %v7206_v24 = vld [vmem:[#allocation3 + $0x108] sm:$0xff]  ;;  %v7204_v35 = vld [vmem:[#allocation3 + $0xf8] sm:$0xff]  ;;  %v7332_v47 = vadd.f32 %v7298_v57, %v7234_v5 }
 0x695   : > { %v7423_v22 = vld [vmem:[#allocation3 + $0xa8] ss:$2 sm:$0xff]  ;;  %v7363_v54 = vmul.f32 0.25, %v7331_v13  ;;  %7394 = vst.msk [vmem:[#allocation3 + $0xc8] sm:$0xff] %vm3608_vm2, %v7362_v38  ;;  %v7300_v17 = vadd.f32 %v7266_v15, %v7204_v35 }
 0x696   : > { %v7235_v11 = vld [vmem:[#allocation3 + $0xf1] sm:$0xff]  ;;  %7445 = vst.msk [vmem:[#allocation3 + $0x60] sm:$0xff] %vm3608_vm2, %v7423_v22  ;;  %v7238_v6 = vld [vmem:[#allocation3 + $0x109] sm:$0xff]  ;;  %v7205_v34 = vld [vmem:[#allocation3 + $0x100] sm:$0xff]  ;;  %v7364_v21 = vmul.f32 0.25, %v7332_v47 }
 0x697   : > { %v7207_v3 = vld [vmem:[#allocation3 + $0x110] sm:$0xff]  ;;  %v7267_v33 = vadd.f32 %v7235_v11, %v7203_v32  ;;  %v7333_v55 = vadd.f32 %v7299_v49, %v7235_v11  ;;  %v7270_v19 = vadd.f32 %v7238_v6, %v7206_v24  ;;  %v7236_v58 = vld [vmem:[#allocation3 + $0xf9] sm:$0xff]  ;;  %v7237_v40 = vld [vmem:[#allocation3 + $0x101] sm:$0xff]  ;;  %7395 = vst.msk [vmem:[#allocation3 + $0xd0] sm:$0xff] %vm3608_vm2, %v7363_v54 }
 0x698   : > { %v7239_v29 = vld [vmem:[#allocation3 + $0x111] sm:$0xff]  ;;  %v7268_v0 = vadd.f32 %v7236_v58, %v7204_v35  ;;  %v7269_v26 = vadd.f32 %v7237_v40, %v7205_v34  ;;  %v7334_v1 = vadd.f32 %v7300_v17, %v7236_v58  ;;  %7396 = vst.msk [vmem:[#allocation3 + $0xd8] sm:$0xff] %vm3608_vm2, %v7364_v21 }
 0x699   : > { %v7271_v51 = vadd.f32 %v7239_v29, %v7207_v3  ;;  %v7301_v61 = vadd.f32 %v7267_v33, %v7205_v34  ;;  %v7460_v59 = vld [vmem:[#allocation3 + $0x58] sm:$0xff]  ;;  %v7304_v8 = vadd.f32 %v7272_v9, %v7270_v19  ;;  %v7365_v48 = vmul.f32 0.25, %v7333_v55 }
 0x69a   : > { %v7425_v4 = vld [vmem:[#allocation3 + $0xb8] ss:$2 sm:$0xff]  ;;  %7461 = vst.msk [vmem:[%s12109_s16 + $0x20] sm:$0xff] %vm3608_vm2, %v7460_v59  ;;  %v7302_v52 = vadd.f32 %v7268_v0, %v7206_v24  ;;  %v7303_v44 = vadd.f32 %v7269_v26, %v7207_v3  ;;  %v7366_v56 = vmul.f32 0.25, %v7334_v1 }
 0x69b   : > { %v7305_v31 = vadd.f32 %v7273_v7, %v7271_v51  ;;  %7446 = vst.msk [vmem:[#allocation3 + $0x68] sm:$0xff] %vm3608_vm2, %v7425_v4  ;;  %v7335_v2 = vadd.f32 %v7301_v61, %v7237_v40  ;;  %v7338_v36 = vadd.f32 %v11953_v50, %v7304_v8  ;;  %7397 = vst.msk [vmem:[#allocation3 + $0xe0] sm:$0xff] %vm3608_vm2, %v7365_v48 }
 0x69c   : > { %v7336_v18 = vadd.f32 %v7302_v52, %v7238_v6  ;;  %v7337_v23 = vadd.f32 %v7303_v44, %v7239_v29  ;;  %7398 = vst.msk [vmem:[#allocation3 + $0xe8] sm:$0xff] %vm3608_vm2, %v7366_v56 }
 0x69d   : > { %v7339_v37 = vadd.f32 %v7305_v31, %v11955_v62  ;;  %v7367_v10 = vmul.f32 0.25, %v7335_v2  ;;  %v7370_v41 = vmul.f32 0.25, %v7338_v36 }
 0x69e   : > { %v7368_v25 = vmul.f32 0.25, %v7336_v18  ;;  %v7369_v30 = vmul.f32 0.25, %v7337_v23  ;;  %v7427_v60 = vld [vmem:[#allocation3 + $0xc8] ss:$2 sm:$0xff] }
 0x69f   : > { %v7371_v16 = vmul.f32 0.25, %v7339_v37  ;;  %7399 = vst.msk [vmem:[#allocation3 + $0xf0] sm:$0xff] %vm3608_vm2, %v7367_v10  ;;  %7402 = vst.msk [vmem:[#allocation3 + $0x108] sm:$0xff] %vm3608_vm2, %v7370_v41 }
 0x6a0   : > { %7447 = vst.msk [vmem:[#allocation3 + $0x70] sm:$0xff] %vm3608_vm2, %v7427_v60  ;;  %7400 = vst.msk [vmem:[#allocation3 + $0xf8] sm:$0xff] %vm3608_vm2, %v7368_v25 }
 0x6a1   : > { %7403 = vst.msk [vmem:[#allocation3 + $0x110] sm:$0xff] %vm3608_vm2, %v7371_v16  ;;  %7401 = vst.msk [vmem:[#allocation3 + $0x100] sm:$0xff] %vm3608_vm2, %v7369_v30 }
 0x6a2   : > { %v7462_v50 = vld [vmem:[#allocation3 + $0x68] sm:$0xff]  ;;  %v7429_v62 = vld [vmem:[#allocation3 + $0xd8] ss:$2 sm:$0xff] }
 0x6a3   : > { %7463 = vst.msk [vmem:[%s12109_s16 + $0x28] sm:$0xff] %vm3608_vm2, %v7462_v50  ;;  %7448 = vst.msk [vmem:[#allocation3 + $0x78] sm:$0xff] %vm3608_vm2, %v7429_v62 }
 0x6a6   : > { %v7431_v27 = vld [vmem:[#allocation3 + $0xe8] ss:$2 sm:$0xff] }
 0x6a7   : > { %7449 = vst.msk [vmem:[#allocation3 + $0x80] sm:$0xff] %vm3608_vm2, %v7431_v27 }
 0x6a8   : > { %v7435_v53 = vld [vmem:[#allocation3 + $0x108] ss:$2 sm:$0xff]  ;;  %v7433_v43 = vld [vmem:[#allocation3 + $0xf8] ss:$2 sm:$0xff] }
 0x6a9   : > { %7451 = vst.msk [vmem:[#allocation3 + $0x90] sm:$0xff] %vm3608_vm2, %v7435_v53  ;;  %7450 = vst.msk [vmem:[#allocation3 + $0x88] sm:$0xff] %vm3608_vm2, %v7433_v43 }
 0x6aa   : > { %v7464_v46 = vld [vmem:[#allocation3 + $0x78] sm:$0xff] }
 0x6ab   : > { %7465 = vst.msk [vmem:[%s12109_s16 + $0x30] sm:$0xff] %vm3608_vm2, %v7464_v46 }
 0x6b0   : > { %v7466_v42 = vld [vmem:[#allocation3 + $0x88] sm:$0xff] }
 0x6b1   : > { %7467 = vst.msk [vmem:[%s12109_s16 + $0x38] sm:$0xff] %vm3608_vm2, %v7466_v42 }
 0x6b2 PF: > { %s18_s27 = sadd.s32 1, %s9572_s27  }
 0x6b3   : > { %p15_p4 = scmp.ge.s32.totalorder %s18_s27, 4  }
 0x6b5   :  { %17 = sbr.rel (!%p15_p4) target bundleno = 1 (0x1), region = 115 }

</bundles_post_ra>
